<compile_context>
chip_gen: v5e
topology: v5e:2x2
jax: 0.10.0
libtpu: 0.0.40
codegen_flags: <defaults>
</compile_context>

<pallas_src>
import functools

import jax
import jax.numpy as jnp
from jax import lax
from jax.experimental import pallas as pl
from jax.experimental.pallas import tpu as pltpu


_CP = 16    # channel-slab pad: one full bf16 sublane tile (16 rows)
_ROW = 16   # row-block stride inside the packed weight / bias blobs


# ----------------------------------------------------------------------------
# Fused kernel
# ----------------------------------------------------------------------------
def _make_kernel(Cin, C1, C2, NC, H, W, B, cdt):
    """Build the fused encoder/decoder kernel for B images of size HxW."""
    Cp = _CP
    W2, H2 = W // 2, H // 2
    HW, HW2 = H * W, H2 * W2
    L, L2 = HW + 2 * (W + 1), HW2 + 2 * (W2 + 1)
    SK = 9 * Cp                      # row offset of skip patches inside pcat
    f32 = jnp.float32

    def kernel(x_ref, wb_ref, bb_ref, spool_ref, uup_ref, o_ref,
               cx, cs, cu, cpl, px, pcat, pp):

        # ---- per-step canvas hygiene -------------------------------------
        # Halo columns and padded channel rows must read as zero.  Done
        # unconditionally each step (cheap, ~15 KB) rather than under
        # @pl.when(program_id==0): a megacore-parallel core may never see
        # step 0, so its scratch would stay uninitialised.
        def clear(canvas, c_real, Wd, HWd):
            pad = Wd + 1
            canvas[:, 0:pad] = jnp.zeros((Cp, pad), canvas.dtype)
            canvas[:, pad + HWd:2 * pad + HWd] = jnp.zeros((Cp, pad), canvas.dtype)
            if c_real < Cp:
                canvas[c_real:Cp, pad:pad + HWd] = jnp.zeros(
                    (Cp - c_real, HWd), canvas.dtype)

        clear(cx, Cin, W, HW)
        clear(cs, C1, W, HW)
        clear(cu, C2, W, HW)
        clear(cpl, C1, W2, HW2)

        # ---- hoisted boundary masks (shared by every im2col tap/image) ----
        colf = lax.broadcasted_iota(jnp.int32, (Cp, HW), 1) % W
        mLf = (colf >= 1).astype(cdt)          # left-neighbour column valid
        mRf = (colf <= W - 2).astype(cdt)      # right-neighbour column valid
        colh = lax.broadcasted_iota(jnp.int32, (Cp, HW2), 1) % W2
        mLh = (colh >= 1).astype(cdt)
        mRh = (colh <= W2 - 2).astype(cdt)

        def im2col(act, c_real, canvas, patch, row_off, lane_off, Wd, HWd, mL, mR):
            """9-tap im2col of act (c_real, HWd) into full-Cp patch slabs.

            Each tap is one contiguous lane slice of the zero-padded canvas
            (no reshapes, no gathers); tap writes are full (16,128) bf16
            tiles because the channel slab is padded to Cp.
            """
            pad = Wd + 1
            canvas[0:c_real, pad:pad + HWd] = act.astype(canvas.dtype)
            t = 0
            for di in (-1, 0, 1):
                for dj in (-1, 0, 1):
                    start = pad + di * Wd + dj
                    part = canvas[:, start:start + HWd]            # (Cp, HWd)
                    if dj == -1:       # column 0 is out-of-image
                        part = part * mL
                    elif dj == 1:      # column Wd-1 is out-of-image
                        part = part * mR
                    patch[row_off + t * Cp:row_off + (t + 1) * Cp,
                          lane_off:lane_off + HWd] = part
                    t += 1

        # ---- packed constants ---------------------------------------------
        w1 = wb_ref[0 * _ROW:0 * _ROW + C1, 0:9 * Cp]
        w2 = wb_ref[1 * _ROW:1 * _ROW + C2, 0:9 * Cp]
        w3 = wb_ref[2 * _ROW:2 * _ROW + C1, 0:18 * Cp]
        w4 = wb_ref[3 * _ROW:3 * _ROW + NC, 0:C1]
        b1 = bb_ref[0 * _ROW:0 * _ROW + C1, :]
        b2 = bb_ref[1 * _ROW:1 * _ROW + C2, :]
        b3 = bb_ref[2 * _ROW:2 * _ROW + C1, :]
        b4 = bb_ref[3 * _ROW:3 * _ROW + NC, :]

        # ---- encoder conv1: 3x3 Cin->C1 + ReLU (one matmul over B*HW lanes)
        for b in range(B):
            im2col(x_ref[b], Cin, cx, px, 0, b * HW, W, HW, mLf, mRf)
        skip = jnp.dot(w1, px[...], preferred_element_type=f32)
        skip = jnp.maximum(skip + b1, 0.0).astype(cdt)             # (C1, B*HW)

        # ---- skip patches (shared by pool + decoder) + fused 2x2 max-pool --
        # Pool = max of taps {(0,0),(0,+1),(+1,0),(+1,+1)} then a 0/1
        # top-left-anchor select matmul (valid: H,W even + post-ReLU skip).
        for b in range(B):
            lo, hi = b * HW, (b + 1) * HW
            im2col(skip[:, lo:hi], C1, cs, pcat, SK, lo, W, HW, mLf, mRf)
            t4 = pcat[SK + 4 * Cp:SK + 4 * Cp + C1, lo:hi]
            t5 = pcat[SK + 5 * Cp:SK + 5 * Cp + C1, lo:hi]
            t7 = pcat[SK + 7 * Cp:SK + 7 * Cp + C1, lo:hi]
            t8 = pcat[SK + 8 * Cp:SK + 8 * Cp + C1, lo:hi]
            m = jnp.maximum(jnp.maximum(t4, t5), jnp.maximum(t7, t8))
            pooled = jnp.dot(m, spool_ref[...],
                             preferred_element_type=f32).astype(cdt)  # (C1, HW2)
            im2col(pooled, C1, cpl, pp, 0, b * HW2, W2, HW2, mLh, mRh)

        # ---- encoder conv2: 3x3 C1->C2 + ReLU at half resolution -----------
        feat = jnp.dot(w2, pp[...], preferred_element_type=f32)
        feat = jnp.maximum(feat + b2, 0.0).astype(cdt)             # (C2, B*HW2)

        # ---- decoder: nearest 2x upsample (0/1 row-select matmul) + im2col -
        for b in range(B):
            up = jnp.dot(feat[:, b * HW2:(b + 1) * HW2], uup_ref[...],
                         preferred_element_type=f32).astype(cdt)   # (C2, HW)
            im2col(up, C2, cu, pcat, 0, b * HW, W, HW, mLf, mRf)

        # ---- merged concat-conv: single K = 18*Cp matmul --------------------
        # conv3x3(cat[up, skip]) with pcat rows = [up patches | skip patches].
        d = jnp.dot(w3, pcat[...], preferred_element_type=f32)
        d = jnp.maximum(d + b3, 0.0).astype(cdt)                   # (C1, B*HW)

        # ---- 1x1 conv to class logits (lane-dense stores, already NCHW) ----
        logits = jnp.dot(w4, d, preferred_element_type=f32) + b4   # (NC, B*HW)
        for b in range(B):
            o_ref[b] = logits[:, b * HW:(b + 1) * HW].astype(o_ref.dtype)

    return kernel


# ----------------------------------------------------------------------------
# One-time parameter preprocessing (hoisted out of the forward pass)
# ----------------------------------------------------------------------------
def _flat3x3_padded(w, cdt):
    """(Cout, Cin, 3, 3) OIHW -> (Cout, 9*_CP); K is tap-major, each tap's
    channel block zero-padded to _CP columns (matches the padded patch rows)."""
    cout, cin = w.shape[0], w.shape[1]
    wt = jnp.transpose(w, (0, 2, 3, 1))                 # (Cout, 3, 3, Cin)
    wt = jnp.pad(wt, ((0, 0), (0, 0), (0, 0), (0, _CP - cin)))
    return wt.reshape(cout, 9 * _CP).astype(cdt)


def _pool_select_matrix(H, W, dtype):
    """0/1 matrix (HW, HW/4) selecting the top-left corner of each 2x2 block."""
    W2 = W // 2
    HW, HW2 = H * W, (H // 2) * W2
    p = jnp.arange(HW2)
    q_sel = (2 * (p // W2)) * W + 2 * (p % W2)
    return (jnp.arange(HW)[:, None] == q_sel[None, :]).astype(dtype)


def _upsample_select_matrix(H, W, dtype):
    """0/1 matrix (HW/4, HW) implementing exact nearest-neighbour 2x upsampling."""
    W2 = W // 2
    HW, HW2 = H * W, (H // 2) * W2
    q = jnp.arange(HW)
    p_src = (q // W // 2) * W2 + (q % W) // 2
    return (jnp.arange(HW2)[:, None] == p_src[None, :]).astype(dtype)


def prepare_params(params, H, W, compute_dtype=jnp.bfloat16):
    """Pack/flatten weights once; returns (consts, dims) for the forward pass."""
    cdt = compute_dtype
    Cin = params["enc_w1"].shape[1]
    C1 = params["enc_w1"].shape[0]
    C2 = params["enc_w2"].shape[0]
    NC = params["dec_w2"].shape[0]
    for c in (Cin, C1, C2, NC):
        if c > _CP:
            raise ValueError(f"channel count {c} exceeds packed slab size {_CP}")
    if H % 2 or W % 2:
        raise ValueError("H and W must be even (2x2 max-pool / 2x upsample).")

    w1p = _flat3x3_padded(params["enc_w1"], cdt)                    # (C1, 9*Cp)
    w2p = _flat3x3_padded(params["enc_w2"], cdt)                    # (C2, 9*Cp)
    # decoder conv input-channel order is [upsampled feature (C2), skip (C1)]
    w3p = jnp.concatenate(
        [_flat3x3_padded(params["dec_w1"][:, :C2], cdt),
         _flat3x3_padded(params["dec_w1"][:, C2:], cdt)], axis=1)   # (C1, 18*Cp)
    w4p = params["dec_w2"].reshape(NC, C1).astype(cdt)              # (NC, C1)

    # one bf16 weight blob + one f32 bias blob (5 input DMAs total incl. x)
    wblob = jnp.zeros((4 * _ROW, 18 * _CP), cdt)
    wblob = wblob.at[0 * _ROW:0 * _ROW + C1, 0:9 * _CP].set(w1p)
    wblob = wblob.at[1 * _ROW:1 * _ROW + C2, 0:9 * _CP].set(w2p)
    wblob = wblob.at[2 * _ROW:2 * _ROW + C1, :].set(w3p)
    wblob = wblob.at[3 * _ROW:3 * _ROW + NC, 0:C1].set(w4p)

    bblob = jnp.zeros((4 * _ROW, 1), jnp.float32)
    bblob = bblob.at[0 * _ROW:0 * _ROW + C1, 0].set(params["enc_b1"].astype(jnp.float32))
    bblob = bblob.at[1 * _ROW:1 * _ROW + C2, 0].set(params["enc_b2"].astype(jnp.float32))
    bblob = bblob.at[2 * _ROW:2 * _ROW + C1, 0].set(params["dec_b1"].astype(jnp.float32))
    bblob = bblob.at[3 * _ROW:3 * _ROW + NC, 0].set(params["dec_b2"].astype(jnp.float32))

    spool = _pool_select_matrix(H, W, cdt)     # (HW, HW/4)
    uup = _upsample_select_matrix(H, W, cdt)   # (HW/4, HW)

    consts = (wblob, bblob, spool, uup)
    dims = (C1, C2, NC)
    return consts, dims


# ----------------------------------------------------------------------------
# Forward wrapper
# ----------------------------------------------------------------------------
def _pick_batch_tile(N):
    """Largest divisor of N that still leaves >= 2 grid steps (v7x: 2 TCs)."""
    best = 1
    for b in range(1, N + 1):
        if N % b == 0 and N // b >= 2:
            best = b
    return best if N // best >= 2 else N


@functools.partial(jax.jit,
                   static_argnames=("dims", "compute_dtype", "batch_tile"))
def seg_encoder_decoder_forward(x_nchw, consts, dims,
                                compute_dtype=jnp.bfloat16, batch_tile=None):
    """forward(): feature, skips = encoder(x); y = decoder((feature, skips)).

    x: (N, Cin, H, W) float32 NCHW -> logits (N, num_classes, H, W) float32.
    `consts`/`dims` must come from prepare_params (one-time preprocessing).
    """
    wblob, bblob, spool, uup = consts
    C1, C2, NC = dims
    N, Cin, H, W = x_nchw.shape
    if H % 2 or W % 2:
        raise ValueError("H and W must be even.")
    HW = H * W
    HW2 = (H // 2) * (W // 2)
    cdt = compute_dtype
    Cp = _CP
    L = HW + 2 * (W + 1)
    L2 = HW2 + 2 * (W // 2 + 1)

    B = batch_tile if batch_tile is not None else _pick_batch_tile(N)
    if N % B:
        raise ValueError(f"batch_tile={B} must divide N={N}")
    grid = (N // B,)

    # channels-first, spatially-flattened layout: lane axis = H*W (lane-dense).
    # Stays f32 here -- the bf16 cast happens in VMEM inside the kernel.
    x_flat = x_nchw.reshape(N, Cin, HW)

    kernel = _make_kernel(Cin, C1, C2, NC, H, W, B, cdt)

    def const_spec(shape):
        return pl.BlockSpec(shape, lambda g: (0, 0))

    out_flat = pl.pallas_call(
        kernel,
        out_shape=jax.ShapeDtypeStruct((N, NC, HW), jnp.float32),
        grid=grid,
        in_specs=[
            pl.BlockSpec((B, Cin, HW), lambda g: (g, 0, 0)),
            const_spec(wblob.shape),
            const_spec(bblob.shape),
            const_spec(spool.shape),
            const_spec(uup.shape),
        ],
        out_specs=pl.BlockSpec((B, NC, HW), lambda g: (g, 0, 0)),
        scratch_shapes=[
            pltpu.VMEM((Cp, L), cdt),             # canvas: input image
            pltpu.VMEM((Cp, L), cdt),             # canvas: skip
            pltpu.VMEM((Cp, L), cdt),             # canvas: upsampled feature
            pltpu.VMEM((Cp, L2), cdt),            # canvas: pooled
            pltpu.VMEM((9 * Cp, B * HW), cdt),    # patches: encoder conv1
            pltpu.VMEM((18 * Cp, B * HW), cdt),   # patches: decoder [up | skip]
            pltpu.VMEM((9 * Cp, B * HW2), cdt),   # patches: encoder conv2
        ],
        compiler_params=pltpu.CompilerParams(
            dimension_semantics=("parallel",)),
    )(x_flat, wblob, bblob, spool, uup)

    return out_flat.reshape(N, NC, H, W)      # already NCHW -- no transposes


# ----------------------------------------------------------------------------
# Parameters (PyTorch layouts: conv weights OIHW, biases (C,))
# ----------------------------------------------------------------------------
def init_params(key, c_in=4, c1=8, c2=16, num_classes=3):
    ks = jax.random.split(key, 8)

    def conv_w(k, cout, cin, kh, kw):
        fan_in = cin * kh * kw
        return (jax.random.normal(k, (cout, cin, kh, kw), jnp.float32)
                / jnp.sqrt(jnp.float32(fan_in)))

    return {
        "enc_w1": conv_w(ks[0], c1, c_in, 3, 3),
        "enc_b1": 0.01 * jax.random.normal(ks[1], (c1,), jnp.float32),
        "enc_w2": conv_w(ks[2], c2, c1, 3, 3),
        "enc_b2": 0.01 * jax.random.normal(ks[3], (c2,), jnp.float32),
        "dec_w1": conv_w(ks[4], c1, c2 + c1, 3, 3),   # input channels = [feature, skip]
        "dec_b1": 0.01 * jax.random.normal(ks[5], (c1,), jnp.float32),
        "dec_w2": conv_w(ks[6], num_classes, c1, 1, 1),
        "dec_b2": 0.01 * jax.random.normal(ks[7], (num_classes,), jnp.float32),
    }


# ----------------------------------------------------------------------------
# Pure-JAX reference (mimics the kernel's bf16 MXU inputs / f32 accumulation)
# ----------------------------------------------------------------------------
def reference_forward(x_nchw, params, compute_dtype=jnp.bfloat16):
    f32 = jnp.float32
    hi = jax.lax.Precision.HIGHEST

    def q(t):
        return t.astype(compute_dtype).astype(f32)

    def conv(x, w, b):
        y = lax.conv_general_dilated(
            x, w, window_strides=(1, 1), padding="SAME",
            dimension_numbers=("NCHW", "OIHW", "NCHW"), precision=hi)
        return y + b[None, :, None, None]

    x = q(x_nchw)
    skip = q(jax.nn.relu(conv(x, q(params["enc_w1"]), params["enc_b1"])))
    N, C1, H, W = skip.shape
    pooled = jnp.max(skip.reshape(N, C1, H // 2, 2, W // 2, 2), axis=(3, 5))
    feat = q(jax.nn.relu(conv(pooled, q(params["enc_w2"]), params["enc_b2"])))
    up = jnp.repeat(jnp.repeat(feat, 2, axis=2), 2, axis=3)
    cat = jnp.concatenate([up, skip], axis=1)          # channel order: [feature, skip]
    d = q(jax.nn.relu(conv(cat, q(params["dec_w1"]), params["dec_b1"])))
    w4 = q(params["dec_w2"]).reshape(params["dec_w2"].shape[0], -1)
    logits = jnp.einsum("nchw,oc->nohw", d, w4, precision=hi)
    return logits + params["dec_b2"][None, :, None, None]


if __name__ == "__main__":
    key = jax.random.PRNGKey(0)
    kx, kp = jax.random.split(key)

    # N=4 exercises the batch-folded path (B_TILE=2 images per grid step)
    # while still keeping 2 parallel grid steps for v7x's two TensorCores.
    N, C_IN, H, W = 4, 4, 16, 16
    x = jax.random.normal(kx, (N, C_IN, H, W), jnp.float32)        # NCHW, like PyTorch
    params = init_params(kp, c_in=C_IN, c1=8, c2=16, num_classes=3)

    consts, dims = prepare_params(params, H, W)        # one-time preprocessing
    y = seg_encoder_decoder_forward(x, consts, dims=dims)
    y = jax.block_until_ready(y)

    assert y.shape == (N, 3, H, W), y.shape
    assert bool(jnp.all(jnp.isfinite(y)))

    y_ref = reference_forward(x, params)
    err = float(jnp.max(jnp.abs(y - y_ref)))
    scale = float(jnp.max(jnp.abs(y_ref)))
    if err > 2e-2 + 2e-2 * scale:
        raise AssertionError(
            f"kernel/reference mismatch: max|diff|={err:.4e}, max|ref|={scale:.4e}")
    print("KERNEL_OK")
</pallas_src>

<mosaic_0001>
module attributes {stable_mosaic.version = 11 : i64} {
  func.func @kernel(%arg0: i32, %arg1: memref<2x4x256xf32, #tpu.memory_space<vmem>>, %arg2: memref<64x288xbf16, #tpu.memory_space<vmem>>, %arg3: memref<64x1xf32, #tpu.memory_space<vmem>>, %arg4: memref<256x64xbf16, #tpu.memory_space<vmem>>, %arg5: memref<64x256xbf16, #tpu.memory_space<vmem>>, %arg6: memref<2x3x256xf32, #tpu.memory_space<vmem>>, %arg7: memref<16x290xbf16, #tpu.memory_space<vmem>>, %arg8: memref<16x290xbf16, #tpu.memory_space<vmem>>, %arg9: memref<16x290xbf16, #tpu.memory_space<vmem>>, %arg10: memref<16x82xbf16, #tpu.memory_space<vmem>>, %arg11: memref<144x512xbf16, #tpu.memory_space<vmem>>, %arg12: memref<288x512xbf16, #tpu.memory_space<vmem>>, %arg13: memref<144x128xbf16, #tpu.memory_space<vmem>>) attributes {dimension_semantics = [#tpu.dimension_semantics<parallel>], iteration_bounds = array<i64: 2>, scalar_prefetch = 0 : i64, scratch_operands = 7 : i64, tpu.core_type = #tpu.core_type<tc>, window_params = [{transform_indices = @transform_0, window_bounds = array<i64: 2, 4, 256>}, {pipeline_mode = #tpu.pipeline_mode<synchronous>, transform_indices = @transform_1, window_bounds = array<i64: 64, 288>}, {pipeline_mode = #tpu.pipeline_mode<synchronous>, transform_indices = @transform_2, window_bounds = array<i64: 64, 1>}, {pipeline_mode = #tpu.pipeline_mode<synchronous>, transform_indices = @transform_3, window_bounds = array<i64: 256, 64>}, {pipeline_mode = #tpu.pipeline_mode<synchronous>, transform_indices = @transform_4, window_bounds = array<i64: 64, 256>}, {transform_indices = @transform_5, window_bounds = array<i64: 2, 3, 256>}]} {
    %cst = arith.constant 0.000000e+00 : bf16
    %0 = vector.broadcast %cst : bf16 to vector<16x17xbf16>
    %c0 = arith.constant 0 : index
    %c0_0 = arith.constant 0 : index
    %1 = vector.load %arg7[%c0, %c0_0] : memref<16x290xbf16, #tpu.memory_space<vmem>>, vector<16x17xbf16>
    tpu.vector_store %arg7[%c0, %c0_0], %0 {strides = array<i32>} : memref<16x290xbf16, #tpu.memory_space<vmem>>, vector<16x17xbf16>,
    %cst_1 = arith.constant 0.000000e+00 : bf16
    %2 = vector.broadcast %cst_1 : bf16 to vector<16x17xbf16>
    %c0_2 = arith.constant 0 : index
    %c273 = arith.constant 273 : index
    %3 = vector.load %arg7[%c0_2, %c273] : memref<16x290xbf16, #tpu.memory_space<vmem>>, vector<16x17xbf16>
    tpu.vector_store %arg7[%c0_2, %c273], %2 {strides = array<i32>} : memref<16x290xbf16, #tpu.memory_space<vmem>>, vector<16x17xbf16>,
    %cst_3 = arith.constant 0.000000e+00 : bf16
    %4 = vector.broadcast %cst_3 : bf16 to vector<12x256xbf16>
    %c4 = arith.constant 4 : index
    %c17 = arith.constant 17 : index
    %5 = vector.load %arg7[%c4, %c17] : memref<16x290xbf16, #tpu.memory_space<vmem>>, vector<12x256xbf16>
    tpu.vector_store %arg7[%c4, %c17], %4 {strides = array<i32>} : memref<16x290xbf16, #tpu.memory_space<vmem>>, vector<12x256xbf16>,
    %cst_4 = arith.constant 0.000000e+00 : bf16
    %6 = vector.broadcast %cst_4 : bf16 to vector<16x17xbf16>
    %c0_5 = arith.constant 0 : index
    %c0_6 = arith.constant 0 : index
    %7 = vector.load %arg8[%c0_5, %c0_6] : memref<16x290xbf16, #tpu.memory_space<vmem>>, vector<16x17xbf16>
    tpu.vector_store %arg8[%c0_5, %c0_6], %6 {strides = array<i32>} : memref<16x290xbf16, #tpu.memory_space<vmem>>, vector<16x17xbf16>,
    %cst_7 = arith.constant 0.000000e+00 : bf16
    %8 = vector.broadcast %cst_7 : bf16 to vector<16x17xbf16>
    %c0_8 = arith.constant 0 : index
    %c273_9 = arith.constant 273 : index
    %9 = vector.load %arg8[%c0_8, %c273_9] : memref<16x290xbf16, #tpu.memory_space<vmem>>, vector<16x17xbf16>
    tpu.vector_store %arg8[%c0_8, %c273_9], %8 {strides = array<i32>} : memref<16x290xbf16, #tpu.memory_space<vmem>>, vector<16x17xbf16>,
    %cst_10 = arith.constant 0.000000e+00 : bf16
    %10 = vector.broadcast %cst_10 : bf16 to vector<8x256xbf16>
    %c8 = arith.constant 8 : index
    %c17_11 = arith.constant 17 : index
    %11 = vector.load %arg8[%c8, %c17_11] : memref<16x290xbf16, #tpu.memory_space<vmem>>, vector<8x256xbf16>
    tpu.vector_store %arg8[%c8, %c17_11], %10 {strides = array<i32>} : memref<16x290xbf16, #tpu.memory_space<vmem>>, vector<8x256xbf16>,
    %cst_12 = arith.constant 0.000000e+00 : bf16
    %12 = vector.broadcast %cst_12 : bf16 to vector<16x17xbf16>
    %c0_13 = arith.constant 0 : index
    %c0_14 = arith.constant 0 : index
    %13 = vector.load %arg9[%c0_13, %c0_14] : memref<16x290xbf16, #tpu.memory_space<vmem>>, vector<16x17xbf16>
    tpu.vector_store %arg9[%c0_13, %c0_14], %12 {strides = array<i32>} : memref<16x290xbf16, #tpu.memory_space<vmem>>, vector<16x17xbf16>,
    %cst_15 = arith.constant 0.000000e+00 : bf16
    %14 = vector.broadcast %cst_15 : bf16 to vector<16x17xbf16>
    %c0_16 = arith.constant 0 : index
    %c273_17 = arith.constant 273 : index
    %15 = vector.load %arg9[%c0_16, %c273_17] : memref<16x290xbf16, #tpu.memory_space<vmem>>, vector<16x17xbf16>
    tpu.vector_store %arg9[%c0_16, %c273_17], %14 {strides = array<i32>} : memref<16x290xbf16, #tpu.memory_space<vmem>>, vector<16x17xbf16>,
    %cst_18 = arith.constant 0.000000e+00 : bf16
    %16 = vector.broadcast %cst_18 : bf16 to vector<16x9xbf16>
    %c0_19 = arith.constant 0 : index
    %c0_20 = arith.constant 0 : index
    %17 = vector.load %arg10[%c0_19, %c0_20] : memref<16x82xbf16, #tpu.memory_space<vmem>>, vector<16x9xbf16>
    tpu.vector_store %arg10[%c0_19, %c0_20], %16 {strides = array<i32>} : memref<16x82xbf16, #tpu.memory_space<vmem>>, vector<16x9xbf16>,
    %cst_21 = arith.constant 0.000000e+00 : bf16
    %18 = vector.broadcast %cst_21 : bf16 to vector<16x9xbf16>
    %c0_22 = arith.constant 0 : index
    %c73 = arith.constant 73 : index
    %19 = vector.load %arg10[%c0_22, %c73] : memref<16x82xbf16, #tpu.memory_space<vmem>>, vector<16x9xbf16>
    tpu.vector_store %arg10[%c0_22, %c73], %18 {strides = array<i32>} : memref<16x82xbf16, #tpu.memory_space<vmem>>, vector<16x9xbf16>,
    %cst_23 = arith.constant 0.000000e+00 : bf16
    %20 = vector.broadcast %cst_23 : bf16 to vector<8x64xbf16>
    %c8_24 = arith.constant 8 : index
    %c9 = arith.constant 9 : index
    %21 = vector.load %arg10[%c8_24, %c9] : memref<16x82xbf16, #tpu.memory_space<vmem>>, vector<8x64xbf16>
    tpu.vector_store %arg10[%c8_24, %c9], %20 {strides = array<i32>} : memref<16x82xbf16, #tpu.memory_space<vmem>>, vector<8x64xbf16>,
    %22 = tpu.iota {dimensions = array<i32: 1>} : vector<16x256xi32>
    %c16_i32 = arith.constant 16 : i32
    %c0_i32 = arith.constant 0 : i32
    %23 = arith.cmpi eq, %c16_i32, %c0_i32 : i32
    %c1_i32 = arith.constant 1 : i32
    %24 = arith.select %23, %c1_i32, %c16_i32 : i32
    %25 = vector.broadcast %24 : i32 to vector<16x256xi32>
    %26 = arith.remsi %22, %25 : vector<16x256xi32>
    %c0_i32_25 = arith.constant 0 : i32
    %27 = vector.broadcast %c0_i32_25 : i32 to vector<16x256xi32>
    %28 = arith.cmpi ne, %26, %27 : vector<16x256xi32>
    %c0_i32_26 = arith.constant 0 : i32
    %29 = vector.broadcast %c0_i32_26 : i32 to vector<16x256xi32>
    %30 = arith.cmpi slt, %26, %29 : vector<16x256xi32>
    %c0_i32_27 = arith.constant 0 : i32
    %31 = arith.cmpi slt, %24, %c0_i32_27 : i32
    %32 = vector.broadcast %31 : i1 to vector<16x256xi1>
    %33 = vector.broadcast %32 : vector<16x256xi1> to vector<16x256xi1>
    %34 = arith.xori %30, %33 : vector<16x256xi1>
    %35 = arith.andi %34, %28 : vector<16x256xi1>
    %36 = vector.broadcast %24 : i32 to vector<16x256xi32>
    %37 = arith.addi %26, %36 : vector<16x256xi32>
    %38 = arith.select %35, %37, %26 : vector<16x256xi1>, vector<16x256xi32>
    %c1_i32_28 = arith.constant 1 : i32
    %39 = vector.broadcast %c1_i32_28 : i32 to vector<16x256xi32>
    %40 = arith.cmpi sge, %38, %39 : vector<16x256xi32>
    %41 = arith.extui %40 : vector<16x256xi1> to vector<16x256xi32>
    %42 = arith.sitofp %41 : vector<16x256xi32> to vector<16x256xf32>
    %43 = arith.truncf %42 : vector<16x256xf32> to vector<16x256xbf16>
    %c14_i32 = arith.constant 14 : i32
    %44 = vector.broadcast %c14_i32 : i32 to vector<16x256xi32>
    %45 = arith.cmpi sle, %38, %44 : vector<16x256xi32>
    %46 = arith.extui %45 : vector<16x256xi1> to vector<16x256xi32>
    %47 = arith.sitofp %46 : vector<16x256xi32> to vector<16x256xf32>
    %48 = arith.truncf %47 : vector<16x256xf32> to vector<16x256xbf16>
    %49 = tpu.iota {dimensions = array<i32: 1>} : vector<16x64xi32>
    %c8_i32 = arith.constant 8 : i32
    %c0_i32_29 = arith.constant 0 : i32
    %50 = arith.cmpi eq, %c8_i32, %c0_i32_29 : i32
    %c1_i32_30 = arith.constant 1 : i32
    %51 = arith.select %50, %c1_i32_30, %c8_i32 : i32
    %52 = vector.broadcast %51 : i32 to vector<16x64xi32>
    %53 = arith.remsi %49, %52 : vector<16x64xi32>
    %c0_i32_31 = arith.constant 0 : i32
    %54 = vector.broadcast %c0_i32_31 : i32 to vector<16x64xi32>
    %55 = arith.cmpi ne, %53, %54 : vector<16x64xi32>
    %c0_i32_32 = arith.constant 0 : i32
    %56 = vector.broadcast %c0_i32_32 : i32 to vector<16x64xi32>
    %57 = arith.cmpi slt, %53, %56 : vector<16x64xi32>
    %c0_i32_33 = arith.constant 0 : i32
    %58 = arith.cmpi slt, %51, %c0_i32_33 : i32
    %59 = vector.broadcast %58 : i1 to vector<16x64xi1>
    %60 = vector.broadcast %59 : vector<16x64xi1> to vector<16x64xi1>
    %61 = arith.xori %57, %60 : vector<16x64xi1>
    %62 = arith.andi %61, %55 : vector<16x64xi1>
    %63 = vector.broadcast %51 : i32 to vector<16x64xi32>
    %64 = arith.addi %53, %63 : vector<16x64xi32>
    %65 = arith.select %62, %64, %53 : vector<16x64xi1>, vector<16x64xi32>
    %c1_i32_34 = arith.constant 1 : i32
    %66 = vector.broadcast %c1_i32_34 : i32 to vector<16x64xi32>
    %67 = arith.cmpi sge, %65, %66 : vector<16x64xi32>
    %68 = arith.extui %67 : vector<16x64xi1> to vector<16x64xi32>
    %69 = arith.sitofp %68 : vector<16x64xi32> to vector<16x64xf32>
    %70 = arith.truncf %69 : vector<16x64xf32> to vector<16x64xbf16>
    %c6_i32 = arith.constant 6 : i32
    %71 = vector.broadcast %c6_i32 : i32 to vector<16x64xi32>
    %72 = arith.cmpi sle, %65, %71 : vector<16x64xi32>
    %73 = arith.extui %72 : vector<16x64xi1> to vector<16x64xi32>
    %74 = arith.sitofp %73 : vector<16x64xi32> to vector<16x64xf32>
    %75 = arith.truncf %74 : vector<16x64xf32> to vector<16x64xbf16>
    %c0_35 = arith.constant 0 : index
    %c0_36 = arith.constant 0 : index
    %76 = vector.load %arg2[%c0_35, %c0_36] : memref<64x288xbf16, #tpu.memory_space<vmem>>, vector<8x144xbf16>
    %c16 = arith.constant 16 : index
    %c0_37 = arith.constant 0 : index
    %77 = vector.load %arg2[%c16, %c0_37] : memref<64x288xbf16, #tpu.memory_space<vmem>>, vector<16x144xbf16>
    %c32 = arith.constant 32 : index
    %c0_38 = arith.constant 0 : index
    %78 = vector.load %arg2[%c32, %c0_38] : memref<64x288xbf16, #tpu.memory_space<vmem>>, vector<8x288xbf16>
    %c48 = arith.constant 48 : index
    %c0_39 = arith.constant 0 : index
    %79 = vector.load %arg2[%c48, %c0_39] : memref<64x288xbf16, #tpu.memory_space<vmem>>, vector<3x8xbf16>
    %c0_40 = arith.constant 0 : index
    %c0_41 = arith.constant 0 : index
    %80 = vector.load %arg3[%c0_40, %c0_41] : memref<64x1xf32, #tpu.memory_space<vmem>>, vector<8x1xf32>
    %c16_42 = arith.constant 16 : index
    %c0_43 = arith.constant 0 : index
    %81 = vector.load %arg3[%c16_42, %c0_43] : memref<64x1xf32, #tpu.memory_space<vmem>>, vector<16x1xf32>
    %c32_44 = arith.constant 32 : index
    %c0_45 = arith.constant 0 : index
    %82 = vector.load %arg3[%c32_44, %c0_45] : memref<64x1xf32, #tpu.memory_space<vmem>>, vector<8x1xf32>
    %c48_46 = arith.constant 48 : index
    %c0_47 = arith.constant 0 : index
    %83 = vector.load %arg3[%c48_46, %c0_47] : memref<64x1xf32, #tpu.memory_space<vmem>>, vector<3x1xf32>
    %c0_48 = arith.constant 0 : index
    %c0_49 = arith.constant 0 : index
    %c0_50 = arith.constant 0 : index
    %84 = vector.load %arg1[%c0_48, %c0_49, %c0_50] : memref<2x4x256xf32, #tpu.memory_space<vmem>>, vector<1x4x256xf32>
    %85 = vector.shape_cast %84 : vector<1x4x256xf32> to vector<4x256xf32>
    %86 = arith.truncf %85 : vector<4x256xf32> to vector<4x256xbf16>
    %c0_51 = arith.constant 0 : index
    %c17_52 = arith.constant 17 : index
    %87 = vector.load %arg7[%c0_51, %c17_52] : memref<16x290xbf16, #tpu.memory_space<vmem>>, vector<4x256xbf16>
    tpu.vector_store %arg7[%c0_51, %c17_52], %86 {strides = array<i32>} : memref<16x290xbf16, #tpu.memory_space<vmem>>, vector<4x256xbf16>,
    %c0_53 = arith.constant 0 : index
    %c0_54 = arith.constant 0 : index
    %88 = vector.load %arg7[%c0_53, %c0_54] : memref<16x290xbf16, #tpu.memory_space<vmem>>, vector<16x256xbf16>
    %89 = arith.mulf %88, %43 : vector<16x256xbf16>
    %c0_55 = arith.constant 0 : index
    %c0_56 = arith.constant 0 : index
    %90 = vector.load %arg11[%c0_55, %c0_56] : memref<144x512xbf16, #tpu.memory_space<vmem>>, vector<16x256xbf16>
    tpu.vector_store %arg11[%c0_55, %c0_56], %89 {strides = array<i32>} : memref<144x512xbf16, #tpu.memory_space<vmem>>, vector<16x256xbf16>,
    %c0_57 = arith.constant 0 : index
    %c1 = arith.constant 1 : index
    %91 = vector.load %arg7[%c0_57, %c1] : memref<16x290xbf16, #tpu.memory_space<vmem>>, vector<16x256xbf16>
    %c16_58 = arith.constant 16 : index
    %c0_59 = arith.constant 0 : index
    %92 = vector.load %arg11[%c16_58, %c0_59] : memref<144x512xbf16, #tpu.memory_space<vmem>>, vector<16x256xbf16>
    tpu.vector_store %arg11[%c16_58, %c0_59], %91 {strides = array<i32>} : memref<144x512xbf16, #tpu.memory_space<vmem>>, vector<16x256xbf16>,
    %c0_60 = arith.constant 0 : index
    %c2 = arith.constant 2 : index
    %93 = vector.load %arg7[%c0_60, %c2] : memref<16x290xbf16, #tpu.memory_space<vmem>>, vector<16x256xbf16>
    %94 = arith.mulf %93, %48 : vector<16x256xbf16>
    %c32_61 = arith.constant 32 : index
    %c0_62 = arith.constant 0 : index
    %95 = vector.load %arg11[%c32_61, %c0_62] : memref<144x512xbf16, #tpu.memory_space<vmem>>, vector<16x256xbf16>
    tpu.vector_store %arg11[%c32_61, %c0_62], %94 {strides = array<i32>} : memref<144x512xbf16, #tpu.memory_space<vmem>>, vector<16x256xbf16>,
    %c0_63 = arith.constant 0 : index
    %c16_64 = arith.constant 16 : index
    %96 = vector.load %arg7[%c0_63, %c16_64] : memref<16x290xbf16, #tpu.memory_space<vmem>>, vector<16x256xbf16>
    %97 = arith.mulf %96, %43 : vector<16x256xbf16>
    %c48_65 = arith.constant 48 : index
    %c0_66 = arith.constant 0 : index
    %98 = vector.load %arg11[%c48_65, %c0_66] : memref<144x512xbf16, #tpu.memory_space<vmem>>, vector<16x256xbf16>
    tpu.vector_store %arg11[%c48_65, %c0_66], %97 {strides = array<i32>} : memref<144x512xbf16, #tpu.memory_space<vmem>>, vector<16x256xbf16>,
    %c0_67 = arith.constant 0 : index
    %c17_68 = arith.constant 17 : index
    %99 = vector.load %arg7[%c0_67, %c17_68] : memref<16x290xbf16, #tpu.memory_space<vmem>>, vector<16x256xbf16>
    %c64 = arith.constant 64 : index
    %c0_69 = arith.constant 0 : index
    %100 = vector.load %arg11[%c64, %c0_69] : memref<144x512xbf16, #tpu.memory_space<vmem>>, vector<16x256xbf16>
    tpu.vector_store %arg11[%c64, %c0_69], %99 {strides = array<i32>} : memref<144x512xbf16, #tpu.memory_space<vmem>>, vector<16x256xbf16>,
    %c0_70 = arith.constant 0 : index
    %c18 = arith.constant 18 : index
    %101 = vector.load %arg7[%c0_70, %c18] : memref<16x290xbf16, #tpu.memory_space<vmem>>, vector<16x256xbf16>
    %102 = arith.mulf %101, %48 : vector<16x256xbf16>
    %c80 = arith.constant 80 : index
    %c0_71 = arith.constant 0 : index
    %103 = vector.load %arg11[%c80, %c0_71] : memref<144x512xbf16, #tpu.memory_space<vmem>>, vector<16x256xbf16>
    tpu.vector_store %arg11[%c80, %c0_71], %102 {strides = array<i32>} : memref<144x512xbf16, #tpu.memory_space<vmem>>, vector<16x256xbf16>,
    %c0_72 = arith.constant 0 : index
    %c32_73 = arith.constant 32 : index
    %104 = vector.load %arg7[%c0_72, %c32_73] : memref<16x290xbf16, #tpu.memory_space<vmem>>, vector<16x256xbf16>
    %105 = arith.mulf %104, %43 : vector<16x256xbf16>
    %c96 = arith.constant 96 : index
    %c0_74 = arith.constant 0 : index
    %106 = vector.load %arg11[%c96, %c0_74] : memref<144x512xbf16, #tpu.memory_space<vmem>>, vector<16x256xbf16>
    tpu.vector_store %arg11[%c96, %c0_74], %105 {strides = array<i32>} : memref<144x512xbf16, #tpu.memory_space<vmem>>, vector<16x256xbf16>,
    %c0_75 = arith.constant 0 : index
    %c33 = arith.constant 33 : index
    %107 = vector.load %arg7[%c0_75, %c33] : memref<16x290xbf16, #tpu.memory_space<vmem>>, vector<16x256xbf16>
    %c112 = arith.constant 112 : index
    %c0_76 = arith.constant 0 : index
    %108 = vector.load %arg11[%c112, %c0_76] : memref<144x512xbf16, #tpu.memory_space<vmem>>, vector<16x256xbf16>
    tpu.vector_store %arg11[%c112, %c0_76], %107 {strides = array<i32>} : memref<144x512xbf16, #tpu.memory_space<vmem>>, vector<16x256xbf16>,
    %c0_77 = arith.constant 0 : index
    %c34 = arith.constant 34 : index
    %109 = vector.load %arg7[%c0_77, %c34] : memref<16x290xbf16, #tpu.memory_space<vmem>>, vector<16x256xbf16>
    %110 = arith.mulf %109, %48 : vector<16x256xbf16>
    %c128 = arith.constant 128 : index
    %c0_78 = arith.constant 0 : index
    %111 = vector.load %arg11[%c128, %c0_78] : memref<144x512xbf16, #tpu.memory_space<vmem>>, vector<16x256xbf16>
    tpu.vector_store %arg11[%c128, %c0_78], %110 {strides = array<i32>} : memref<144x512xbf16, #tpu.memory_space<vmem>>, vector<16x256xbf16>,
    %c1_79 = arith.constant 1 : index
    %c0_80 = arith.constant 0 : index
    %c0_81 = arith.constant 0 : index
    %112 = vector.load %arg1[%c1_79, %c0_80, %c0_81] : memref<2x4x256xf32, #tpu.memory_space<vmem>>, vector<1x4x256xf32>
    %113 = vector.shape_cast %112 : vector<1x4x256xf32> to vector<4x256xf32>
    %114 = arith.truncf %113 : vector<4x256xf32> to vector<4x256xbf16>
    %c0_82 = arith.constant 0 : index
    %c17_83 = arith.constant 17 : index
    %115 = vector.load %arg7[%c0_82, %c17_83] : memref<16x290xbf16, #tpu.memory_space<vmem>>, vector<4x256xbf16>
    tpu.vector_store %arg7[%c0_82, %c17_83], %114 {strides = array<i32>} : memref<16x290xbf16, #tpu.memory_space<vmem>>, vector<4x256xbf16>,
    %c0_84 = arith.constant 0 : index
    %c0_85 = arith.constant 0 : index
    %116 = vector.load %arg7[%c0_84, %c0_85] : memref<16x290xbf16, #tpu.memory_space<vmem>>, vector<16x256xbf16>
    %117 = arith.mulf %116, %43 : vector<16x256xbf16>
    %c0_86 = arith.constant 0 : index
    %c256 = arith.constant 256 : index
    %118 = vector.load %arg11[%c0_86, %c256] : memref<144x512xbf16, #tpu.memory_space<vmem>>, vector<16x256xbf16>
    tpu.vector_store %arg11[%c0_86, %c256], %117 {strides = array<i32>} : memref<144x512xbf16, #tpu.memory_space<vmem>>, vector<16x256xbf16>,
    %c0_87 = arith.constant 0 : index
    %c1_88 = arith.constant 1 : index
    %119 = vector.load %arg7[%c0_87, %c1_88] : memref<16x290xbf16, #tpu.memory_space<vmem>>, vector<16x256xbf16>
    %c16_89 = arith.constant 16 : index
    %c256_90 = arith.constant 256 : index
    %120 = vector.load %arg11[%c16_89, %c256_90] : memref<144x512xbf16, #tpu.memory_space<vmem>>, vector<16x256xbf16>
    tpu.vector_store %arg11[%c16_89, %c256_90], %119 {strides = array<i32>} : memref<144x512xbf16, #tpu.memory_space<vmem>>, vector<16x256xbf16>,
    %c0_91 = arith.constant 0 : index
    %c2_92 = arith.constant 2 : index
    %121 = vector.load %arg7[%c0_91, %c2_92] : memref<16x290xbf16, #tpu.memory_space<vmem>>, vector<16x256xbf16>
    %122 = arith.mulf %121, %48 : vector<16x256xbf16>
    %c32_93 = arith.constant 32 : index
    %c256_94 = arith.constant 256 : index
    %123 = vector.load %arg11[%c32_93, %c256_94] : memref<144x512xbf16, #tpu.memory_space<vmem>>, vector<16x256xbf16>
    tpu.vector_store %arg11[%c32_93, %c256_94], %122 {strides = array<i32>} : memref<144x512xbf16, #tpu.memory_space<vmem>>, vector<16x256xbf16>,
    %c0_95 = arith.constant 0 : index
    %c16_96 = arith.constant 16 : index
    %124 = vector.load %arg7[%c0_95, %c16_96] : memref<16x290xbf16, #tpu.memory_space<vmem>>, vector<16x256xbf16>
    %125 = arith.mulf %124, %43 : vector<16x256xbf16>
    %c48_97 = arith.constant 48 : index
    %c256_98 = arith.constant 256 : index
    %126 = vector.load %arg11[%c48_97, %c256_98] : memref<144x512xbf16, #tpu.memory_space<vmem>>, vector<16x256xbf16>
    tpu.vector_store %arg11[%c48_97, %c256_98], %125 {strides = array<i32>} : memref<144x512xbf16, #tpu.memory_space<vmem>>, vector<16x256xbf16>,
    %c0_99 = arith.constant 0 : index
    %c17_100 = arith.constant 17 : index
    %127 = vector.load %arg7[%c0_99, %c17_100] : memref<16x290xbf16, #tpu.memory_space<vmem>>, vector<16x256xbf16>
    %c64_101 = arith.constant 64 : index
    %c256_102 = arith.constant 256 : index
    %128 = vector.load %arg11[%c64_101, %c256_102] : memref<144x512xbf16, #tpu.memory_space<vmem>>, vector<16x256xbf16>
    tpu.vector_store %arg11[%c64_101, %c256_102], %127 {strides = array<i32>} : memref<144x512xbf16, #tpu.memory_space<vmem>>, vector<16x256xbf16>,
    %c0_103 = arith.constant 0 : index
    %c18_104 = arith.constant 18 : index
    %129 = vector.load %arg7[%c0_103, %c18_104] : memref<16x290xbf16, #tpu.memory_space<vmem>>, vector<16x256xbf16>
    %130 = arith.mulf %129, %48 : vector<16x256xbf16>
    %c80_105 = arith.constant 80 : index
    %c256_106 = arith.constant 256 : index
    %131 = vector.load %arg11[%c80_105, %c256_106] : memref<144x512xbf16, #tpu.memory_space<vmem>>, vector<16x256xbf16>
    tpu.vector_store %arg11[%c80_105, %c256_106], %130 {strides = array<i32>} : memref<144x512xbf16, #tpu.memory_space<vmem>>, vector<16x256xbf16>,
    %c0_107 = arith.constant 0 : index
    %c32_108 = arith.constant 32 : index
    %132 = vector.load %arg7[%c0_107, %c32_108] : memref<16x290xbf16, #tpu.memory_space<vmem>>, vector<16x256xbf16>
    %133 = arith.mulf %132, %43 : vector<16x256xbf16>
    %c96_109 = arith.constant 96 : index
    %c256_110 = arith.constant 256 : index
    %134 = vector.load %arg11[%c96_109, %c256_110] : memref<144x512xbf16, #tpu.memory_space<vmem>>, vector<16x256xbf16>
    tpu.vector_store %arg11[%c96_109, %c256_110], %133 {strides = array<i32>} : memref<144x512xbf16, #tpu.memory_space<vmem>>, vector<16x256xbf16>,
    %c0_111 = arith.constant 0 : index
    %c33_112 = arith.constant 33 : index
    %135 = vector.load %arg7[%c0_111, %c33_112] : memref<16x290xbf16, #tpu.memory_space<vmem>>, vector<16x256xbf16>
    %c112_113 = arith.constant 112 : index
    %c256_114 = arith.constant 256 : index
    %136 = vector.load %arg11[%c112_113, %c256_114] : memref<144x512xbf16, #tpu.memory_space<vmem>>, vector<16x256xbf16>
    tpu.vector_store %arg11[%c112_113, %c256_114], %135 {strides = array<i32>} : memref<144x512xbf16, #tpu.memory_space<vmem>>, vector<16x256xbf16>,
    %c0_115 = arith.constant 0 : index
    %c34_116 = arith.constant 34 : index
    %137 = vector.load %arg7[%c0_115, %c34_116] : memref<16x290xbf16, #tpu.memory_space<vmem>>, vector<16x256xbf16>
    %138 = arith.mulf %137, %48 : vector<16x256xbf16>
    %c128_117 = arith.constant 128 : index
    %c256_118 = arith.constant 256 : index
    %139 = vector.load %arg11[%c128_117, %c256_118] : memref<144x512xbf16, #tpu.memory_space<vmem>>, vector<16x256xbf16>
    tpu.vector_store %arg11[%c128_117, %c256_118], %138 {strides = array<i32>} : memref<144x512xbf16, #tpu.memory_space<vmem>>, vector<16x256xbf16>,
    %c0_119 = arith.constant 0 : index
    %c0_120 = arith.constant 0 : index
    %140 = vector.load %arg11[%c0_119, %c0_120] : memref<144x512xbf16, #tpu.memory_space<vmem>>, vector<144x512xbf16>
    %cst_121 = arith.constant dense<0.000000e+00> : vector<8x512xf32>
    %141 = tpu.matmul %76, %140, %cst_121 {dimension_numbers = #tpu.dot_dimension_numbers<[1], [0], [0], [1], [0, 0, 1, 1], [], []>} : vector<8x144xbf16>, vector<144x512xbf16>, vector<8x512xf32> -> vector<8x512xf32>
    %142 = vector.broadcast %80 : vector<8x1xf32> to vector<8x512xf32>
    %143 = arith.addf %141, %142 : vector<8x512xf32>
    %cst_122 = arith.constant 0.000000e+00 : f32
    %144 = vector.broadcast %cst_122 : f32 to vector<8x512xf32>
    %145 = arith.maximumf %143, %144 : vector<8x512xf32>
    %146 = arith.truncf %145 : vector<8x512xf32> to vector<8x512xbf16>
    %147 = vector.extract_strided_slice %146 {offsets = [0, 0], sizes = [8, 256], strides = [1, 1]} : vector<8x512xbf16> to vector<8x256xbf16>
    %c0_123 = arith.constant 0 : index
    %c17_124 = arith.constant 17 : index
    %148 = vector.load %arg8[%c0_123, %c17_124] : memref<16x290xbf16, #tpu.memory_space<vmem>>, vector<8x256xbf16>
    tpu.vector_store %arg8[%c0_123, %c17_124], %147 {strides = array<i32>} : memref<16x290xbf16, #tpu.memory_space<vmem>>, vector<8x256xbf16>,
    %c0_125 = arith.constant 0 : index
    %c0_126 = arith.constant 0 : index
    %149 = vector.load %arg8[%c0_125, %c0_126] : memref<16x290xbf16, #tpu.memory_space<vmem>>, vector<16x256xbf16>
    %150 = arith.mulf %149, %43 : vector<16x256xbf16>
    %c144 = arith.constant 144 : index
    %c0_127 = arith.constant 0 : index
    %151 = vector.load %arg12[%c144, %c0_127] : memref<288x512xbf16, #tpu.memory_space<vmem>>, vector<16x256xbf16>
    tpu.vector_store %arg12[%c144, %c0_127], %150 {strides = array<i32>} : memref<288x512xbf16, #tpu.memory_space<vmem>>, vector<16x256xbf16>,
    %c0_128 = arith.constant 0 : index
    %c1_129 = arith.constant 1 : index
    %152 = vector.load %arg8[%c0_128, %c1_129] : memref<16x290xbf16, #tpu.memory_space<vmem>>, vector<16x256xbf16>
    %c160 = arith.constant 160 : index
    %c0_130 = arith.constant 0 : index
    %153 = vector.load %arg12[%c160, %c0_130] : memref<288x512xbf16, #tpu.memory_space<vmem>>, vector<16x256xbf16>
    tpu.vector_store %arg12[%c160, %c0_130], %152 {strides = array<i32>} : memref<288x512xbf16, #tpu.memory_space<vmem>>, vector<16x256xbf16>,
    %c0_131 = arith.constant 0 : index
    %c2_132 = arith.constant 2 : index
    %154 = vector.load %arg8[%c0_131, %c2_132] : memref<16x290xbf16, #tpu.memory_space<vmem>>, vector<16x256xbf16>
    %155 = arith.mulf %154, %48 : vector<16x256xbf16>
    %c176 = arith.constant 176 : index
    %c0_133 = arith.constant 0 : index
    %156 = vector.load %arg12[%c176, %c0_133] : memref<288x512xbf16, #tpu.memory_space<vmem>>, vector<16x256xbf16>
    tpu.vector_store %arg12[%c176, %c0_133], %155 {strides = array<i32>} : memref<288x512xbf16, #tpu.memory_space<vmem>>, vector<16x256xbf16>,
    %c0_134 = arith.constant 0 : index
    %c16_135 = arith.constant 16 : index
    %157 = vector.load %arg8[%c0_134, %c16_135] : memref<16x290xbf16, #tpu.memory_space<vmem>>, vector<16x256xbf16>
    %158 = arith.mulf %157, %43 : vector<16x256xbf16>
    %c192 = arith.constant 192 : index
    %c0_136 = arith.constant 0 : index
    %159 = vector.load %arg12[%c192, %c0_136] : memref<288x512xbf16, #tpu.memory_space<vmem>>, vector<16x256xbf16>
    tpu.vector_store %arg12[%c192, %c0_136], %158 {strides = array<i32>} : memref<288x512xbf16, #tpu.memory_space<vmem>>, vector<16x256xbf16>,
    %c0_137 = arith.constant 0 : index
    %c17_138 = arith.constant 17 : index
    %160 = vector.load %arg8[%c0_137, %c17_138] : memref<16x290xbf16, #tpu.memory_space<vmem>>, vector<16x256xbf16>
    %c208 = arith.constant 208 : index
    %c0_139 = arith.constant 0 : index
    %161 = vector.load %arg12[%c208, %c0_139] : memref<288x512xbf16, #tpu.memory_space<vmem>>, vector<16x256xbf16>
    tpu.vector_store %arg12[%c208, %c0_139], %160 {strides = array<i32>} : memref<288x512xbf16, #tpu.memory_space<vmem>>, vector<16x256xbf16>,
    %c0_140 = arith.constant 0 : index
    %c18_141 = arith.constant 18 : index
    %162 = vector.load %arg8[%c0_140, %c18_141] : memref<16x290xbf16, #tpu.memory_space<vmem>>, vector<16x256xbf16>
    %163 = arith.mulf %162, %48 : vector<16x256xbf16>
    %c224 = arith.constant 224 : index
    %c0_142 = arith.constant 0 : index
    %164 = vector.load %arg12[%c224, %c0_142] : memref<288x512xbf16, #tpu.memory_space<vmem>>, vector<16x256xbf16>
    tpu.vector_store %arg12[%c224, %c0_142], %163 {strides = array<i32>} : memref<288x512xbf16, #tpu.memory_space<vmem>>, vector<16x256xbf16>,
    %c0_143 = arith.constant 0 : index
    %c32_144 = arith.constant 32 : index
    %165 = vector.load %arg8[%c0_143, %c32_144] : memref<16x290xbf16, #tpu.memory_space<vmem>>, vector<16x256xbf16>
    %166 = arith.mulf %165, %43 : vector<16x256xbf16>
    %c240 = arith.constant 240 : index
    %c0_145 = arith.constant 0 : index
    %167 = vector.load %arg12[%c240, %c0_145] : memref<288x512xbf16, #tpu.memory_space<vmem>>, vector<16x256xbf16>
    tpu.vector_store %arg12[%c240, %c0_145], %166 {strides = array<i32>} : memref<288x512xbf16, #tpu.memory_space<vmem>>, vector<16x256xbf16>,
    %c0_146 = arith.constant 0 : index
    %c33_147 = arith.constant 33 : index
    %168 = vector.load %arg8[%c0_146, %c33_147] : memref<16x290xbf16, #tpu.memory_space<vmem>>, vector<16x256xbf16>
    %c256_148 = arith.constant 256 : index
    %c0_149 = arith.constant 0 : index
    %169 = vector.load %arg12[%c256_148, %c0_149] : memref<288x512xbf16, #tpu.memory_space<vmem>>, vector<16x256xbf16>
    tpu.vector_store %arg12[%c256_148, %c0_149], %168 {strides = array<i32>} : memref<288x512xbf16, #tpu.memory_space<vmem>>, vector<16x256xbf16>,
    %c0_150 = arith.constant 0 : index
    %c34_151 = arith.constant 34 : index
    %170 = vector.load %arg8[%c0_150, %c34_151] : memref<16x290xbf16, #tpu.memory_space<vmem>>, vector<16x256xbf16>
    %171 = arith.mulf %170, %48 : vector<16x256xbf16>
    %c272 = arith.constant 272 : index
    %c0_152 = arith.constant 0 : index
    %172 = vector.load %arg12[%c272, %c0_152] : memref<288x512xbf16, #tpu.memory_space<vmem>>, vector<16x256xbf16>
    tpu.vector_store %arg12[%c272, %c0_152], %171 {strides = array<i32>} : memref<288x512xbf16, #tpu.memory_space<vmem>>, vector<16x256xbf16>,
    %c208_153 = arith.constant 208 : index
    %c0_154 = arith.constant 0 : index
    %173 = vector.load %arg12[%c208_153, %c0_154] : memref<288x512xbf16, #tpu.memory_space<vmem>>, vector<8x256xbf16>
    %c224_155 = arith.constant 224 : index
    %c0_156 = arith.constant 0 : index
    %174 = vector.load %arg12[%c224_155, %c0_156] : memref<288x512xbf16, #tpu.memory_space<vmem>>, vector<8x256xbf16>
    %c256_157 = arith.constant 256 : index
    %c0_158 = arith.constant 0 : index
    %175 = vector.load %arg12[%c256_157, %c0_158] : memref<288x512xbf16, #tpu.memory_space<vmem>>, vector<8x256xbf16>
    %c272_159 = arith.constant 272 : index
    %c0_160 = arith.constant 0 : index
    %176 = vector.load %arg12[%c272_159, %c0_160] : memref<288x512xbf16, #tpu.memory_space<vmem>>, vector<8x256xbf16>
    %177 = arith.maximumf %173, %174 : vector<8x256xbf16>
    %178 = arith.maximumf %175, %176 : vector<8x256xbf16>
    %179 = arith.maximumf %177, %178 : vector<8x256xbf16>
    %c0_161 = arith.constant 0 : index
    %c0_162 = arith.constant 0 : index
    %180 = vector.load %arg4[%c0_161, %c0_162] : memref<256x64xbf16, #tpu.memory_space<vmem>>, vector<256x64xbf16>
    %cst_163 = arith.constant dense<0.000000e+00> : vector<8x64xf32>
    %181 = tpu.matmul %179, %180, %cst_163 {dimension_numbers = #tpu.dot_dimension_numbers<[1], [0], [0], [1], [0, 0, 1, 1], [], []>} : vector<8x256xbf16>, vector<256x64xbf16>, vector<8x64xf32> -> vector<8x64xf32>
    %182 = arith.truncf %181 : vector<8x64xf32> to vector<8x64xbf16>
    %c0_164 = arith.constant 0 : index
    %c9_165 = arith.constant 9 : index
    %183 = vector.load %arg10[%c0_164, %c9_165] : memref<16x82xbf16, #tpu.memory_space<vmem>>, vector<8x64xbf16>
    tpu.vector_store %arg10[%c0_164, %c9_165], %182 {strides = array<i32>} : memref<16x82xbf16, #tpu.memory_space<vmem>>, vector<8x64xbf16>,
    %c0_166 = arith.constant 0 : index
    %c0_167 = arith.constant 0 : index
    %184 = vector.load %arg10[%c0_166, %c0_167] : memref<16x82xbf16, #tpu.memory_space<vmem>>, vector<16x64xbf16>
    %185 = arith.mulf %184, %70 : vector<16x64xbf16>
    %c0_168 = arith.constant 0 : index
    %c0_169 = arith.constant 0 : index
    %186 = vector.load %arg13[%c0_168, %c0_169] : memref<144x128xbf16, #tpu.memory_space<vmem>>, vector<16x64xbf16>
    tpu.vector_store %arg13[%c0_168, %c0_169], %185 {strides = array<i32>} : memref<144x128xbf16, #tpu.memory_space<vmem>>, vector<16x64xbf16>,
    %c0_170 = arith.constant 0 : index
    %c1_171 = arith.constant 1 : index
    %187 = vector.load %arg10[%c0_170, %c1_171] : memref<16x82xbf16, #tpu.memory_space<vmem>>, vector<16x64xbf16>
    %c16_172 = arith.constant 16 : index
    %c0_173 = arith.constant 0 : index
    %188 = vector.load %arg13[%c16_172, %c0_173] : memref<144x128xbf16, #tpu.memory_space<vmem>>, vector<16x64xbf16>
    tpu.vector_store %arg13[%c16_172, %c0_173], %187 {strides = array<i32>} : memref<144x128xbf16, #tpu.memory_space<vmem>>, vector<16x64xbf16>,
    %c0_174 = arith.constant 0 : index
    %c2_175 = arith.constant 2 : index
    %189 = vector.load %arg10[%c0_174, %c2_175] : memref<16x82xbf16, #tpu.memory_space<vmem>>, vector<16x64xbf16>
    %190 = arith.mulf %189, %75 : vector<16x64xbf16>
    %c32_176 = arith.constant 32 : index
    %c0_177 = arith.constant 0 : index
    %191 = vector.load %arg13[%c32_176, %c0_177] : memref<144x128xbf16, #tpu.memory_space<vmem>>, vector<16x64xbf16>
    tpu.vector_store %arg13[%c32_176, %c0_177], %190 {strides = array<i32>} : memref<144x128xbf16, #tpu.memory_space<vmem>>, vector<16x64xbf16>,
    %c0_178 = arith.constant 0 : index
    %c8_179 = arith.constant 8 : index
    %192 = vector.load %arg10[%c0_178, %c8_179] : memref<16x82xbf16, #tpu.memory_space<vmem>>, vector<16x64xbf16>
    %193 = arith.mulf %192, %70 : vector<16x64xbf16>
    %c48_180 = arith.constant 48 : index
    %c0_181 = arith.constant 0 : index
    %194 = vector.load %arg13[%c48_180, %c0_181] : memref<144x128xbf16, #tpu.memory_space<vmem>>, vector<16x64xbf16>
    tpu.vector_store %arg13[%c48_180, %c0_181], %193 {strides = array<i32>} : memref<144x128xbf16, #tpu.memory_space<vmem>>, vector<16x64xbf16>,
    %c0_182 = arith.constant 0 : index
    %c9_183 = arith.constant 9 : index
    %195 = vector.load %arg10[%c0_182, %c9_183] : memref<16x82xbf16, #tpu.memory_space<vmem>>, vector<16x64xbf16>
    %c64_184 = arith.constant 64 : index
    %c0_185 = arith.constant 0 : index
    %196 = vector.load %arg13[%c64_184, %c0_185] : memref<144x128xbf16, #tpu.memory_space<vmem>>, vector<16x64xbf16>
    tpu.vector_store %arg13[%c64_184, %c0_185], %195 {strides = array<i32>} : memref<144x128xbf16, #tpu.memory_space<vmem>>, vector<16x64xbf16>,
    %c0_186 = arith.constant 0 : index
    %c10 = arith.constant 10 : index
    %197 = vector.load %arg10[%c0_186, %c10] : memref<16x82xbf16, #tpu.memory_space<vmem>>, vector<16x64xbf16>
    %198 = arith.mulf %197, %75 : vector<16x64xbf16>
    %c80_187 = arith.constant 80 : index
    %c0_188 = arith.constant 0 : index
    %199 = vector.load %arg13[%c80_187, %c0_188] : memref<144x128xbf16, #tpu.memory_space<vmem>>, vector<16x64xbf16>
    tpu.vector_store %arg13[%c80_187, %c0_188], %198 {strides = array<i32>} : memref<144x128xbf16, #tpu.memory_space<vmem>>, vector<16x64xbf16>,
    %c0_189 = arith.constant 0 : index
    %c16_190 = arith.constant 16 : index
    %200 = vector.load %arg10[%c0_189, %c16_190] : memref<16x82xbf16, #tpu.memory_space<vmem>>, vector<16x64xbf16>
    %201 = arith.mulf %200, %70 : vector<16x64xbf16>
    %c96_191 = arith.constant 96 : index
    %c0_192 = arith.constant 0 : index
    %202 = vector.load %arg13[%c96_191, %c0_192] : memref<144x128xbf16, #tpu.memory_space<vmem>>, vector<16x64xbf16>
    tpu.vector_store %arg13[%c96_191, %c0_192], %201 {strides = array<i32>} : memref<144x128xbf16, #tpu.memory_space<vmem>>, vector<16x64xbf16>,
    %c0_193 = arith.constant 0 : index
    %c17_194 = arith.constant 17 : index
    %203 = vector.load %arg10[%c0_193, %c17_194] : memref<16x82xbf16, #tpu.memory_space<vmem>>, vector<16x64xbf16>
    %c112_195 = arith.constant 112 : index
    %c0_196 = arith.constant 0 : index
    %204 = vector.load %arg13[%c112_195, %c0_196] : memref<144x128xbf16, #tpu.memory_space<vmem>>, vector<16x64xbf16>
    tpu.vector_store %arg13[%c112_195, %c0_196], %203 {strides = array<i32>} : memref<144x128xbf16, #tpu.memory_space<vmem>>, vector<16x64xbf16>,
    %c0_197 = arith.constant 0 : index
    %c18_198 = arith.constant 18 : index
    %205 = vector.load %arg10[%c0_197, %c18_198] : memref<16x82xbf16, #tpu.memory_space<vmem>>, vector<16x64xbf16>
    %206 = arith.mulf %205, %75 : vector<16x64xbf16>
    %c128_199 = arith.constant 128 : index
    %c0_200 = arith.constant 0 : index
    %207 = vector.load %arg13[%c128_199, %c0_200] : memref<144x128xbf16, #tpu.memory_space<vmem>>, vector<16x64xbf16>
    tpu.vector_store %arg13[%c128_199, %c0_200], %206 {strides = array<i32>} : memref<144x128xbf16, #tpu.memory_space<vmem>>, vector<16x64xbf16>,
    %208 = vector.extract_strided_slice %146 {offsets = [0, 256], sizes = [8, 256], strides = [1, 1]} : vector<8x512xbf16> to vector<8x256xbf16>
    %c0_201 = arith.constant 0 : index
    %c17_202 = arith.constant 17 : index
    %209 = vector.load %arg8[%c0_201, %c17_202] : memref<16x290xbf16, #tpu.memory_space<vmem>>, vector<8x256xbf16>
    tpu.vector_store %arg8[%c0_201, %c17_202], %208 {strides = array<i32>} : memref<16x290xbf16, #tpu.memory_space<vmem>>, vector<8x256xbf16>,
    %c0_203 = arith.constant 0 : index
    %c0_204 = arith.constant 0 : index
    %210 = vector.load %arg8[%c0_203, %c0_204] : memref<16x290xbf16, #tpu.memory_space<vmem>>, vector<16x256xbf16>
    %211 = arith.mulf %210, %43 : vector<16x256xbf16>
    %c144_205 = arith.constant 144 : index
    %c256_206 = arith.constant 256 : index
    %212 = vector.load %arg12[%c144_205, %c256_206] : memref<288x512xbf16, #tpu.memory_space<vmem>>, vector<16x256xbf16>
    tpu.vector_store %arg12[%c144_205, %c256_206], %211 {strides = array<i32>} : memref<288x512xbf16, #tpu.memory_space<vmem>>, vector<16x256xbf16>,
    %c0_207 = arith.constant 0 : index
    %c1_208 = arith.constant 1 : index
    %213 = vector.load %arg8[%c0_207, %c1_208] : memref<16x290xbf16, #tpu.memory_space<vmem>>, vector<16x256xbf16>
    %c160_209 = arith.constant 160 : index
    %c256_210 = arith.constant 256 : index
    %214 = vector.load %arg12[%c160_209, %c256_210] : memref<288x512xbf16, #tpu.memory_space<vmem>>, vector<16x256xbf16>
    tpu.vector_store %arg12[%c160_209, %c256_210], %213 {strides = array<i32>} : memref<288x512xbf16, #tpu.memory_space<vmem>>, vector<16x256xbf16>,
    %c0_211 = arith.constant 0 : index
    %c2_212 = arith.constant 2 : index
    %215 = vector.load %arg8[%c0_211, %c2_212] : memref<16x290xbf16, #tpu.memory_space<vmem>>, vector<16x256xbf16>
    %216 = arith.mulf %215, %48 : vector<16x256xbf16>
    %c176_213 = arith.constant 176 : index
    %c256_214 = arith.constant 256 : index
    %217 = vector.load %arg12[%c176_213, %c256_214] : memref<288x512xbf16, #tpu.memory_space<vmem>>, vector<16x256xbf16>
    tpu.vector_store %arg12[%c176_213, %c256_214], %216 {strides = array<i32>} : memref<288x512xbf16, #tpu.memory_space<vmem>>, vector<16x256xbf16>,
    %c0_215 = arith.constant 0 : index
    %c16_216 = arith.constant 16 : index
    %218 = vector.load %arg8[%c0_215, %c16_216] : memref<16x290xbf16, #tpu.memory_space<vmem>>, vector<16x256xbf16>
    %219 = arith.mulf %218, %43 : vector<16x256xbf16>
    %c192_217 = arith.constant 192 : index
    %c256_218 = arith.constant 256 : index
    %220 = vector.load %arg12[%c192_217, %c256_218] : memref<288x512xbf16, #tpu.memory_space<vmem>>, vector<16x256xbf16>
    tpu.vector_store %arg12[%c192_217, %c256_218], %219 {strides = array<i32>} : memref<288x512xbf16, #tpu.memory_space<vmem>>, vector<16x256xbf16>,
    %c0_219 = arith.constant 0 : index
    %c17_220 = arith.constant 17 : index
    %221 = vector.load %arg8[%c0_219, %c17_220] : memref<16x290xbf16, #tpu.memory_space<vmem>>, vector<16x256xbf16>
    %c208_221 = arith.constant 208 : index
    %c256_222 = arith.constant 256 : index
    %222 = vector.load %arg12[%c208_221, %c256_222] : memref<288x512xbf16, #tpu.memory_space<vmem>>, vector<16x256xbf16>
    tpu.vector_store %arg12[%c208_221, %c256_222], %221 {strides = array<i32>} : memref<288x512xbf16, #tpu.memory_space<vmem>>, vector<16x256xbf16>,
    %c0_223 = arith.constant 0 : index
    %c18_224 = arith.constant 18 : index
    %223 = vector.load %arg8[%c0_223, %c18_224] : memref<16x290xbf16, #tpu.memory_space<vmem>>, vector<16x256xbf16>
    %224 = arith.mulf %223, %48 : vector<16x256xbf16>
    %c224_225 = arith.constant 224 : index
    %c256_226 = arith.constant 256 : index
    %225 = vector.load %arg12[%c224_225, %c256_226] : memref<288x512xbf16, #tpu.memory_space<vmem>>, vector<16x256xbf16>
    tpu.vector_store %arg12[%c224_225, %c256_226], %224 {strides = array<i32>} : memref<288x512xbf16, #tpu.memory_space<vmem>>, vector<16x256xbf16>,
    %c0_227 = arith.constant 0 : index
    %c32_228 = arith.constant 32 : index
    %226 = vector.load %arg8[%c0_227, %c32_228] : memref<16x290xbf16, #tpu.memory_space<vmem>>, vector<16x256xbf16>
    %227 = arith.mulf %226, %43 : vector<16x256xbf16>
    %c240_229 = arith.constant 240 : index
    %c256_230 = arith.constant 256 : index
    %228 = vector.load %arg12[%c240_229, %c256_230] : memref<288x512xbf16, #tpu.memory_space<vmem>>, vector<16x256xbf16>
    tpu.vector_store %arg12[%c240_229, %c256_230], %227 {strides = array<i32>} : memref<288x512xbf16, #tpu.memory_space<vmem>>, vector<16x256xbf16>,
    %c0_231 = arith.constant 0 : index
    %c33_232 = arith.constant 33 : index
    %229 = vector.load %arg8[%c0_231, %c33_232] : memref<16x290xbf16, #tpu.memory_space<vmem>>, vector<16x256xbf16>
    %c256_233 = arith.constant 256 : index
    %c256_234 = arith.constant 256 : index
    %230 = vector.load %arg12[%c256_233, %c256_234] : memref<288x512xbf16, #tpu.memory_space<vmem>>, vector<16x256xbf16>
    tpu.vector_store %arg12[%c256_233, %c256_234], %229 {strides = array<i32>} : memref<288x512xbf16, #tpu.memory_space<vmem>>, vector<16x256xbf16>,
    %c0_235 = arith.constant 0 : index
    %c34_236 = arith.constant 34 : index
    %231 = vector.load %arg8[%c0_235, %c34_236] : memref<16x290xbf16, #tpu.memory_space<vmem>>, vector<16x256xbf16>
    %232 = arith.mulf %231, %48 : vector<16x256xbf16>
    %c272_237 = arith.constant 272 : index
    %c256_238 = arith.constant 256 : index
    %233 = vector.load %arg12[%c272_237, %c256_238] : memref<288x512xbf16, #tpu.memory_space<vmem>>, vector<16x256xbf16>
    tpu.vector_store %arg12[%c272_237, %c256_238], %232 {strides = array<i32>} : memref<288x512xbf16, #tpu.memory_space<vmem>>, vector<16x256xbf16>,
    %c208_239 = arith.constant 208 : index
    %c256_240 = arith.constant 256 : index
    %234 = vector.load %arg12[%c208_239, %c256_240] : memref<288x512xbf16, #tpu.memory_space<vmem>>, vector<8x256xbf16>
    %c224_241 = arith.constant 224 : index
    %c256_242 = arith.constant 256 : index
    %235 = vector.load %arg12[%c224_241, %c256_242] : memref<288x512xbf16, #tpu.memory_space<vmem>>, vector<8x256xbf16>
    %c256_243 = arith.constant 256 : index
    %c256_244 = arith.constant 256 : index
    %236 = vector.load %arg12[%c256_243, %c256_244] : memref<288x512xbf16, #tpu.memory_space<vmem>>, vector<8x256xbf16>
    %c272_245 = arith.constant 272 : index
    %c256_246 = arith.constant 256 : index
    %237 = vector.load %arg12[%c272_245, %c256_246] : memref<288x512xbf16, #tpu.memory_space<vmem>>, vector<8x256xbf16>
    %238 = arith.maximumf %234, %235 : vector<8x256xbf16>
    %239 = arith.maximumf %236, %237 : vector<8x256xbf16>
    %240 = arith.maximumf %238, %239 : vector<8x256xbf16>
    %c0_247 = arith.constant 0 : index
    %c0_248 = arith.constant 0 : index
    %241 = vector.load %arg4[%c0_247, %c0_248] : memref<256x64xbf16, #tpu.memory_space<vmem>>, vector<256x64xbf16>
    %cst_249 = arith.constant dense<0.000000e+00> : vector<8x64xf32>
    %242 = tpu.matmul %240, %241, %cst_249 {dimension_numbers = #tpu.dot_dimension_numbers<[1], [0], [0], [1], [0, 0, 1, 1], [], []>} : vector<8x256xbf16>, vector<256x64xbf16>, vector<8x64xf32> -> vector<8x64xf32>
    %243 = arith.truncf %242 : vector<8x64xf32> to vector<8x64xbf16>
    %c0_250 = arith.constant 0 : index
    %c9_251 = arith.constant 9 : index
    %244 = vector.load %arg10[%c0_250, %c9_251] : memref<16x82xbf16, #tpu.memory_space<vmem>>, vector<8x64xbf16>
    tpu.vector_store %arg10[%c0_250, %c9_251], %243 {strides = array<i32>} : memref<16x82xbf16, #tpu.memory_space<vmem>>, vector<8x64xbf16>,
    %c0_252 = arith.constant 0 : index
    %c0_253 = arith.constant 0 : index
    %245 = vector.load %arg10[%c0_252, %c0_253] : memref<16x82xbf16, #tpu.memory_space<vmem>>, vector<16x64xbf16>
    %246 = arith.mulf %245, %70 : vector<16x64xbf16>
    %c0_254 = arith.constant 0 : index
    %c64_255 = arith.constant 64 : index
    %247 = vector.load %arg13[%c0_254, %c64_255] : memref<144x128xbf16, #tpu.memory_space<vmem>>, vector<16x64xbf16>
    tpu.vector_store %arg13[%c0_254, %c64_255], %246 {strides = array<i32>} : memref<144x128xbf16, #tpu.memory_space<vmem>>, vector<16x64xbf16>,
    %c0_256 = arith.constant 0 : index
    %c1_257 = arith.constant 1 : index
    %248 = vector.load %arg10[%c0_256, %c1_257] : memref<16x82xbf16, #tpu.memory_space<vmem>>, vector<16x64xbf16>
    %c16_258 = arith.constant 16 : index
    %c64_259 = arith.constant 64 : index
    %249 = vector.load %arg13[%c16_258, %c64_259] : memref<144x128xbf16, #tpu.memory_space<vmem>>, vector<16x64xbf16>
    tpu.vector_store %arg13[%c16_258, %c64_259], %248 {strides = array<i32>} : memref<144x128xbf16, #tpu.memory_space<vmem>>, vector<16x64xbf16>,
    %c0_260 = arith.constant 0 : index
    %c2_261 = arith.constant 2 : index
    %250 = vector.load %arg10[%c0_260, %c2_261] : memref<16x82xbf16, #tpu.memory_space<vmem>>, vector<16x64xbf16>
    %251 = arith.mulf %250, %75 : vector<16x64xbf16>
    %c32_262 = arith.constant 32 : index
    %c64_263 = arith.constant 64 : index
    %252 = vector.load %arg13[%c32_262, %c64_263] : memref<144x128xbf16, #tpu.memory_space<vmem>>, vector<16x64xbf16>
    tpu.vector_store %arg13[%c32_262, %c64_263], %251 {strides = array<i32>} : memref<144x128xbf16, #tpu.memory_space<vmem>>, vector<16x64xbf16>,
    %c0_264 = arith.constant 0 : index
    %c8_265 = arith.constant 8 : index
    %253 = vector.load %arg10[%c0_264, %c8_265] : memref<16x82xbf16, #tpu.memory_space<vmem>>, vector<16x64xbf16>
    %254 = arith.mulf %253, %70 : vector<16x64xbf16>
    %c48_266 = arith.constant 48 : index
    %c64_267 = arith.constant 64 : index
    %255 = vector.load %arg13[%c48_266, %c64_267] : memref<144x128xbf16, #tpu.memory_space<vmem>>, vector<16x64xbf16>
    tpu.vector_store %arg13[%c48_266, %c64_267], %254 {strides = array<i32>} : memref<144x128xbf16, #tpu.memory_space<vmem>>, vector<16x64xbf16>,
    %c0_268 = arith.constant 0 : index
    %c9_269 = arith.constant 9 : index
    %256 = vector.load %arg10[%c0_268, %c9_269] : memref<16x82xbf16, #tpu.memory_space<vmem>>, vector<16x64xbf16>
    %c64_270 = arith.constant 64 : index
    %c64_271 = arith.constant 64 : index
    %257 = vector.load %arg13[%c64_270, %c64_271] : memref<144x128xbf16, #tpu.memory_space<vmem>>, vector<16x64xbf16>
    tpu.vector_store %arg13[%c64_270, %c64_271], %256 {strides = array<i32>} : memref<144x128xbf16, #tpu.memory_space<vmem>>, vector<16x64xbf16>,
    %c0_272 = arith.constant 0 : index
    %c10_273 = arith.constant 10 : index
    %258 = vector.load %arg10[%c0_272, %c10_273] : memref<16x82xbf16, #tpu.memory_space<vmem>>, vector<16x64xbf16>
    %259 = arith.mulf %258, %75 : vector<16x64xbf16>
    %c80_274 = arith.constant 80 : index
    %c64_275 = arith.constant 64 : index
    %260 = vector.load %arg13[%c80_274, %c64_275] : memref<144x128xbf16, #tpu.memory_space<vmem>>, vector<16x64xbf16>
    tpu.vector_store %arg13[%c80_274, %c64_275], %259 {strides = array<i32>} : memref<144x128xbf16, #tpu.memory_space<vmem>>, vector<16x64xbf16>,
    %c0_276 = arith.constant 0 : index
    %c16_277 = arith.constant 16 : index
    %261 = vector.load %arg10[%c0_276, %c16_277] : memref<16x82xbf16, #tpu.memory_space<vmem>>, vector<16x64xbf16>
    %262 = arith.mulf %261, %70 : vector<16x64xbf16>
    %c96_278 = arith.constant 96 : index
    %c64_279 = arith.constant 64 : index
    %263 = vector.load %arg13[%c96_278, %c64_279] : memref<144x128xbf16, #tpu.memory_space<vmem>>, vector<16x64xbf16>
    tpu.vector_store %arg13[%c96_278, %c64_279], %262 {strides = array<i32>} : memref<144x128xbf16, #tpu.memory_space<vmem>>, vector<16x64xbf16>,
    %c0_280 = arith.constant 0 : index
    %c17_281 = arith.constant 17 : index
    %264 = vector.load %arg10[%c0_280, %c17_281] : memref<16x82xbf16, #tpu.memory_space<vmem>>, vector<16x64xbf16>
    %c112_282 = arith.constant 112 : index
    %c64_283 = arith.constant 64 : index
    %265 = vector.load %arg13[%c112_282, %c64_283] : memref<144x128xbf16, #tpu.memory_space<vmem>>, vector<16x64xbf16>
    tpu.vector_store %arg13[%c112_282, %c64_283], %264 {strides = array<i32>} : memref<144x128xbf16, #tpu.memory_space<vmem>>, vector<16x64xbf16>,
    %c0_284 = arith.constant 0 : index
    %c18_285 = arith.constant 18 : index
    %266 = vector.load %arg10[%c0_284, %c18_285] : memref<16x82xbf16, #tpu.memory_space<vmem>>, vector<16x64xbf16>
    %267 = arith.mulf %266, %75 : vector<16x64xbf16>
    %c128_286 = arith.constant 128 : index
    %c64_287 = arith.constant 64 : index
    %268 = vector.load %arg13[%c128_286, %c64_287] : memref<144x128xbf16, #tpu.memory_space<vmem>>, vector<16x64xbf16>
    tpu.vector_store %arg13[%c128_286, %c64_287], %267 {strides = array<i32>} : memref<144x128xbf16, #tpu.memory_space<vmem>>, vector<16x64xbf16>,
    %c0_288 = arith.constant 0 : index
    %c0_289 = arith.constant 0 : index
    %269 = vector.load %arg13[%c0_288, %c0_289] : memref<144x128xbf16, #tpu.memory_space<vmem>>, vector<144x128xbf16>
    %cst_290 = arith.constant dense<0.000000e+00> : vector<16x128xf32>
    %270 = tpu.matmul %77, %269, %cst_290 {dimension_numbers = #tpu.dot_dimension_numbers<[1], [0], [0], [1], [0, 0, 1, 1], [], []>} : vector<16x144xbf16>, vector<144x128xbf16>, vector<16x128xf32> -> vector<16x128xf32>
    %271 = vector.broadcast %81 : vector<16x1xf32> to vector<16x128xf32>
    %272 = arith.addf %270, %271 : vector<16x128xf32>
    %cst_291 = arith.constant 0.000000e+00 : f32
    %273 = vector.broadcast %cst_291 : f32 to vector<16x128xf32>
    %274 = arith.maximumf %272, %273 : vector<16x128xf32>
    %275 = arith.truncf %274 : vector<16x128xf32> to vector<16x128xbf16>
    %276 = vector.extract_strided_slice %275 {offsets = [0, 0], sizes = [16, 64], strides = [1, 1]} : vector<16x128xbf16> to vector<16x64xbf16>
    %c0_292 = arith.constant 0 : index
    %c0_293 = arith.constant 0 : index
    %277 = vector.load %arg5[%c0_292, %c0_293] : memref<64x256xbf16, #tpu.memory_space<vmem>>, vector<64x256xbf16>
    %cst_294 = arith.constant dense<0.000000e+00> : vector<16x256xf32>
    %278 = tpu.matmul %276, %277, %cst_294 {dimension_numbers = #tpu.dot_dimension_numbers<[1], [0], [0], [1], [0, 0, 1, 1], [], []>} : vector<16x64xbf16>, vector<64x256xbf16>, vector<16x256xf32> -> vector<16x256xf32>
    %279 = arith.truncf %278 : vector<16x256xf32> to vector<16x256xbf16>
    %c0_295 = arith.constant 0 : index
    %c17_296 = arith.constant 17 : index
    %280 = vector.load %arg9[%c0_295, %c17_296] : memref<16x290xbf16, #tpu.memory_space<vmem>>, vector<16x256xbf16>
    tpu.vector_store %arg9[%c0_295, %c17_296], %279 {strides = array<i32>} : memref<16x290xbf16, #tpu.memory_space<vmem>>, vector<16x256xbf16>,
    %c0_297 = arith.constant 0 : index
    %c0_298 = arith.constant 0 : index
    %281 = vector.load %arg9[%c0_297, %c0_298] : memref<16x290xbf16, #tpu.memory_space<vmem>>, vector<16x256xbf16>
    %282 = arith.mulf %281, %43 : vector<16x256xbf16>
    %c0_299 = arith.constant 0 : index
    %c0_300 = arith.constant 0 : index
    %283 = vector.load %arg12[%c0_299, %c0_300] : memref<288x512xbf16, #tpu.memory_space<vmem>>, vector<16x256xbf16>
    tpu.vector_store %arg12[%c0_299, %c0_300], %282 {strides = array<i32>} : memref<288x512xbf16, #tpu.memory_space<vmem>>, vector<16x256xbf16>,
    %c0_301 = arith.constant 0 : index
    %c1_302 = arith.constant 1 : index
    %284 = vector.load %arg9[%c0_301, %c1_302] : memref<16x290xbf16, #tpu.memory_space<vmem>>, vector<16x256xbf16>
    %c16_303 = arith.constant 16 : index
    %c0_304 = arith.constant 0 : index
    %285 = vector.load %arg12[%c16_303, %c0_304] : memref<288x512xbf16, #tpu.memory_space<vmem>>, vector<16x256xbf16>
    tpu.vector_store %arg12[%c16_303, %c0_304], %284 {strides = array<i32>} : memref<288x512xbf16, #tpu.memory_space<vmem>>, vector<16x256xbf16>,
    %c0_305 = arith.constant 0 : index
    %c2_306 = arith.constant 2 : index
    %286 = vector.load %arg9[%c0_305, %c2_306] : memref<16x290xbf16, #tpu.memory_space<vmem>>, vector<16x256xbf16>
    %287 = arith.mulf %286, %48 : vector<16x256xbf16>
    %c32_307 = arith.constant 32 : index
    %c0_308 = arith.constant 0 : index
    %288 = vector.load %arg12[%c32_307, %c0_308] : memref<288x512xbf16, #tpu.memory_space<vmem>>, vector<16x256xbf16>
    tpu.vector_store %arg12[%c32_307, %c0_308], %287 {strides = array<i32>} : memref<288x512xbf16, #tpu.memory_space<vmem>>, vector<16x256xbf16>,
    %c0_309 = arith.constant 0 : index
    %c16_310 = arith.constant 16 : index
    %289 = vector.load %arg9[%c0_309, %c16_310] : memref<16x290xbf16, #tpu.memory_space<vmem>>, vector<16x256xbf16>
    %290 = arith.mulf %289, %43 : vector<16x256xbf16>
    %c48_311 = arith.constant 48 : index
    %c0_312 = arith.constant 0 : index
    %291 = vector.load %arg12[%c48_311, %c0_312] : memref<288x512xbf16, #tpu.memory_space<vmem>>, vector<16x256xbf16>
    tpu.vector_store %arg12[%c48_311, %c0_312], %290 {strides = array<i32>} : memref<288x512xbf16, #tpu.memory_space<vmem>>, vector<16x256xbf16>,
    %c0_313 = arith.constant 0 : index
    %c17_314 = arith.constant 17 : index
    %292 = vector.load %arg9[%c0_313, %c17_314] : memref<16x290xbf16, #tpu.memory_space<vmem>>, vector<16x256xbf16>
    %c64_315 = arith.constant 64 : index
    %c0_316 = arith.constant 0 : index
    %293 = vector.load %arg12[%c64_315, %c0_316] : memref<288x512xbf16, #tpu.memory_space<vmem>>, vector<16x256xbf16>
    tpu.vector_store %arg12[%c64_315, %c0_316], %292 {strides = array<i32>} : memref<288x512xbf16, #tpu.memory_space<vmem>>, vector<16x256xbf16>,
    %c0_317 = arith.constant 0 : index
    %c18_318 = arith.constant 18 : index
    %294 = vector.load %arg9[%c0_317, %c18_318] : memref<16x290xbf16, #tpu.memory_space<vmem>>, vector<16x256xbf16>
    %295 = arith.mulf %294, %48 : vector<16x256xbf16>
    %c80_319 = arith.constant 80 : index
    %c0_320 = arith.constant 0 : index
    %296 = vector.load %arg12[%c80_319, %c0_320] : memref<288x512xbf16, #tpu.memory_space<vmem>>, vector<16x256xbf16>
    tpu.vector_store %arg12[%c80_319, %c0_320], %295 {strides = array<i32>} : memref<288x512xbf16, #tpu.memory_space<vmem>>, vector<16x256xbf16>,
    %c0_321 = arith.constant 0 : index
    %c32_322 = arith.constant 32 : index
    %297 = vector.load %arg9[%c0_321, %c32_322] : memref<16x290xbf16, #tpu.memory_space<vmem>>, vector<16x256xbf16>
    %298 = arith.mulf %297, %43 : vector<16x256xbf16>
    %c96_323 = arith.constant 96 : index
    %c0_324 = arith.constant 0 : index
    %299 = vector.load %arg12[%c96_323, %c0_324] : memref<288x512xbf16, #tpu.memory_space<vmem>>, vector<16x256xbf16>
    tpu.vector_store %arg12[%c96_323, %c0_324], %298 {strides = array<i32>} : memref<288x512xbf16, #tpu.memory_space<vmem>>, vector<16x256xbf16>,
    %c0_325 = arith.constant 0 : index
    %c33_326 = arith.constant 33 : index
    %300 = vector.load %arg9[%c0_325, %c33_326] : memref<16x290xbf16, #tpu.memory_space<vmem>>, vector<16x256xbf16>
    %c112_327 = arith.constant 112 : index
    %c0_328 = arith.constant 0 : index
    %301 = vector.load %arg12[%c112_327, %c0_328] : memref<288x512xbf16, #tpu.memory_space<vmem>>, vector<16x256xbf16>
    tpu.vector_store %arg12[%c112_327, %c0_328], %300 {strides = array<i32>} : memref<288x512xbf16, #tpu.memory_space<vmem>>, vector<16x256xbf16>,
    %c0_329 = arith.constant 0 : index
    %c34_330 = arith.constant 34 : index
    %302 = vector.load %arg9[%c0_329, %c34_330] : memref<16x290xbf16, #tpu.memory_space<vmem>>, vector<16x256xbf16>
    %303 = arith.mulf %302, %48 : vector<16x256xbf16>
    %c128_331 = arith.constant 128 : index
    %c0_332 = arith.constant 0 : index
    %304 = vector.load %arg12[%c128_331, %c0_332] : memref<288x512xbf16, #tpu.memory_space<vmem>>, vector<16x256xbf16>
    tpu.vector_store %arg12[%c128_331, %c0_332], %303 {strides = array<i32>} : memref<288x512xbf16, #tpu.memory_space<vmem>>, vector<16x256xbf16>,
    %305 = vector.extract_strided_slice %275 {offsets = [0, 64], sizes = [16, 64], strides = [1, 1]} : vector<16x128xbf16> to vector<16x64xbf16>
    %c0_333 = arith.constant 0 : index
    %c0_334 = arith.constant 0 : index
    %306 = vector.load %arg5[%c0_333, %c0_334] : memref<64x256xbf16, #tpu.memory_space<vmem>>, vector<64x256xbf16>
    %cst_335 = arith.constant dense<0.000000e+00> : vector<16x256xf32>
    %307 = tpu.matmul %305, %306, %cst_335 {dimension_numbers = #tpu.dot_dimension_numbers<[1], [0], [0], [1], [0, 0, 1, 1], [], []>} : vector<16x64xbf16>, vector<64x256xbf16>, vector<16x256xf32> -> vector<16x256xf32>
    %308 = arith.truncf %307 : vector<16x256xf32> to vector<16x256xbf16>
    %c0_336 = arith.constant 0 : index
    %c17_337 = arith.constant 17 : index
    %309 = vector.load %arg9[%c0_336, %c17_337] : memref<16x290xbf16, #tpu.memory_space<vmem>>, vector<16x256xbf16>
    tpu.vector_store %arg9[%c0_336, %c17_337], %308 {strides = array<i32>} : memref<16x290xbf16, #tpu.memory_space<vmem>>, vector<16x256xbf16>,
    %c0_338 = arith.constant 0 : index
    %c0_339 = arith.constant 0 : index
    %310 = vector.load %arg9[%c0_338, %c0_339] : memref<16x290xbf16, #tpu.memory_space<vmem>>, vector<16x256xbf16>
    %311 = arith.mulf %310, %43 : vector<16x256xbf16>
    %c0_340 = arith.constant 0 : index
    %c256_341 = arith.constant 256 : index
    %312 = vector.load %arg12[%c0_340, %c256_341] : memref<288x512xbf16, #tpu.memory_space<vmem>>, vector<16x256xbf16>
    tpu.vector_store %arg12[%c0_340, %c256_341], %311 {strides = array<i32>} : memref<288x512xbf16, #tpu.memory_space<vmem>>, vector<16x256xbf16>,
    %c0_342 = arith.constant 0 : index
    %c1_343 = arith.constant 1 : index
    %313 = vector.load %arg9[%c0_342, %c1_343] : memref<16x290xbf16, #tpu.memory_space<vmem>>, vector<16x256xbf16>
    %c16_344 = arith.constant 16 : index
    %c256_345 = arith.constant 256 : index
    %314 = vector.load %arg12[%c16_344, %c256_345] : memref<288x512xbf16, #tpu.memory_space<vmem>>, vector<16x256xbf16>
    tpu.vector_store %arg12[%c16_344, %c256_345], %313 {strides = array<i32>} : memref<288x512xbf16, #tpu.memory_space<vmem>>, vector<16x256xbf16>,
    %c0_346 = arith.constant 0 : index
    %c2_347 = arith.constant 2 : index
    %315 = vector.load %arg9[%c0_346, %c2_347] : memref<16x290xbf16, #tpu.memory_space<vmem>>, vector<16x256xbf16>
    %316 = arith.mulf %315, %48 : vector<16x256xbf16>
    %c32_348 = arith.constant 32 : index
    %c256_349 = arith.constant 256 : index
    %317 = vector.load %arg12[%c32_348, %c256_349] : memref<288x512xbf16, #tpu.memory_space<vmem>>, vector<16x256xbf16>
    tpu.vector_store %arg12[%c32_348, %c256_349], %316 {strides = array<i32>} : memref<288x512xbf16, #tpu.memory_space<vmem>>, vector<16x256xbf16>,
    %c0_350 = arith.constant 0 : index
    %c16_351 = arith.constant 16 : index
    %318 = vector.load %arg9[%c0_350, %c16_351] : memref<16x290xbf16, #tpu.memory_space<vmem>>, vector<16x256xbf16>
    %319 = arith.mulf %318, %43 : vector<16x256xbf16>
    %c48_352 = arith.constant 48 : index
    %c256_353 = arith.constant 256 : index
    %320 = vector.load %arg12[%c48_352, %c256_353] : memref<288x512xbf16, #tpu.memory_space<vmem>>, vector<16x256xbf16>
    tpu.vector_store %arg12[%c48_352, %c256_353], %319 {strides = array<i32>} : memref<288x512xbf16, #tpu.memory_space<vmem>>, vector<16x256xbf16>,
    %c0_354 = arith.constant 0 : index
    %c17_355 = arith.constant 17 : index
    %321 = vector.load %arg9[%c0_354, %c17_355] : memref<16x290xbf16, #tpu.memory_space<vmem>>, vector<16x256xbf16>
    %c64_356 = arith.constant 64 : index
    %c256_357 = arith.constant 256 : index
    %322 = vector.load %arg12[%c64_356, %c256_357] : memref<288x512xbf16, #tpu.memory_space<vmem>>, vector<16x256xbf16>
    tpu.vector_store %arg12[%c64_356, %c256_357], %321 {strides = array<i32>} : memref<288x512xbf16, #tpu.memory_space<vmem>>, vector<16x256xbf16>,
    %c0_358 = arith.constant 0 : index
    %c18_359 = arith.constant 18 : index
    %323 = vector.load %arg9[%c0_358, %c18_359] : memref<16x290xbf16, #tpu.memory_space<vmem>>, vector<16x256xbf16>
    %324 = arith.mulf %323, %48 : vector<16x256xbf16>
    %c80_360 = arith.constant 80 : index
    %c256_361 = arith.constant 256 : index
    %325 = vector.load %arg12[%c80_360, %c256_361] : memref<288x512xbf16, #tpu.memory_space<vmem>>, vector<16x256xbf16>
    tpu.vector_store %arg12[%c80_360, %c256_361], %324 {strides = array<i32>} : memref<288x512xbf16, #tpu.memory_space<vmem>>, vector<16x256xbf16>,
    %c0_362 = arith.constant 0 : index
    %c32_363 = arith.constant 32 : index
    %326 = vector.load %arg9[%c0_362, %c32_363] : memref<16x290xbf16, #tpu.memory_space<vmem>>, vector<16x256xbf16>
    %327 = arith.mulf %326, %43 : vector<16x256xbf16>
    %c96_364 = arith.constant 96 : index
    %c256_365 = arith.constant 256 : index
    %328 = vector.load %arg12[%c96_364, %c256_365] : memref<288x512xbf16, #tpu.memory_space<vmem>>, vector<16x256xbf16>
    tpu.vector_store %arg12[%c96_364, %c256_365], %327 {strides = array<i32>} : memref<288x512xbf16, #tpu.memory_space<vmem>>, vector<16x256xbf16>,
    %c0_366 = arith.constant 0 : index
    %c33_367 = arith.constant 33 : index
    %329 = vector.load %arg9[%c0_366, %c33_367] : memref<16x290xbf16, #tpu.memory_space<vmem>>, vector<16x256xbf16>
    %c112_368 = arith.constant 112 : index
    %c256_369 = arith.constant 256 : index
    %330 = vector.load %arg12[%c112_368, %c256_369] : memref<288x512xbf16, #tpu.memory_space<vmem>>, vector<16x256xbf16>
    tpu.vector_store %arg12[%c112_368, %c256_369], %329 {strides = array<i32>} : memref<288x512xbf16, #tpu.memory_space<vmem>>, vector<16x256xbf16>,
    %c0_370 = arith.constant 0 : index
    %c34_371 = arith.constant 34 : index
    %331 = vector.load %arg9[%c0_370, %c34_371] : memref<16x290xbf16, #tpu.memory_space<vmem>>, vector<16x256xbf16>
    %332 = arith.mulf %331, %48 : vector<16x256xbf16>
    %c128_372 = arith.constant 128 : index
    %c256_373 = arith.constant 256 : index
    %333 = vector.load %arg12[%c128_372, %c256_373] : memref<288x512xbf16, #tpu.memory_space<vmem>>, vector<16x256xbf16>
    tpu.vector_store %arg12[%c128_372, %c256_373], %332 {strides = array<i32>} : memref<288x512xbf16, #tpu.memory_space<vmem>>, vector<16x256xbf16>,
    %c0_374 = arith.constant 0 : index
    %c0_375 = arith.constant 0 : index
    %334 = vector.load %arg12[%c0_374, %c0_375] : memref<288x512xbf16, #tpu.memory_space<vmem>>, vector<288x512xbf16>
    %cst_376 = arith.constant dense<0.000000e+00> : vector<8x512xf32>
    %335 = tpu.matmul %78, %334, %cst_376 {dimension_numbers = #tpu.dot_dimension_numbers<[1], [0], [0], [1], [0, 0, 1, 1], [], []>} : vector<8x288xbf16>, vector<288x512xbf16>, vector<8x512xf32> -> vector<8x512xf32>
    %336 = vector.broadcast %82 : vector<8x1xf32> to vector<8x512xf32>
    %337 = arith.addf %335, %336 : vector<8x512xf32>
    %cst_377 = arith.constant 0.000000e+00 : f32
    %338 = vector.broadcast %cst_377 : f32 to vector<8x512xf32>
    %339 = arith.maximumf %337, %338 : vector<8x512xf32>
    %340 = arith.truncf %339 : vector<8x512xf32> to vector<8x512xbf16>
    %cst_378 = arith.constant dense<0.000000e+00> : vector<3x512xf32>
    %341 = tpu.matmul %79, %340, %cst_378 {dimension_numbers = #tpu.dot_dimension_numbers<[1], [0], [0], [1], [0, 0, 1, 1], [], []>} : vector<3x8xbf16>, vector<8x512xbf16>, vector<3x512xf32> -> vector<3x512xf32>
    %342 = vector.broadcast %83 : vector<3x1xf32> to vector<3x512xf32>
    %343 = arith.addf %341, %342 : vector<3x512xf32>
    %344 = vector.extract_strided_slice %343 {offsets = [0, 0], sizes = [3, 256], strides = [1, 1]} : vector<3x512xf32> to vector<3x256xf32>
    %c0_379 = arith.constant 0 : index
    %c0_380 = arith.constant 0 : index
    %c0_381 = arith.constant 0 : index
    %345 = vector.load %arg6[%c0_379, %c0_380, %c0_381] : memref<2x3x256xf32, #tpu.memory_space<vmem>>, vector<1x3x256xf32>
    %346 = vector.shape_cast %345 : vector<1x3x256xf32> to vector<3x256xf32>
    %347 = vector.shape_cast %344 : vector<3x256xf32> to vector<1x3x256xf32>
    tpu.vector_store %arg6[%c0_379, %c0_380, %c0_381], %347 {strides = array<i32>} : memref<2x3x256xf32, #tpu.memory_space<vmem>>, vector<1x3x256xf32>,
    %348 = vector.extract_strided_slice %343 {offsets = [0, 256], sizes = [3, 256], strides = [1, 1]} : vector<3x512xf32> to vector<3x256xf32>
    %c1_382 = arith.constant 1 : index
    %c0_383 = arith.constant 0 : index
    %c0_384 = arith.constant 0 : index
    %349 = vector.load %arg6[%c1_382, %c0_383, %c0_384] : memref<2x3x256xf32, #tpu.memory_space<vmem>>, vector<1x3x256xf32>
    %350 = vector.shape_cast %349 : vector<1x3x256xf32> to vector<3x256xf32>
    %351 = vector.shape_cast %348 : vector<3x256xf32> to vector<1x3x256xf32>
    tpu.vector_store %arg6[%c1_382, %c0_383, %c0_384], %351 {strides = array<i32>} : memref<2x3x256xf32, #tpu.memory_space<vmem>>, vector<1x3x256xf32>,
    return
  }
  func.func @transform_0(%arg0: i32) -> (i32, i32, i32) {
    %c0_i32 = arith.constant 0 : i32
    %c0_i32_0 = arith.constant 0 : i32
    %c0_i32_1 = arith.constant 0 : i32
    return %arg0, %c0_i32, %c0_i32_0 : i32, i32, i32
  }
  func.func @transform_1(%arg0: i32) -> (i32, i32) {
    %c0_i32 = arith.constant 0 : i32
    %c0_i32_0 = arith.constant 0 : i32
    %c0_i32_1 = arith.constant 0 : i32
    return %c0_i32, %c0_i32_0 : i32, i32
  }
  func.func @transform_2(%arg0: i32) -> (i32, i32) {
    %c0_i32 = arith.constant 0 : i32
    %c0_i32_0 = arith.constant 0 : i32
    %c0_i32_1 = arith.constant 0 : i32
    return %c0_i32, %c0_i32_0 : i32, i32
  }
  func.func @transform_3(%arg0: i32) -> (i32, i32) {
    %c0_i32 = arith.constant 0 : i32
    %c0_i32_0 = arith.constant 0 : i32
    %c0_i32_1 = arith.constant 0 : i32
    return %c0_i32, %c0_i32_0 : i32, i32
  }
  func.func @transform_4(%arg0: i32) -> (i32, i32) {
    %c0_i32 = arith.constant 0 : i32
    %c0_i32_0 = arith.constant 0 : i32
    %c0_i32_1 = arith.constant 0 : i32
    return %c0_i32, %c0_i32_0 : i32, i32
  }
  func.func @transform_5(%arg0: i32) -> (i32, i32, i32) {
    %c0_i32 = arith.constant 0 : i32
    %c0_i32_0 = arith.constant 0 : i32
    %c0_i32_1 = arith.constant 0 : i32
    return %arg0, %c0_i32, %c0_i32_0 : i32, i32, i32
  }
}

</mosaic_0001>

<bundles_post_ra>
// kernel: seg_encoder_decoder_forward.1
= control target key start
LH: loop header
LB: loop body
LE: loop exit
PB: predicated region body
PF: predicated region fallthrough
CT: control target
= control target key end

     0   :  { %s5534_s18 = smov 0   ;;  %s7074_s0 = inlined_call_operand.vmem [shape: f32[4,4,256], index: 0, kind: input, shape index: {}]   ;;  %s7075_s1 = inlined_call_operand.vmem [shape: bf16[64,288], index: 1, kind: input, shape index: {}]   ;;  %s7076_s2 = inlined_call_operand.vmem [shape: f32[64,1], index: 2, kind: input, shape index: {}]   ;;  %s7077_s3 = inlined_call_operand.vmem [shape: bf16[256,64], index: 3, kind: input, shape index: {}]   ;;  %s7078_s4 = inlined_call_operand.vmem [shape: bf16[64,256], index: 4, kind: input, shape index: {}]   ;;  %s7079_s5 = inlined_call_operand.vmem [shape: f32[4,3,256], index: 5, kind: output, shape index: {}]  }
   0x1 LB: > { %s4473_s19 = sadd.s32 4294967295, %s5471_s18   ;;  %p4477_p0 = scmp.ge.s32.totalorder %s5471_s18, 1  ;;  %s5471_s18 = sphi %s5534_s18, %s15_s18  }
   0x2   : > { %p189_p1 = scmp.lt.s32.totalorder %s5471_s18, 3 }
   0x4   : > { %p190_p2 = pnand %p4477_p0, %p189_p1 }
   0x6   : > { %193 = sbr.rel (%p190_p2) target bundleno = 2268 (0x8dc), region = 40 }
   0xb   : > { %v269_v0 = vlaneseq  ;;  %vm234_vm0 = vcmask 134144   ;;  %v7080_v1 = vmov 0   ;;  %vm246_vm1 = vcmask 1043592   ;;  %s4478_s20 = sshll.u32 %s4473_s19, 1  ;;  %s5475_s25 = smov 2  }
   0xc   : > { %236 = vst.msk [vmem:[#allocation2 + $0xc] sm:$0xf] %vm234_vm0, %v7080_v1  ;;  %vm247_vm2 = vcmask 1047556   ;;  %5460 = vset.pattern.permute.xlu2 %v7080_v1  ;;  %5461 = vset.pattern.permute.xlu0 %v7080_v1  ;;  %p220_p3 = scmp.lt.s32.totalorder %s4478_s20, 3  ;;  %vm237_vm6 = vcmask 273544   ;;  %v7082_v7 = vmov 0.0  }
   0xd   : > { %v5546_v2 = vand.u32 127, %v269_v0  ;;  %vm5548_vm3 = vmor %vm247_vm2, %vm246_vm1  ;;  %235 = vst.msk [vmem:[#allocation2] sm:$0xf] %vm234_vm0, %v7080_v1  ;;  %s5476_s26 = smov 32   ;;  %s5477_s27 = smov 18   ;;  %vm566_vm9 = vcmask 146432  }
   0xe   : > { %249 = vst.msk [vmem:[#allocation2 + $0xc] sm:$0xff] %vm5548_vm3, %v7080_v1  ;;  %s7108_s20 = smov (!%p220_p3, %s4478_s20), 3  ;;  %s5478_s28 = smov 34   ;;  %vm240_vm10 = vcmask 1043594   ;;  %vm241_vm11 = vcmask 1047558   ;;  %vm244_vm12 = vcmask 134146  }
   0xf   : > { %v271_v4 = vadd.s32 128, %v5546_v2  ;;  %v276_v5 = vand.u32 15, %v5546_v2  ;;  %251 = vst.msk [vmem:[#allocation3] sm:$0xf] %vm234_vm0, %v7080_v1  ;;  %s5179_s21 = sshll.u32 %s7108_s20, 3  ;;  %s5479_s29 = smov 95   ;;  %vm242_vm13 = vmor %vm241_vm11, %vm240_vm10 }
  0x10   : > { %252 = vst.msk [vmem:[#allocation3 + $0xc] sm:$0xf] %vm234_vm0, %v7080_v1  ;;  %s224_s24 = scalar_lea.vmem %s7074_s0, %s5179_s21  ;;  %s5480_s30 = smov 16   ;;  %vm427_vm14 = vcmask 15360   ;;  %vm7088_vm15 = vcmask 261120   ;;  %vm483_vm1 = vcmask 130048  }
  0x11   : > { %v283_v6 = vand.u32 15, %v271_v4  ;;  %vm296_vm4 = vcmp.ge.s32.totalorder %v276_v5, 1  ;;  %vm303_vm5 = vcmp.le.s32.totalorder %v276_v5, 14  ;;  %257 = vst.msk [vmem:[#allocation4] sm:$0xf] %vm234_vm0, %v7080_v1  ;;  %v341_v12 = vld [vmem:[%s224_s24] sm:$0xff] }
  0x12   : > { %v5568_v8 = vsel %vm296_vm4, 1.0, %v7082_v7  ;;  %v4486_v9 = vsel %vm303_vm5, 1.0, %v7082_v7  ;;  %258 = vst.msk [vmem:[#allocation4 + $0xc] sm:$0xf] %vm234_vm0, %v7080_v1  ;;  %v4490_v15 = vld [vmem:[%s224_s24 + $0x8] sm:$0xff]  ;;  %s5481_s6 = smov 17  }
  0x13   : > { %vm304_vm7 = vcmp.le.s32.totalorder %v283_v6, 14  ;;  %vm297_vm8 = vcmp.ge.s32.totalorder %v283_v6, 1  ;;  %255 = vst.msk [vmem:[#allocation3 + $0xc] sm:$0xff] %vm5548_vm3, %v7080_v1  ;;  %s5482_s7 = smov 111   ;;  %s5483_s8 = smov 127   ;;  %vm703_vm2 = vcmask 277504  }
  0x14   : > { %v4487_v10 = vsel %vm304_vm7, 1.0, %v7082_v7  ;;  %v5584_v11 = vsel %vm297_vm8, 1.0, %v7082_v7  ;;  %239 = vst.msk [vmem:[#allocation2 + $0x14] sm:$0xf] %vm237_vm6, %v7080_v1  ;;  %s5484_s9 = smov 110   ;;  %s5485_s10 = smov 96  }
  0x15   : > { %v5455_v13 = vpack.i.bf16 %v4487_v10, %v4486_v9  ;;  %v5435_v14 = vpack.i.bf16 %v5584_v11, %v5568_v8  ;;  %343 = vst [vmem:[#allocation1] ss:$2 sm:$0xff] %v341_v12  ;;  %v5602_v16 = vld [vmem:[#allocation2 + $0xc] sm:$0xff]  ;;  %vm357_vm4 = vcmask 1041544   ;;  %vm358_vm5 = vcmask 1045508   ;;  %s5486_s11 = smov 126  }
  0x16   : > { %250 = vst.msk [vmem:[#allocation2 + $0x14] sm:$0xf] %vm234_vm0, %v7080_v1  ;;  %v5659_v60 = vunpack.c.l.bf16 %v5602_v16  ;;  %v5662_v63 = vunpack.c.h.bf16 %v5602_v16  ;;  %s5487_s12 = smov 112   ;;  %vm361_vm7 = vcmask 132096   ;;  %vm399_vm8 = vcmask 1043456   ;;  %s5488_s13 = smov 94   ;;  %vm5716_vm10 = vmor %vm358_vm5, %vm357_vm4 }
  0x17   : > { %5456 = vrot.lane.b32.xlu0 %v5455_v13, %s5475_s25  ;;  %5436 = vrot.lane.b32.xlu1 %v5435_v14, %s5476_s26  ;;  %238 = vst.msk [vmem:[#allocation2 + $0x8] sm:$0xf] %vm237_vm6, %v7080_v1  ;;  %vm544_vm11 = vcmask 908288   ;;  %vm515_vm4 = vcmask 916480   ;;  %vm459_vm5 = vcmask 1031168   ;;  %s5489_s26 = smov 10  }
  0x18   : > { %5446 = vrot.lane.b32.xlu2 %v5455_v13, %s5477_s27  ;;  %253 = vst.msk [vmem:[#allocation3 + $0x8] sm:$0xf] %vm237_vm6, %v7080_v1  ;;  %s5491_s14 = smov 9   ;;  %s5495_s15 = smov 118  }
  0x19   : > { %254 = vst.msk [vmem:[#allocation3 + $0x14] sm:$0xf] %vm237_vm6, %v7080_v1  ;;  %s5496_s16 = smov 120   ;;  %s5497_s17 = smov 48  }
  0x1a   : > { %259 = vst.msk [vmem:[#allocation4 + $0x8] sm:$0xf] %vm237_vm6, %v7080_v1  ;;  %v1632_v35 = vld [vmem:[#allocation3 + $0xc] sm:$0xff]  ;;  %s5498_s19 = smov 54   ;;  %s5499_s22 = smov 56  }
  0x1b   : > { %260 = vst.msk [vmem:[#allocation4 + $0x14] sm:$0xf] %vm237_vm6, %v7080_v1  ;;  %v5638_v37 = vunpack.c.l.bf16 %v1632_v35  ;;  %v5640_v38 = vunpack.c.h.bf16 %v1632_v35  ;;  %vm353_vm6 = vcmask 138240   ;;  %s5500_s23 = smov 63   ;;  %s5501_s24 = smov 62  }
  0x1c   : > { %v344_v17 = vld.sshfl [vmem:[#allocation1] sm:$0xff pattern:$0x75316420]  ;;  %v345_v18 = vld.sshfl [vmem:[#allocation1 + $0x8] sm:$0xff pattern:$0x75316420] }
  0x1d   : > { %746 = vst [vmem:[#allocation1] ss:$2 sm:$0xff] %v4490_v15  ;;  %v348_v19 = vpack.c.bf16 %v345_v18, %v344_v17  ;;  %v663_v20 = vld [vmem:[#allocation2 + $0x14] sm:$0xf] }
  0x1e   : > { %256 = vst.msk [vmem:[#allocation3 + $0x14] sm:$0xf] %vm234_vm0, %v7080_v1  ;;  %v1010_v21 = vld [vmem:[#allocation2 + $0x14] sm:$0xf] }
  0x1f   : > { %5441 = vrot.lane.b32.xlu1 %v5455_v13, %s5478_s28  ;;  %672 = vrot.lane.b32.xlu0 %v5602_v16, %s5479_s29  ;;  %v382_v25 = vld [vmem:[#allocation2 + $0x14] sm:$0xf]  ;;  %245 = vst.msk [vmem:[#allocation2 + $0x8] sm:$0xc] %vm244_vm12, %v7080_v1  ;;  %vm401_vm12 = vcmask 1039360   ;;  %s5490_s28 = smov 8  }
  0x20   : > { %5451 = vrot.lane.b32.xlu2 %v5435_v14, %s5480_s30  ;;  %v526_v26 = vld [vmem:[#allocation2 + $0x14] sm:$0xf]  ;;  %243 = vst.msk [vmem:[#allocation2] sm:$0xcc] %vm242_vm13, %v7080_v1  ;;  %vm735_vm13 = vcmask 769024  }
  0x21   : > { %v894_v27 = vld [vmem:[#allocation2 + $0x14] sm:$0xf] }
  0x22   : > { %v555_v28 = vld [vmem:[#allocation2 + $0x14] sm:$0xf] }
  0x23   : > { %v561_v29 = vunpack.c.l.bf16 %v555_v28  ;;  %v966_v42 = vld [vmem:[#allocation2 + $0x14] sm:$0xf] }
  0x24   : > { %v747_v22 = vld.sshfl [vmem:[#allocation1] sm:$0xff pattern:$0x75316420]  ;;  %v748_v23 = vld.sshfl [vmem:[#allocation1 + $0x8] sm:$0xff pattern:$0x75316420]  ;;  %v972_v44 = vunpack.c.l.bf16 %v966_v42 }
  0x25   : > { %v751_v24 = vpack.c.bf16 %v748_v23, %v747_v22  ;;  %v609_v43 = vld [vmem:[#allocation2 + $0x14] sm:$0xf] }
  0x26   : > { %v615_v45 = vunpack.c.l.bf16 %v609_v43  ;;  %v470_v47 = vld [vmem:[#allocation2 + $0x14] sm:$0xf] }
  0x27   : > { %350 = vrot.lane.b32.xlu0 %v348_v19, %s5481_s6  ;;  %674 = vrot.lane.b32.xlu1 %v663_v20, %s5479_s29  ;;  %v412_v50 = vld [vmem:[#allocation2 + $0x14] sm:$0xf]  ;;  %v476_v54 = vunpack.c.l.bf16 %v470_v47 }
  0x28   : > { %1021 = vrot.lane.b32.xlu2 %v1010_v21, %s5479_s29  ;;  %v418_v58 = vunpack.c.l.bf16 %v412_v50  ;;  %v692_v59 = vld [vmem:[#allocation2 + $0x14] sm:$0xf] }
  0x29   : > { %v698_v6 = vunpack.c.l.bf16 %v692_v59  ;;  %v922_v18 = vld [vmem:[#allocation2 + $0x14] sm:$0xf] }
  0x2f   : > { %753 = vrot.lane.b32.xlu0 %v751_v24, %s5481_s6  ;;  %1019 = vrot.lane.b32.xlu1 %v5602_v16, %s5479_s29  ;;  %v928_v24 = vunpack.c.l.bf16 %v922_v18 }
  0x30   : > { %535 = vrot.lane.b32.xlu2 %v5602_v16, %s5482_s7 }
  0x37   : > { %903 = vrot.lane.b32.xlu1 %v5602_v16, %s5482_s7  ;;  %537 = vrot.lane.b32.xlu0 %v526_v26, %s5482_s7 }
  0x38   : > { %905 = vrot.lane.b32.xlu2 %v894_v27, %s5482_s7 }
  0x3f   : > { %393 = vrot.lane.b32.xlu1 %v382_v25, %s5483_s8  ;;  %391 = vrot.lane.b32.xlu0 %v5602_v16, %s5483_s8 }
  0x72   : > { %v5447_v30 = vpop.permute.xlu2 %5446 }
  0x73   : > { %v5626_v31 = vunpack.i.h.bf16 %v5447_v30  ;;  %v5629_v33 = vunpack.i.l.bf16 %v5447_v30 }
  0x75   : > { %v576_v32 = vmul.f32 %v5626_v31, %v561_v29  ;;  %v5635_v36 = vsel %vm566_vm9, %v5629_v33, %v5626_v31  ;;  %v2268_v39 = vmul.f32 %v5629_v33, %v5638_v37  ;;  %vm681_vm9 = vcmask 777216  }
  0x76   : > { %v2269_v40 = vmul.f32 %v5640_v38, %v5635_v36 }
  0x77   : > { %v580_v34 = vpack.c.bf16 %v576_v32, %v576_v32 }
  0x78   : > { %v5646_v41 = vpack.c.bf16 %v2269_v40, %v2268_v39 }
  0x79   : > { %591 = vrot.lane.b32.xlu1 %v580_v34, %s5484_s9 }
  0x7a   : > { %v5452_v46 = vpop.permute.xlu2 %5451 }
  0x7b   : > { %v5652_v53 = vunpack.i.h.bf16 %v5452_v46  ;;  %v5678_v15 = vunpack.i.l.bf16 %v5452_v46 }
  0x7d   : > { %v493_v4 = vmul.f32 %v5652_v53, %v476_v54  ;;  %v5695_v27 = vsel %vm483_vm1, %v5678_v15, %v5652_v53  ;;  %v860_v29 = vmul.f32 %v5678_v15, %v5659_v60  ;;  %v1038_v54 = vld [vmem:[#allocation2 + $0x14] sm:$0xf] }
  0x7e   : > { %v861_v30 = vmul.f32 %v5662_v63, %v5695_v27 }
  0x7f   : > { %v497_v22 = vpack.c.bf16 %v493_v4, %v493_v4 }
  0x80   : > { %v5712_v42 = vpack.c.bf16 %v861_v30, %v860_v29 }
  0x89   : > { %v5457_v48 = vpop.permute.xlu0 %5456  ;;  %v5437_v49 = vpop.permute.xlu1 %5436 }
  0x8a   : > { %v5648_v51 = vunpack.i.l.bf16 %v5457_v48  ;;  %v5650_v52 = vunpack.i.h.bf16 %v5437_v49  ;;  %v5654_v55 = vunpack.i.h.bf16 %v5457_v48  ;;  %v5676_v14 = vunpack.i.l.bf16 %v5437_v49 }
  0x8b   : > { %v934_v48 = vmul.f32 %v5626_v31, %v928_v24  ;;  %v933_v24 = vmul.f32 %v5662_v63, %v5635_v36 }
  0x8c   : > { %v978_v56 = vmul.f32 %v5650_v52, %v972_v44  ;;  %v630_v57 = vmul.f32 %v5650_v52, %v615_v45  ;;  %v5666_v0 = vsel %vm427_vm14, %v5648_v51, %v5654_v55  ;;  %v437_v5 = vmul.f32 %v5654_v55, %v418_v58 }
  0x8d   : > { %v816_v9 = vmul.f32 %v5648_v51, %v5659_v60  ;;  %v817_v10 = vmul.f32 %v5662_v63, %v5666_v0  ;;  %v5690_v26 = vsel %vm7088_vm15, %v5676_v14, %v5650_v52  ;;  %v628_v35 = vmul.f32 %v5676_v14, %v5659_v60 }
  0x8e   : > { %v982_v61 = vpack.c.bf16 %v978_v56, %v978_v56  ;;  %v634_v62 = vpack.c.bf16 %v630_v57, %v630_v57  ;;  %v441_v21 = vpack.c.bf16 %v437_v5, %v437_v5  ;;  %v629_v39 = vmul.f32 %v5690_v26, %v5662_v63 }
  0x8f   : > { %v5682_v19 = vpack.c.bf16 %v817_v10, %v816_v9  ;;  %v2196_v57 = vmul.f32 %v5678_v15, %v5638_v37  ;;  %v2197_v58 = vmul.f32 %v5640_v38, %v5695_v27  ;;  %v2153_v9 = vmul.f32 %v5640_v38, %v5666_v0 }
  0x90   : > { %993 = vrot.lane.b32.xlu1 %v982_v61, %s5485_s10  ;;  %645 = vrot.lane.b32.xlu2 %v634_v62, %s5485_s10  ;;  %v633_v59 = vpack.c.bf16 %v629_v39, %v628_v35  ;;  %v938_v10 = vpack.c.bf16 %v934_v48, %v934_v48  ;;  %vm652_vm14 = vcmask 785408   ;;  %vm267_vm15 = vcmask 592968  }
  0x91   : > { %v5442_v12 = vpop.permute.xlu1 %5441  ;;  %v673_v13 = vpop.permute.xlu0 %672  ;;  %v5739_v5 = vpack.c.bf16 %v2197_v58, %v2196_v57 }
  0x92   : > { %v5680_v17 = vunpack.i.h.bf16 %v5442_v12  ;;  %v5684_v20 = vunpack.i.l.bf16 %v5442_v12  ;;  %v678_v32 = vrot.slane %v673_v13, 4  ;;  %v1044_v12 = vunpack.c.l.bf16 %v1038_v54  ;;  %v1022_v54 = vpop.permute.xlu2 %1021 }
  0x94   : > { %7091 = vst [vmem:[#allocation9_spill] sm:$0xff] %v5684_v20  ;;  %v713_v23 = vmul.f32 %v5680_v17, %v698_v6  ;;  %v5699_v28 = vsel %vm703_vm2, %v5684_v20, %v5680_v17  ;;  %v711_v45 = vmul.f32 %v5684_v20, %v5659_v60  ;;  %v2384_v49 = vmul.f32 %v5684_v20, %v5638_v37 }
  0x95   : > { %7092 = vst [vmem:[#allocation10_spill] sm:$0xff] %v5699_v28  ;;  %v712_v46 = vmul.f32 %v5699_v28, %v5662_v63  ;;  %v2385_v62 = vmul.f32 %v5640_v38, %v5699_v28  ;;  %v2152_v6 = vmul.f32 %v5648_v51, %v5638_v37  ;;  %v364_v63 = vld [vmem:[#allocation2 + $0xc] sm:$0xff]  ;;  %vm598_vm2 = vcmask 900096  }
  0x96   : > { %v717_v25 = vpack.c.bf16 %v713_v23, %v713_v23  ;;  %v932_v23 = vmul.f32 %v5629_v33, %v5659_v60  ;;  %v367_v43 = vunpack.c.l.bf16 %v364_v63 }
  0x97   : > { %v716_v4 = vpack.c.bf16 %v712_v46, %v711_v45  ;;  %v5745_v18 = vpack.c.bf16 %v2385_v62, %v2384_v49 }
  0x98   : > { %452 = vrot.lane.b32.xlu1 %v441_v21, %s5486_s11  ;;  %508 = vrot.lane.b32.xlu2 %v497_v22, %s5487_s12  ;;  %v373_v58 = vmul.f32 %v5568_v8, %v367_v43 }
  0x99   : > { %728 = vrot.lane.b32.xlu0 %v717_v25, %s5488_s13  ;;  %v351_v34 = vpop.permute.xlu0 %350  ;;  %v675_v40 = vpop.permute.xlu1 %674  ;;  %v1050_v25 = vmul.f32 %v5680_v17, %v1044_v12  ;;  %v1026_v12 = vrot.slane %v1022_v54, 4 }
  0x9a   : > { %v352_v44 = vrot.slane %v351_v34, 4  ;;  %v679_v47 = vrot.slane %v675_v40, 4 }
  0x9b   : > { %v1054_v60 = vpack.c.bf16 %v1050_v25, %v1050_v25 }
  0x9c   : > { %v354_v50 = vsel %vm353_vm6, %v352_v44, %v351_v34  ;;  %362 = vst.msk [vmem:[#allocation2 + $0x8] sm:$0x3] %vm361_vm7, %v352_v44  ;;  %v683_v56 = vsel %vm399_vm8, %v678_v32, %v679_v47  ;;  %v937_v47 = vpack.c.bf16 %v933_v24, %v932_v23 }
  0x9d   : > { %360 = vst.msk [vmem:[#allocation2] sm:$0x33] %vm5716_vm10, %v354_v50  ;;  %v684_v61 = vsel %vm681_vm9, %v673_v13, %v683_v56  ;;  %v5749_v13 = vpack.c.bf16 %v2153_v9, %v2152_v6  ;;  %v368_v50 = vunpack.c.h.bf16 %v364_v63  ;;  %v536_v6 = vpop.permute.xlu2 %535 }
  0x9e   : > { %688 = vst [vmem:[#allocation6 + $0xf0] sm:$0xff] %v684_v61 }
  0x9f   : > { %v374_v61 = vmul.f32 %v5584_v11, %v368_v50 }
  0xa0   : > { %643 = vrot.lane.b32.xlu1 %v633_v59, %s5485_s10  ;;  %726 = vrot.lane.b32.xlu2 %v716_v4, %s5488_s13 }
  0xa1   : > { %949 = vrot.lane.b32.xlu0 %v938_v10, %s5484_s9  ;;  %v754_v21 = vpop.permute.xlu0 %753 }
  0xa2   : > { %v755_v22 = vrot.slane %v754_v21, 4 }
  0xa3   : > { %v524_v29 = vld [vmem:[#allocation2 + $0x8] sm:$0xf] }
  0xa4   : > { %v661_v30 = vld [vmem:[#allocation2 + $0x8] sm:$0xf]  ;;  %v363_v34 = vld [vmem:[#allocation2] sm:$0xff]  ;;  %v756_v35 = vsel %vm353_vm6, %v755_v22, %v754_v21  ;;  %v1020_v21 = vpop.permute.xlu1 %1019 }
  0xa5   : > { %v380_v32 = vld [vmem:[#allocation2 + $0x8] sm:$0xf]  ;;  %759 = vst.msk [vmem:[#allocation2] sm:$0x33] %vm5716_vm10, %v756_v35  ;;  %v5770_v48 = vunpack.c.l.bf16 %v363_v34  ;;  %v5772_v49 = vunpack.c.h.bf16 %v363_v34 }
  0xa6   : > { %v553_v39 = vld [vmem:[#allocation2 + $0x8] sm:$0xf] }
  0xa7   : > { %v690_v40 = vld [vmem:[#allocation2 + $0x8] sm:$0xf]  ;;  %v371_v56 = vmul.f32 %v5568_v8, %v5770_v48  ;;  %v372_v57 = vmul.f32 %v5584_v11, %v5772_v49  ;;  %v558_v9 = vunpack.c.l.bf16 %v553_v39  ;;  %v906_v39 = vpop.permute.xlu2 %905  ;;  %v572_v43 = vmul.f32 %v5635_v36, %v5772_v49 }
  0xa8   : > { %v410_v44 = vld [vmem:[#allocation2 + $0x8] sm:$0xf]  ;;  %947 = vrot.lane.b32.xlu2 %v937_v47, %s5484_s9  ;;  %506 = vrot.lane.b32.xlu1 %v5712_v42, %s5487_s12  ;;  %v695_v10 = vunpack.c.l.bf16 %v690_v40  ;;  %v910_v40 = vrot.slane %v906_v39, 4 }
  0xa9   : > { %v607_v45 = vld [vmem:[#allocation2 + $0x8] sm:$0xf]  ;;  %1065 = vrot.lane.b32.xlu0 %v1054_v60, %s5488_s13  ;;  %v375_v62 = vpack.c.bf16 %v372_v57, %v371_v56  ;;  %v415_v35 = vunpack.c.l.bf16 %v410_v44 }
  0xaa   : > { %v5758_v46 = vld [vmem:[#allocation2 + $0x8] sm:$0xf]  ;;  %v710_v23 = vmul.f32 %v5680_v17, %v695_v10 }
  0xab   : > { %760 = vst.msk [vmem:[#allocation2 + $0x8] sm:$0x3] %vm361_vm7, %v755_v22  ;;  %v573_v22 = vmul.f32 %v5626_v31, %v558_v9  ;;  %v434_v63 = vmul.f32 %v5654_v55, %v415_v35 }
  0xac   : > { %377 = vst [vmem:[#allocation6] sm:$0xff] %v375_v62  ;;  %v904_v60 = vpop.permute.xlu1 %903  ;;  %v5799_v44 = vld [vmem:[#allocation2] sm:$0xff] }
  0xad   : > { %v5808_v57 = vunpack.c.h.bf16 %v5799_v44 }
  0xaf   : > { %v768_v10 = vmul.f32 %v5584_v11, %v5808_v57 }
  0xb0   : > { %1063 = vrot.lane.b32.xlu2 %v716_v4, %s5488_s13  ;;  %533 = vrot.lane.b32.xlu1 %v524_v29, %s5482_s7  ;;  %v376_v4 = vpack.c.bf16 %v374_v61, %v373_v58  ;;  %v578_v29 = vpack.c.bf16 %v573_v22, %v573_v22  ;;  %v439_v58 = vpack.c.bf16 %v434_v63, %v434_v63 }
  0xb1   : > { %589 = vrot.lane.b32.xlu0 %v937_v47, %s5484_s9  ;;  %v571_v47 = vmul.f32 %v5629_v33, %v5770_v48  ;;  %v626_v22 = vmul.f32 %v5690_v26, %v5772_v49 }
  0xb2   : > { %378 = vst [vmem:[#allocation6 + $0x10] sm:$0xff] %v376_v4 }
  0xb3   : > { %774 = vst [vmem:[#allocation6 + $0x18] sm:$0xff] %v376_v4  ;;  %v577_v61 = vpack.c.bf16 %v572_v43, %v571_v47  ;;  %v473_v4 = vunpack.c.l.bf16 %v5758_v46  ;;  %v432_v46 = vmul.f32 %v5648_v51, %v5770_v48  ;;  %v488_v43 = vmul.f32 %v5678_v15, %v5770_v48 }
  0xb4   : > { %v394_v63 = vpop.permute.xlu1 %393 }
  0xb8   : > { %670 = vrot.lane.b32.xlu2 %v661_v30, %s5479_s29  ;;  %668 = vrot.lane.b32.xlu1 %v363_v34, %s5479_s29  ;;  %v715_v30 = vpack.c.bf16 %v710_v23, %v710_v23  ;;  %v433_v23 = vmul.f32 %v5772_v49, %v5666_v0 }
  0xb9   : > { %991 = vrot.lane.b32.xlu0 %v633_v59, %s5485_s10  ;;  %v1025_v59 = vrot.slane %v1020_v21, 4 }
  0xbb   : > { %v1029_v24 = vsel %vm399_vm8, %v1025_v59, %v1026_v12  ;;  %v625_v12 = vmul.f32 %v5676_v14, %v5770_v48  ;;  %v541_v59 = vrot.slane %v536_v6, 4 }
  0xbc   : > { %v1030_v25 = vsel %vm681_vm9, %v1020_v21, %v1029_v24  ;;  %v490_v24 = vmul.f32 %v5652_v53, %v473_v4 }
  0xbd   : > { %1034 = vst [vmem:[#allocation6 + $0xf8] sm:$0xff] %v1030_v25  ;;  %v920_v25 = vld [vmem:[#allocation2 + $0x8] sm:$0xf]  ;;  %v631_v35 = vpack.c.bf16 %v626_v22, %v625_v12 }
  0xbe   : > { %v925_v39 = vunpack.c.l.bf16 %v920_v25  ;;  %v495_v47 = vpack.c.bf16 %v490_v24, %v490_v24  ;;  %v974_v24 = vmul.f32 %v5808_v57, %v5690_v26  ;;  %v964_v25 = vld [vmem:[#allocation2 + $0x8] sm:$0xf] }
  0xc0   : > { %389 = vrot.lane.b32.xlu2 %v380_v32, %s5483_s8  ;;  %387 = vrot.lane.b32.xlu1 %v363_v34, %s5483_s8  ;;  %v612_v32 = vunpack.c.l.bf16 %v607_v45  ;;  %v909_v45 = vrot.slane %v904_v60, 4 }
  0xc1   : > { %450 = vrot.lane.b32.xlu0 %v5682_v19, %s5486_s11 }
  0xc2   : > { %v627_v50 = vmul.f32 %v5650_v52, %v612_v32  ;;  %v913_v54 = vsel %vm399_vm8, %v909_v45, %v910_v40  ;;  %v438_v32 = vpack.c.bf16 %v433_v23, %v432_v46  ;;  %v489_v45 = vmul.f32 %v5772_v49, %v5695_v27 }
  0xc3   : > { %v914_v56 = vsel %vm544_vm11, %v904_v60, %v913_v54  ;;  %v398_v54 = vrot.slane %v394_v63, 4 }
  0xc4   : > { %918 = vst [vmem:[#allocation6 + $0x98] sm:$0xff] %v914_v56  ;;  %v632_v62 = vpack.c.bf16 %v627_v50, %v627_v50  ;;  %v931_v50 = vmul.f32 %v5626_v31, %v925_v39  ;;  %v709_v56 = vmul.f32 %v5699_v28, %v5772_v49  ;;  %v494_v4 = vpack.c.bf16 %v489_v45, %v488_v43  ;;  %v1008_v49 = vld [vmem:[#allocation2 + $0x8] sm:$0xf] }
  0xc8   : > { %587 = vrot.lane.b32.xlu2 %v578_v29, %s5484_s9  ;;  %724 = vrot.lane.b32.xlu1 %v715_v30, %s5488_s13  ;;  %v538_v29 = vpop.permute.xlu0 %537 }
  0xc9   : > { %531 = vrot.lane.b32.xlu0 %v363_v34, %s5482_s7  ;;  %v5805_v34 = vunpack.c.l.bf16 %v5799_v44  ;;  %v542_v30 = vrot.slane %v538_v29, 4 }
  0xcb   : > { %v767_v9 = vmul.f32 %v5568_v8, %v5805_v34  ;;  %v546_v40 = vsel %vm399_vm8, %v541_v59, %v542_v30  ;;  %v973_v59 = vmul.f32 %v5676_v14, %v5805_v34  ;;  %v969_v30 = vunpack.c.l.bf16 %v964_v25 }
  0xcc   : > { %v547_v60 = vsel %vm544_vm11, %v536_v6, %v546_v40  ;;  %v708_v6 = vmul.f32 %v5684_v20, %v5770_v48  ;;  %v929_v40 = vmul.f32 %v5629_v33, %v5805_v34 }
  0xcd   : > { %v771_v21 = vpack.c.bf16 %v768_v10, %v767_v9  ;;  %551 = vst [vmem:[#allocation6 + $0x90] sm:$0xff] %v547_v60  ;;  %v936_v9 = vpack.c.bf16 %v931_v50, %v931_v50  ;;  %v979_v29 = vpack.c.bf16 %v974_v24, %v973_v59  ;;  %v975_v39 = vmul.f32 %v5650_v52, %v969_v30  ;;  %v804_v60 = vld [vmem:[#allocation2 + $0x8] sm:$0xf] }
  0xce   : > { %v809_v43 = vunpack.c.l.bf16 %v804_v60 }
  0xcf   : > { %773 = vst [vmem:[#allocation6 + $0x8] sm:$0xff] %v771_v21  ;;  %v714_v21 = vpack.c.bf16 %v709_v56, %v708_v6  ;;  %v980_v63 = vpack.c.bf16 %v975_v39, %v975_v39  ;;  %v857_v56 = vmul.f32 %v5678_v15, %v5805_v34  ;;  %v813_v39 = vmul.f32 %v5648_v51, %v5805_v34 }
  0xd0   : > { %448 = vrot.lane.b32.xlu2 %v439_v58, %s5486_s11  ;;  %585 = vrot.lane.b32.xlu1 %v577_v61, %s5484_s9  ;;  %v1036_v58 = vld [vmem:[#allocation2 + $0x8] sm:$0xf]  ;;  %v392_v61 = vpop.permute.xlu0 %391  ;;  %v815_v6 = vmul.f32 %v5654_v55, %v809_v43  ;;  %v778_v43 = vld [vmem:[#allocation2 + $0x14] sm:$0xf] }
  0xd1   : > { %641 = vrot.lane.b32.xlu0 %v632_v62, %s5485_s10  ;;  %v397_v62 = vrot.slane %v392_v61, 4  ;;  %v1041_v10 = vunpack.c.l.bf16 %v1036_v58  ;;  %v858_v58 = vmul.f32 %v5808_v57, %v5695_v27 }
  0xd3   : > { %v403_v12 = vsel %vm399_vm8, %v397_v62, %v398_v54  ;;  %v1047_v48 = vmul.f32 %v5680_v17, %v1041_v10  ;;  %v850_v62 = vld [vmem:[#allocation2 + $0x14] sm:$0xf]  ;;  %v863_v10 = vpack.c.bf16 %v858_v58, %v857_v56 }
  0xd4   : > { %v404_v22 = vsel %vm401_vm12, %v392_v61, %v403_v12  ;;  %v1045_v61 = vmul.f32 %v5684_v20, %v5805_v34  ;;  %v856_v12 = vunpack.c.l.bf16 %v850_v62 }
  0xd5   : > { %408 = vst [vmem:[#allocation6 + $0x30] sm:$0xff] %v404_v22  ;;  %v1052_v46 = vpack.c.bf16 %v1047_v48, %v1047_v48 }
  0xd8   : > { %639 = vrot.lane.b32.xlu2 %v631_v35, %s5485_s10  ;;  %446 = vrot.lane.b32.xlu1 %v438_v32, %s5486_s11  ;;  %v892_v35 = vld [vmem:[#allocation2 + $0x8] sm:$0xf] }
  0xd9   : > { %504 = vrot.lane.b32.xlu0 %v495_v47, %s5487_s12  ;;  %v930_v47 = vmul.f32 %v5808_v57, %v5635_v36 }
  0xdb   : > { %v935_v45 = vpack.c.bf16 %v930_v47, %v929_v40  ;;  %v814_v40 = vmul.f32 %v5808_v57, %v5666_v0 }
  0xe0   : > { %502 = vrot.lane.b32.xlu2 %v494_v4, %s5487_s12  ;;  %945 = vrot.lane.b32.xlu1 %v936_v9, %s5484_s9  ;;  %v848_v4 = vld [vmem:[#allocation2 + $0x8] sm:$0xf]  ;;  %v820_v9 = vpack.c.bf16 %v815_v6, %v815_v6  ;;  %v819_v6 = vpack.c.bf16 %v814_v40, %v813_v39 }
  0xe1   : > { %722 = vrot.lane.b32.xlu0 %v714_v21, %s5488_s13  ;;  %v853_v22 = vunpack.c.l.bf16 %v848_v4 }
  0xe3   : > { %v859_v59 = vmul.f32 %v5652_v53, %v853_v22 }
  0xe5   : > { %v864_v25 = vpack.c.bf16 %v859_v59, %v859_v59 }
  0xe8   : > { %1061 = vrot.lane.b32.xlu1 %v1052_v46, %s5488_s13  ;;  %1015 = vrot.lane.b32.xlu2 %v5799_v44, %s5479_s29  ;;  %v862_v46 = vmul.f32 %v5652_v53, %v856_v12 }
  0xe9   : > { %1017 = vrot.lane.b32.xlu0 %v1008_v49, %s5479_s29 }
  0xea   : > { %v5851_v23 = vpop.permute.xlu2 %645  ;;  %v866_v24 = vpack.c.bf16 %v862_v46, %v862_v46 }
  0xeb   : > { %v5871_v50 = vpop.permute.xlu1 %591  ;;  %v650_v58 = vrot.slane %v5851_v23, 4 }
  0xf0   : > { %987 = vrot.lane.b32.xlu1 %v979_v29, %s5485_s10  ;;  %899 = vrot.lane.b32.xlu2 %v5799_v44, %s5482_s7 }
  0xf1   : > { %901 = vrot.lane.b32.xlu0 %v892_v35, %s5482_s7 }
  0xf2   : > { %v5861_v32 = vpop.permute.xlu2 %508 }
  0xf3   : > { %v513_v59 = vrot.slane %v5861_v32, 4 }
  0xf8   : > { %875 = vrot.lane.b32.xlu1 %v5712_v42, %s5487_s12  ;;  %989 = vrot.lane.b32.xlu2 %v980_v63, %s5485_s10  ;;  %v1046_v42 = vmul.f32 %v5808_v57, %v5699_v28  ;;  %v806_v63 = vld [vmem:[#allocation2 + $0x14] sm:$0xf] }
  0xf9   : > { %943 = vrot.lane.b32.xlu0 %v935_v45, %s5484_s9  ;;  %v812_v56 = vunpack.c.l.bf16 %v806_v63 }
  0xfa   : > { %v727_v54 = vpop.permute.xlu2 %726  ;;  %v1051_v21 = vpack.c.bf16 %v1046_v42, %v1045_v61 }
  0xfb   : > { %v732_v47 = vrot.slane %v727_v54, 4  ;;  %v818_v62 = vmul.f32 %v5654_v55, %v812_v56 }
  0xfd   : > { %v822_v22 = vpack.c.bf16 %v818_v62, %v818_v62 }
 0x100   : > { %829 = vrot.lane.b32.xlu1 %v820_v9, %s5486_s11  ;;  %871 = vrot.lane.b32.xlu2 %v863_v10, %s5487_s12 }
 0x101   : > { %1059 = vrot.lane.b32.xlu0 %v1051_v21, %s5488_s13  ;;  %v776_v21 = vld [vmem:[#allocation2 + $0x8] sm:$0xf] }
 0x102   : > { %v5886_v48 = vpop.permute.xlu1 %993  ;;  %v948_v49 = vpop.permute.xlu2 %947 }
 0x103   : > { %v998_v62 = vrot.slane %v5886_v48, 4 }
 0x108   : > { %877 = vrot.lane.b32.xlu2 %v866_v24, %s5487_s12  ;;  %783 = vrot.lane.b32.xlu1 %v5799_v44, %s5483_s8 }
 0x109   : > { %873 = vrot.lane.b32.xlu0 %v864_v25, %s5487_s12 }
 0x10a   : > { %v5894_v29 = vpop.permute.xlu1 %452  ;;  %v1064_v30 = vpop.permute.xlu2 %1063 }
 0x10b   : > { %v729_v35 = vpop.permute.xlu0 %728 }
 0x10c   : > { %v733_v60 = vrot.slane %v729_v35, 4  ;;  %v1069_v35 = vrot.slane %v1064_v30, 4 }
 0x10e   : > { %v737_v45 = vsel %vm399_vm8, %v732_v47, %v733_v60 }
 0x10f   : > { %v738_v44 = vsel %vm735_vm13, %v727_v54, %v737_v45  ;;  %v953_v54 = vrot.slane %v948_v49, 4  ;;  %v596_v45 = vrot.slane %v5871_v50, 4 }
 0x110   : > { %742 = vst [vmem:[#allocation6 + $0x110] sm:$0xff] %v738_v44  ;;  %831 = vrot.lane.b32.xlu2 %v5682_v19, %s5486_s11  ;;  %789 = vrot.lane.b32.xlu1 %v778_v43, %s5483_s8 }
 0x111   : > { %827 = vrot.lane.b32.xlu0 %v819_v6, %s5486_s11 }
 0x112   : > { %v644_v34 = vpop.permute.xlu1 %643  ;;  %v671_v57 = vpop.permute.xlu2 %670 }
 0x113   : > { %v649_v61 = vrot.slane %v644_v34, 4  ;;  %v950_v42 = vpop.permute.xlu0 %949 }
 0x114   : > { %v954_v4 = vrot.slane %v950_v42, 4 }
 0x115   : > { %v654_v9 = vsel %vm399_vm8, %v649_v61, %v650_v58  ;;  %v677_v61 = vrot.slane %v671_v57, 4 }
 0x116   : > { %v655_v19 = vsel %vm652_vm14, %v644_v34, %v654_v9  ;;  %v957_v10 = vsel %vm399_vm8, %v953_v54, %v954_v4 }
 0x117   : > { %659 = vst [vmem:[#allocation6 + $0xd0] sm:$0xff] %v655_v19  ;;  %v958_v12 = vsel %vm598_vm2, %v948_v49, %v957_v10 }
 0x118   : > { %962 = vst [vmem:[#allocation6 + $0xb8] sm:$0xff] %v958_v12  ;;  %785 = vrot.lane.b32.xlu2 %v776_v21, %s5483_s8 }
 0x119   : > { %833 = vrot.lane.b32.xlu0 %v822_v22, %s5486_s11  ;;  %v457_v22 = vrot.slane %v5894_v29, 4 }
 0x11a   : > { %v507_v23 = vpop.permute.xlu1 %506  ;;  %v390_v46 = vpop.permute.xlu2 %389 }
 0x11b   : > { %v512_v24 = vrot.slane %v507_v23, 4  ;;  %v1066_v25 = vpop.permute.xlu0 %1065  ;;  %v396_v12 = vrot.slane %v390_v46, 4 }
 0x11c   : > { %v1070_v39 = vrot.slane %v1066_v25, 4 }
 0x11d   : > { %v517_v40 = vsel %vm399_vm8, %v512_v24, %v513_v59  ;;  %v5213_v59 = vld [vmem:[#allocation6 + $0xec] sm:$0xf0] }
 0x11e   : > { %v518_v49 = vsel %vm515_vm4, %v507_v23, %v517_v40  ;;  %v1073_v47 = vsel %vm399_vm8, %v1069_v35, %v1070_v39  ;;  %v4607_v40 = vld [vmem:[#allocation6 + $0xf0] sm:$0xf0] }
 0x11f   : > { %522 = vst [vmem:[#allocation6 + $0x70] sm:$0xff] %v518_v49  ;;  %v1074_v60 = vsel %vm735_vm13, %v1064_v30, %v1073_v47 }
 0x120   : > { %1078 = vst [vmem:[#allocation6 + $0x118] sm:$0xff] %v1074_v60 }
 0x121   : > { %787 = vrot.lane.b32.xlu0 %v5602_v16, %s5483_s8 }
 0x122   : > { %v534_v63 = vpop.permute.xlu1 %533  ;;  %v588_v32 = vpop.permute.xlu2 %587 }
 0x123   : > { %v590_v43 = vpop.permute.xlu0 %589 }
 0x124   : > { %v595_v44 = vrot.slane %v590_v43, 4 }
 0x126   : > { %v600_v6 = vsel %vm399_vm8, %v595_v44, %v596_v45  ;;  %v540_v45 = vrot.slane %v534_v63, 4 }
 0x127   : > { %v601_v56 = vsel %vm598_vm2, %v590_v43, %v600_v6 }
 0x128   : > { %605 = vst [vmem:[#allocation6 + $0xb0] sm:$0xff] %v601_v56 }
 0x12a   : > { %v5924_v34 = vpop.permute.xlu2 %448  ;;  %v669_v58 = vpop.permute.xlu1 %668 }
 0x12b   : > { %v676_v30 = vrot.slane %v669_v58, 4  ;;  %v992_v42 = vpop.permute.xlu0 %991 }
 0x12c   : > { %v997_v16 = vrot.slane %v992_v42, 4 }
 0x12d   : > { %v680_v54 = vsel %vm399_vm8, %v676_v30, %v677_v61  ;;  %v594_v30 = vrot.slane %v588_v32, 4 }
 0x12e   : > { %v682_v4 = vsel %vm681_vm9, %v669_v58, %v680_v54  ;;  %v1001_v50 = vsel %vm399_vm8, %v997_v16, %v998_v62 }
 0x12f   : > { %687 = vst [vmem:[#allocation6 + $0xe0] sm:$0xff] %v682_v4  ;;  %v1002_v9 = vsel %vm652_vm14, %v992_v42, %v1001_v50 }
 0x130   : > { %1006 = vst [vmem:[#allocation6 + $0xd8] sm:$0xff] %v1002_v9 }
 0x132   : > { %v640_v19 = vpop.permute.xlu2 %639  ;;  %v388_v10 = vpop.permute.xlu1 %387 }
 0x133   : > { %v395_v21 = vrot.slane %v388_v10, 4  ;;  %v451_v57 = vpop.permute.xlu0 %450  ;;  %v647_v16 = vrot.slane %v640_v19, 4 }
 0x134   : > { %v456_v48 = vrot.slane %v451_v57, 4 }
 0x135   : > { %v400_v23 = vsel %vm399_vm8, %v395_v21, %v396_v12  ;;  %v455_v21 = vrot.slane %v5924_v34, 4 }
 0x136   : > { %v402_v24 = vsel %vm401_vm12, %v388_v10, %v400_v23  ;;  %v461_v25 = vsel %vm399_vm8, %v456_v48, %v457_v22  ;;  %v4605_v35 = vld [vmem:[#allocation6 + $0xe0] sm:$0xf]  ;;  %v5211_v39 = vld [vmem:[#allocation6 + $0xe4] sm:$0xf] }
 0x137   : > { %407 = vst [vmem:[#allocation6 + $0x20] sm:$0xff] %v402_v24  ;;  %v462_v49 = vsel %vm459_vm5, %v451_v57, %v461_v25  ;;  %v4606_v46 = vor.u32 %v5213_v59, %v4605_v35  ;;  %v4610_v47 = vor.u32 %v5211_v39, %v4607_v40  ;;  %v5209_v25 = vld [vmem:[#allocation6 + $0xcc] sm:$0xf0]  ;;  %v4591_v35 = vld [vmem:[#allocation6 + $0xd0] sm:$0xf0] }
 0x138   : > { %466 = vst [vmem:[#allocation6 + $0x50] sm:$0xff] %v462_v49 }
 0x139   : > { %1309 = vmatpush.bf16.msra.mxu0 %v4606_v46  ;;  %1335 = vmatpush.bf16.msra.mxu2 %v4610_v47 }
 0x13a   : > { %v503_v29 = vpop.permute.xlu2 %502  ;;  %v725_v60 = vpop.permute.xlu1 %724 }
 0x13b   : > { %v532_v43 = vpop.permute.xlu0 %531  ;;  %v510_v22 = vrot.slane %v503_v29, 4 }
 0x13c   : > { %v539_v44 = vrot.slane %v532_v43, 4 }
 0x13e   : > { %v543_v6 = vsel %vm399_vm8, %v539_v44, %v540_v45 }
 0x13f   : > { %v545_v56 = vsel %vm544_vm11, %v532_v43, %v543_v6  ;;  %v5205_v6 = vld [vmem:[#allocation6 + $0xac] sm:$0xf0] }
 0x140   : > { %550 = vst [vmem:[#allocation6 + $0x80] sm:$0xff] %v545_v56  ;;  %v4575_v56 = vld [vmem:[#allocation6 + $0xb0] sm:$0xf0] }
 0x142   : > { %v586_v58 = vpop.permute.xlu1 %585  ;;  %v5938_v61 = vpop.permute.xlu2 %1015 }
 0x143   : > { %v593_v42 = vrot.slane %v586_v58, 4  ;;  %v642_v62 = vpop.permute.xlu0 %641 }
 0x144   : > { %v648_v54 = vrot.slane %v642_v62, 4 }
 0x145   : > { %v597_v4 = vsel %vm399_vm8, %v593_v42, %v594_v30 }
 0x146   : > { %v599_v50 = vsel %vm598_vm2, %v586_v58, %v597_v4  ;;  %v651_v63 = vsel %vm399_vm8, %v647_v16, %v648_v54  ;;  %v731_v58 = vrot.slane %v725_v60, 4 }
 0x147   : > { %604 = vst [vmem:[#allocation6 + $0xa0] sm:$0xff] %v599_v50  ;;  %v653_v9 = vsel %vm652_vm14, %v640_v19, %v651_v63  ;;  %v4557_v62 = vld [vmem:[#allocation6 + $0x80] sm:$0xf]  ;;  %v5199_v16 = vld [vmem:[#allocation6 + $0x84] sm:$0xf] }
 0x148   : > { %658 = vst [vmem:[#allocation6 + $0xc0] sm:$0xff] %v653_v9  ;;  %v5201_v50 = vld [vmem:[#allocation6 + $0x8c] sm:$0xf0]  ;;  %v4559_v63 = vld [vmem:[#allocation6 + $0x90] sm:$0xf0] }
 0x149   : > { %v4558_v9 = vor.u32 %v5201_v50, %v4557_v62  ;;  %v5187_v50 = vld [vmem:[#allocation6 + $0x24] sm:$0xf] }
 0x14a   : > { %v447_v10 = vpop.permute.xlu1 %446  ;;  %v5944_v12 = vpop.permute.xlu2 %899 }
 0x14b   : > { %v454_v32 = vrot.slane %v447_v10, 4  ;;  %v505_v57 = vpop.permute.xlu0 %504 }
 0x14c   : > { %v511_v48 = vrot.slane %v505_v57, 4 }
 0x14d   : > { %v458_v23 = vsel %vm399_vm8, %v454_v32, %v455_v21 }
 0x14e   : > { %v460_v59 = vsel %vm459_vm5, %v447_v10, %v458_v23  ;;  %v514_v24 = vsel %vm399_vm8, %v510_v22, %v511_v48  ;;  %v4573_v46 = vld [vmem:[#allocation6 + $0xa0] sm:$0xf]  ;;  %v5203_v47 = vld [vmem:[#allocation6 + $0xa4] sm:$0xf]  ;;  %v4562_v10 = vor.u32 %v5199_v16, %v4559_v63  ;;  %v5197_v48 = vld [vmem:[#allocation6 + $0x6c] sm:$0xf0] }
 0x14f   : > { %465 = vst [vmem:[#allocation6 + $0x40] sm:$0xff] %v460_v59  ;;  %v516_v19 = vsel %vm515_vm4, %v503_v29, %v514_v24  ;;  %v4589_v39 = vld [vmem:[#allocation6 + $0xc0] sm:$0xf]  ;;  %v5207_v40 = vld [vmem:[#allocation6 + $0xc4] sm:$0xf]  ;;  %v4574_v42 = vor.u32 %v5205_v6, %v4573_v46  ;;  %v4578_v29 = vor.u32 %v5203_v47, %v4575_v56  ;;  %v1023_v59 = vrot.slane %v5938_v61, 4 }
 0x150   : > { %521 = vst [vmem:[#allocation6 + $0x60] sm:$0xff] %v516_v19  ;;  %v4590_v49 = vor.u32 %v5209_v25, %v4589_v39  ;;  %v4594_v34 = vor.u32 %v5207_v40, %v4591_v35  ;;  %v4543_v23 = vld [vmem:[#allocation6 + $0x70] sm:$0xf0]  ;;  %v330_v39 = vld [vmem:[%s7075_s1] sm:$0xff]  ;;  %v5193_v6 = vld [vmem:[#allocation6 + $0x4c] sm:$0xf0] }
 0x151   : > { %v4623_v46 = vld [vmem:[#allocation6 + $0x110] sm:$0xf0]  ;;  %v1122_v47 = vunpack.c.h.b16 %v330_v39 }
 0x152   : > { %1310 = vmatpush.bf16.msra.mxu0 %v4590_v49  ;;  %1336 = vmatpush.bf16.msra.mxu2 %v4594_v34  ;;  %v5951_v43 = vpop.permute.xlu1 %945  ;;  %v5953_v45 = vpop.permute.xlu2 %989  ;;  %v5217_v49 = vld [vmem:[#allocation6 + $0x10c] sm:$0xf0] }
 0x153   : > { %v723_v44 = vpop.permute.xlu0 %722  ;;  %v5968_v63 = vpack.c.b16 %v1122_v47, %v1122_v47 }
 0x154   : > { %v730_v30 = vrot.slane %v723_v44, 4 }
 0x156   : > { %v734_v54 = vsel %vm399_vm8, %v730_v30, %v731_v58  ;;  %1311 = vmatpush.bf16.msra.mxu0 %v4574_v42  ;;  %1337 = vmatpush.bf16.msra.mxu2 %v4578_v29  ;;  %v4525_v19 = vld [vmem:[#allocation6 + $0x40] sm:$0xf]  ;;  %v5191_v34 = vld [vmem:[#allocation6 + $0x44] sm:$0xf]  ;;  %v4527_v29 = vld [vmem:[#allocation6 + $0x50] sm:$0xf0] }
 0x157   : > { %v736_v4 = vsel %vm735_vm13, %v723_v44, %v734_v54  ;;  %v4541_v21 = vld [vmem:[#allocation6 + $0x60] sm:$0xf]  ;;  %v5195_v32 = vld [vmem:[#allocation6 + $0x64] sm:$0xf]  ;;  %v4526_v30 = vor.u32 %v5193_v6, %v4525_v19  ;;  %v4530_v16 = vor.u32 %v5191_v34, %v4527_v29  ;;  %v5185_v19 = vld [vmem:[#allocation6 + $0xc] sm:$0xf0] }
 0x158   : > { %741 = vst [vmem:[#allocation6 + $0x100] sm:$0xff] %v736_v4  ;;  %v4542_v25 = vor.u32 %v5197_v48, %v4541_v21  ;;  %v4546_v35 = vor.u32 %v5195_v32, %v4543_v23  ;;  %v4509_v54 = vld [vmem:[#allocation6 + $0x20] sm:$0xf]  ;;  %v5189_v21 = vld [vmem:[#allocation6 + $0x2c] sm:$0xf0]  ;;  %v907_v32 = vrot.slane %v5944_v12, 4 }
 0x159   : > { %v4510_v23 = vor.u32 %v5189_v21, %v4509_v54  ;;  %v4495_v34 = vld [vmem:[#allocation6 + $0x10] sm:$0xf0]  ;;  %v5214_v6 = vld [vmem:[#allocation6 + $0xf4] sm:$0xf0]  ;;  %v952_v54 = vrot.slane %v5951_v43, 4 }
 0x15a   : > { %1312 = vmatpush.bf16.msra.mxu0 %v4558_v9  ;;  %1338 = vmatpush.bf16.msra.mxu2 %v4562_v10  ;;  %v5957_v60 = vpop.permute.xlu1 %1061  ;;  %v5959_v57 = vpop.permute.xlu2 %871  ;;  %v996_v9 = vrot.slane %v5953_v45, 4  ;;  %v5210_v21 = vld [vmem:[#allocation6 + $0xd4] sm:$0xf0] }
 0x15b   : > { %v1018_v22 = vpop.permute.xlu0 %1017 }
 0x15c   : > { %v1024_v24 = vrot.slane %v1018_v22, 4 }
 0x15e   : > { %v1027_v40 = vsel %vm399_vm8, %v1023_v59, %v1024_v24  ;;  %1313 = vmatpush.bf16.msra.mxu0 %v4542_v25  ;;  %1339 = vmatpush.bf16.msra.mxu2 %v4546_v35  ;;  %v4511_v59 = vld [vmem:[#allocation6 + $0x30] sm:$0xf0]  ;;  %v4493_v35 = vld [vmem:[#allocation6] sm:$0xf] }
 0x15f   : > { %v1028_v44 = vsel %vm681_vm9, %v5938_v61, %v1027_v40  ;;  %v4621_v56 = vld [vmem:[#allocation6 + $0x100] sm:$0xf]  ;;  %v5215_v58 = vld [vmem:[#allocation6 + $0x104] sm:$0xf]  ;;  %v4514_v25 = vor.u32 %v5187_v50, %v4511_v59 }
 0x160   : > { %1033 = vst [vmem:[#allocation6 + $0xe8] sm:$0xff] %v1028_v44  ;;  %v4622_v42 = vor.u32 %v5217_v49, %v4621_v56  ;;  %v4626_v62 = vor.u32 %v5215_v58, %v4623_v46  ;;  %v5183_v49 = vld [vmem:[#allocation6 + $0x4] sm:$0xf]  ;;  %v1121_v46 = vunpack.c.l.b16 %v330_v39  ;;  %v4494_v56 = vor.u32 %v5185_v19, %v4493_v35  ;;  %v5206_v19 = vld [vmem:[#allocation6 + $0xb4] sm:$0xf0] }
 0x162   : > { %1314 = vmatpush.bf16.msra.mxu0 %v4526_v30  ;;  %1329 = vmatpush.bf16.msra.mxu1 %v4622_v42  ;;  %v988_v4 = vpop.permute.xlu1 %987  ;;  %v878_v22 = vpop.permute.xlu2 %877  ;;  %v4498_v30 = vor.u32 %v5183_v49, %v4495_v34  ;;  %v5981_v29 = vpack.c.b16 %v1121_v46, %v1121_v46  ;;  %v336_v49 = vld [vmem:[%s7076_s2] sm:$0xff] }
 0x163   : > { %1340 = vmatpush.bf16.msra.mxu2 %v4530_v16  ;;  %1355 = vmatpush.bf16.msra.mxu3 %v4626_v62  ;;  %v995_v61 = vrot.slane %v988_v4, 4  ;;  %v902_v10 = vpop.permute.xlu0 %901  ;;  %v882_v39 = vrot.slane %v878_v22, 4 }
 0x164   : > { %v908_v48 = vrot.slane %v902_v10, 4  ;;  %1117 = vperm.xlu2 %5460, %v336_v49  }
 0x165   : > { %v999_v24 = vsel %vm399_vm8, %v995_v61, %v996_v9  ;;  %4635 = vmatmul.msk.bf16.vlgmr.msra.gmra.mxu1 %vm483_vm1, %v5968_v63 }
 0x166   : > { %v1000_v45 = vsel %vm652_vm14, %v988_v4, %v999_v24  ;;  %v911_v40 = vsel %vm399_vm8, %v907_v32, %v908_v48  ;;  %1315 = vmatpush.bf16.msra.mxu0 %v4510_v23  ;;  %4636 = vmatmul.msk.bf16.vlgmr.msra.gmra.mxu3 %vm483_vm1, %v5968_v63  ;;  %v1068_v23 = vrot.slane %v5957_v60, 4 }
 0x167   : > { %1005 = vst [vmem:[#allocation6 + $0xc8] sm:$0xff] %v1000_v45  ;;  %v912_v47 = vsel %vm544_vm11, %v5944_v12, %v911_v40  ;;  %1341 = vmatpush.bf16.msra.mxu2 %v4514_v25  ;;  %v4613_v44 = vld [vmem:[#allocation6 + $0xe8] sm:$0xf] }
 0x168   : > { %917 = vst [vmem:[#allocation6 + $0x88] sm:$0xff] %v912_v47  ;;  %v4614_v58 = vor.u32 %v5214_v6, %v4613_v44  ;;  %v5202_v6 = vld [vmem:[#allocation6 + $0x94] sm:$0xf0] }
 0x16a   : > { %1316 = vmatpush.bf16.msra.mxu0 %v4494_v56  ;;  %1361 = vmatpush.bf16.msrb.mxu1 %v4614_v58  ;;  %v876_v42 = vpop.permute.xlu1 %875  ;;  %v5987_v9 = vpop.permute.xlu2 %831  ;;  %v879_v56 = vrot.slane %v5959_v57, 4 }
 0x16b   : > { %1342 = vmatpush.bf16.msra.mxu2 %v4498_v30  ;;  %v881_v62 = vrot.slane %v876_v42, 4  ;;  %v944_v16 = vpop.permute.xlu0 %943 }
 0x16c   : > { %v951_v4 = vrot.slane %v944_v16, 4 }
 0x16d   : > { %v885_v12 = vsel %vm399_vm8, %v881_v62, %v882_v39  ;;  %1317 = vmatmul.bf16.vlgmr.msra.gmra.mxu0 %v5981_v29 }
 0x16e   : > { %v886_v50 = vsel %vm515_vm4, %v876_v42, %v885_v12  ;;  %v955_v61 = vsel %vm399_vm8, %v951_v4, %v952_v54  ;;  %1343 = vmatmul.bf16.vlgmr.msra.gmra.mxu2 %v5981_v29  ;;  %v4597_v10 = vld [vmem:[#allocation6 + $0xc8] sm:$0xf]  ;;  %v4631_v54 = vld [vmem:[#allocation6 + $0x118] sm:$0xf0]  ;;  %v5212_v4 = vld [vmem:[#allocation6 + $0xec] sm:$0xf] }
 0x16f   : > { %890 = vst [vmem:[#allocation6 + $0x78] sm:$0xff] %v886_v50  ;;  %v956_v32 = vsel %vm598_vm2, %v944_v16, %v955_v61  ;;  %v4598_v22 = vor.u32 %v5210_v21, %v4597_v10  ;;  %v4565_v34 = vld [vmem:[#allocation6 + $0x88] sm:$0xf]  ;;  %v5218_v16 = vld [vmem:[#allocation6 + $0x114] sm:$0xf0] }
 0x170   : > { %961 = vst [vmem:[#allocation6 + $0xa8] sm:$0xff] %v956_v32  ;;  %v4566_v30 = vor.u32 %v5202_v6, %v4565_v34  ;;  %v4615_v32 = vld [vmem:[#allocation6 + $0xf8] sm:$0xf0] }
 0x171   : > { %1362 = vmatpush.bf16.msrb.mxu1 %v4598_v22  ;;  %v4618_v22 = vor.u32 %v5212_v4, %v4615_v32 }
 0x172   : > { %v830_v43 = vpop.permute.xlu1 %829  ;;  %v786_v45 = vpop.permute.xlu2 %785 }
 0x173   : > { %v1060_v48 = vpop.permute.xlu0 %1059  ;;  %v792_v47 = vrot.slane %v786_v45, 4 }
 0x174   : > { %v1067_v59 = vrot.slane %v1060_v48, 4 }
 0x176   : > { %v1071_v24 = vsel %vm399_vm8, %v1067_v59, %v1068_v23  ;;  %v836_v59 = vrot.slane %v830_v43, 4  ;;  %v5198_v49 = vld [vmem:[#allocation6 + $0x74] sm:$0xf0]  ;;  %v4583_v43 = vld [vmem:[#allocation6 + $0xb8] sm:$0xf0] }
 0x177   : > { %v1072_v25 = vsel %vm735_vm13, %v1060_v48, %v1071_v24  ;;  %v4581_v35 = vld [vmem:[#allocation6 + $0xa8] sm:$0xf]  ;;  %v5208_v48 = vld [vmem:[#allocation6 + $0xcc] sm:$0xf] }
 0x178   : > { %1077 = vst [vmem:[#allocation6 + $0x108] sm:$0xff] %v1072_v25  ;;  %v4582_v40 = vor.u32 %v5206_v19, %v4581_v35  ;;  %v4599_v25 = vld [vmem:[#allocation6 + $0xd8] sm:$0xf0]  ;;  %v5204_v19 = vld [vmem:[#allocation6 + $0xac] sm:$0xf] }
 0x179   : > { %v4602_v35 = vor.u32 %v5208_v48, %v4599_v25 }
 0x17a   : > { %1363 = vmatpush.bf16.msrb.mxu1 %v4582_v40  ;;  %v784_v46 = vpop.permute.xlu1 %783 }
 0x17b   : > { %v791_v60 = vrot.slane %v784_v46, 4  ;;  %v874_v44 = vpop.permute.xlu0 %873 }
 0x17c   : > { %v880_v58 = vrot.slane %v874_v44, 4  ;;  %v837_v44 = vrot.slane %v5987_v9, 4 }
 0x17d   : > { %v795_v42 = vsel %vm399_vm8, %v791_v60, %v792_v47  ;;  %v5200_v47 = vld [vmem:[#allocation6 + $0x8c] sm:$0xf] }
 0x17e   : > { %v796_v39 = vsel %vm401_vm12, %v784_v46, %v795_v42  ;;  %v883_v62 = vsel %vm399_vm8, %v879_v56, %v880_v58  ;;  %1364 = vmatpush.bf16.msrb.mxu1 %v4566_v30  ;;  %v4586_v46 = vor.u32 %v5204_v19, %v4583_v43  ;;  %v4501_v19 = vld [vmem:[#allocation6 + $0x8] sm:$0xf] }
 0x17f   : > { %801 = vst [vmem:[#allocation6 + $0x28] sm:$0xff] %v796_v39  ;;  %v884_v12 = vsel %vm515_vm4, %v5959_v57, %v883_v62  ;;  %v4629_v50 = vld [vmem:[#allocation6 + $0x108] sm:$0xf]  ;;  %v5216_v61 = vld [vmem:[#allocation6 + $0x10c] sm:$0xf] }
 0x180   : > { %889 = vst [vmem:[#allocation6 + $0x68] sm:$0xff] %v884_v12  ;;  %v4630_v10 = vor.u32 %v5218_v16, %v4629_v50  ;;  %v4634_v21 = vor.u32 %v5216_v61, %v4631_v54  ;;  %v4551_v62 = vld [vmem:[#allocation6 + $0x78] sm:$0xf0] }
 0x182   : > { %1381 = vmatpush.bf16.msrb.mxu3 %v4630_v10  ;;  %1407 = vmatpush.bf16.msrb.mxu0 %v4634_v21  ;;  %v790_v39 = vpop.permute.xlu1 %789 }
 0x183   : > { %v828_v23 = vpop.permute.xlu0 %827  ;;  %v794_v54 = vrot.slane %v790_v39, 4 }
 0x184   : > { %v835_v24 = vrot.slane %v828_v23, 4 }
 0x185   : > { %4637 = vmatmul.msk.bf16.vlgmr.msrb.gmra.mxu3 %vm483_vm1, %v5968_v63  ;;  %4638 = vmatmul.msk.bf16.vlgmr.msrb.gmra.mxu0 %vm483_vm1, %v5968_v63  ;;  %v4567_v63 = vld [vmem:[#allocation6 + $0x98] sm:$0xf0] }
 0x186   : > { %1387 = vmatpush.bf16.msra.mxu3 %v4618_v22  ;;  %v839_v57 = vsel %vm399_vm8, %v835_v24, %v836_v59  ;;  %v4570_v56 = vor.u32 %v5200_v47, %v4567_v63  ;;  %v5188_v24 = vld [vmem:[#allocation6 + $0x2c] sm:$0xf] }
 0x187   : > { %v840_v45 = vsel %vm459_vm5, %v828_v23, %v839_v57  ;;  %v4549_v40 = vld [vmem:[#allocation6 + $0x68] sm:$0xf]  ;;  %v5196_v30 = vld [vmem:[#allocation6 + $0x6c] sm:$0xf] }
 0x188   : > { %845 = vst [vmem:[#allocation6 + $0x48] sm:$0xff] %v840_v45  ;;  %v4550_v34 = vor.u32 %v5198_v49, %v4549_v40  ;;  %v4554_v16 = vor.u32 %v5196_v30, %v4551_v62  ;;  %v4517_v23 = vld [vmem:[#allocation6 + $0x28] sm:$0xf]  ;;  %v5186_v45 = vld [vmem:[#allocation6 + $0x14] sm:$0xf0] }
 0x189   : > { %v5184_v40 = vld [vmem:[#allocation6 + $0xc] sm:$0xf]  ;;  %v4503_v49 = vld [vmem:[#allocation6 + $0x18] sm:$0xf0] }
 0x18a   : > { %1388 = vmatpush.bf16.msra.mxu3 %v4602_v35  ;;  %1365 = vmatpush.bf16.msrb.mxu1 %v4550_v34  ;;  %v4502_v34 = vor.u32 %v5186_v45, %v4501_v19  ;;  %v4506_v43 = vor.u32 %v5184_v40, %v4503_v49 }
 0x18b   : > { %v834_v60 = vpop.permute.xlu0 %833 }
 0x18c   : > { %v838_v6 = vrot.slane %v834_v60, 4 }
 0x18e   : > { %1389 = vmatpush.bf16.msra.mxu3 %v4586_v46  ;;  %v841_v58 = vsel %vm399_vm8, %v837_v44, %v838_v6 }
 0x18f   : > { %v842_v42 = vsel %vm459_vm5, %v5987_v9, %v841_v58  ;;  %v4533_v61 = vld [vmem:[#allocation6 + $0x48] sm:$0xf]  ;;  %v5192_v32 = vld [vmem:[#allocation6 + $0x4c] sm:$0xf] }
 0x190   : > { %846 = vst [vmem:[#allocation6 + $0x58] sm:$0xff] %v842_v42 }
 0x192   : > { %1390 = vmatpush.bf16.msra.mxu3 %v4570_v56 }
 0x193   : > { %v788_v4 = vpop.permute.xlu0 %787 }
 0x194   : > { %v793_v12 = vrot.slane %v788_v4, 4 }
 0x196   : > { %1391 = vmatpush.bf16.msra.mxu3 %v4554_v16  ;;  %v797_v50 = vsel %vm399_vm8, %v793_v12, %v794_v54 }
 0x197   : > { %v798_v10 = vsel %vm401_vm12, %v788_v4, %v797_v50  ;;  %v5194_v21 = vld [vmem:[#allocation6 + $0x54] sm:$0xf0]  ;;  %v4535_v22 = vld [vmem:[#allocation6 + $0x58] sm:$0xf0] }
 0x198   : > { %802 = vst [vmem:[#allocation6 + $0x38] sm:$0xff] %v798_v10  ;;  %v4534_v48 = vor.u32 %v5194_v21, %v4533_v61  ;;  %v4538_v9 = vor.u32 %v5192_v32, %v4535_v22 }
 0x19a   : > { %1366 = vmatpush.bf16.msrb.mxu1 %v4534_v48  ;;  %1392 = vmatpush.bf16.msra.mxu3 %v4538_v9 }
 0x19f   : > { %v5190_v59 = vld [vmem:[#allocation6 + $0x34] sm:$0xf0]  ;;  %v4519_v25 = vld [vmem:[#allocation6 + $0x38] sm:$0xf0] }
 0x1a0   : > { %v4518_v35 = vor.u32 %v5190_v59, %v4517_v23  ;;  %v4522_v57 = vor.u32 %v5188_v24, %v4519_v25 }
 0x1a2   : > { %1367 = vmatpush.bf16.msrb.mxu1 %v4518_v35  ;;  %1393 = vmatpush.bf16.msra.mxu3 %v4522_v57 }
 0x1a6   : > { %1368 = vmatpush.bf16.msrb.mxu1 %v4502_v34  ;;  %1394 = vmatpush.bf16.msra.mxu3 %v4506_v43 }
 0x1a9   : > { %1369 = vmatmul.bf16.vlgmr.msrb.gmra.mxu1 %v5981_v29  ;;  %1395 = vmatmul.bf16.vlgmr.msra.gmra.mxu3 %v5981_v29 }
 0x1be   : > { %v1118_v47 = vpop.permute.xlu2 %1117 }
 0x1e2   : > { %v1331_v46 = vpop.f32.mrf.mxu1 }
 0x1e9   : > { %v1357_v60 = vpop.f32.mrf.mxu3 }
 0x1ea   : > { %v1318_v44 = vpop.f32.mrf.mxu0  ;;  %v1333_v6 = vpop.f32.mrf.mxu1 }
 0x1eb   : > { %v1319_v63 = vadd.f32 %v1318_v44, %v1118_v47 }
 0x1ed   : > { %v1332_v56 = vadd.f32 %v1331_v46, %v1319_v63 }
 0x1ef   : > { %v1413_v62 = vmax.f32 %v1332_v56, 0.0 }
 0x1f1   : > { %v1344_v58 = vpop.f32.mrf.mxu2  ;;  %v1359_v30 = vpop.f32.mrf.mxu3 }
 0x1f2   : > { %v1345_v42 = vadd.f32 %v1344_v58, %v1118_v47  ;;  %v1320_v39 = vpop.f32.mrf.mxu0 }
 0x1f4   : > { %v1358_v16 = vadd.f32 %v1357_v60, %v1345_v42 }
 0x1f6   : > { %v1414_v54 = vmax.f32 %v1358_v16, 0.0  ;;  %v1429_v16 = vld [vmem:[#allocation3 + $0xc] sm:$0xff] }
 0x1f8   : > { %v1417_v4 = vpack.c.bf16 %v1414_v54, %v1413_v62 }
 0x1f9   : > { %v1346_v12 = vpop.f32.mrf.mxu2 }
 0x1fa   : > { %1420 = vrot.lane.b32.xlu0 %v1417_v4, %s5481_s6 }
 0x202   : > { %v1409_v29 = vpop.f32.mrf.mxu0 }
 0x208   : > { %v1383_v50 = vpop.f32.mrf.mxu3 }
 0x20a   : > { %v1411_v10 = vpop.f32.mrf.mxu0 }
 0x210   : > { %v1385_v61 = vpop.f32.mrf.mxu3 }
 0x211   : > { %v1433_v61 = vunpack.c.h.bf16 %v1429_v16 }
 0x226   : > { %v1370_v21 = vpop.f32.mrf.mxu1 }
 0x227   : > { %v1371_v32 = vadd.f32 %v1370_v21, %v1118_v47 }
 0x229   : > { %v1384_v48 = vadd.f32 %v1383_v50, %v1371_v32 }
 0x22b   : > { %v1415_v24 = vmax.f32 %v1384_v48, 0.0  ;;  %v1437_v48 = vmul.f32 %v5584_v11, %v1433_v61 }
 0x22c   : > { %v1396_v22 = vpop.f32.mrf.mxu3 }
 0x22d   : > { %v1397_v9 = vadd.f32 %v1396_v22, %v1118_v47 }
 0x22e   : > { %v1372_v23 = vpop.f32.mrf.mxu1 }
 0x22f   : > { %v1410_v59 = vadd.f32 %v1409_v29, %v1397_v9  ;;  %v1432_v29 = vunpack.c.l.bf16 %v1429_v16 }
 0x231   : > { %v1416_v25 = vmax.f32 %v1410_v59, 0.0  ;;  %v1436_v22 = vmul.f32 %v5568_v8, %v1432_v29 }
 0x233   : > { %v1418_v35 = vpack.c.bf16 %v1416_v25, %v1415_v24  ;;  %v1439_v25 = vpack.c.bf16 %v1437_v48, %v1436_v22 }
 0x234   : > { %v1398_v57 = vpop.f32.mrf.mxu3 }
 0x235   : > { %2089 = vrot.lane.b32.xlu1 %v1418_v35, %s5481_s6  ;;  %1441 = vst [vmem:[#allocation7 + $0x130] sm:$0xff] %v1439_v25 }
 0x26c   : > { %v1421_v19 = vpop.permute.xlu0 %1420 }
 0x26d   : > { %v1422_v45 = vrot.slane %v1421_v19, 4 }
 0x26f   : > { %v1423_v40 = vsel %vm353_vm6, %v1422_v45, %v1421_v19  ;;  %1427 = vst.msk [vmem:[#allocation3 + $0x8] sm:$0xf] %vm234_vm0, %v1422_v45  ;;  %v2113_v19 = vld [vmem:[#allocation3 + $0xc] sm:$0xff] }
 0x270   : > { %1426 = vst.msk [vmem:[#allocation3] sm:$0xff] %vm5548_vm3, %v1423_v40  ;;  %v2101_v45 = vunpack.c.l.bf16 %v2113_v19  ;;  %v2102_v40 = vunpack.c.h.bf16 %v2113_v19 }
 0x276   : > { %v1675_v34 = vld [vmem:[#allocation3 + $0x8] sm:$0xf] }
 0x277   : > { %v6024_v49 = vld [vmem:[#allocation3] sm:$0xff]  ;;  %1684 = vrot.lane.b32.xlu1 %v1675_v34, %s5479_s29  ;;  %v1559_v47 = vld [vmem:[#allocation3 + $0x8] sm:$0xf] }
 0x278   : > { %v6027_v43 = vunpack.c.l.bf16 %v6024_v49  ;;  %v6030_v46 = vunpack.c.h.bf16 %v6024_v49  ;;  %1566 = vrot.lane.b32.xlu2 %v6024_v49, %s5482_s7  ;;  %v1587_v60 = vld [vmem:[#allocation3 + $0x8] sm:$0xf]  ;;  %1568 = vrot.lane.b32.xlu0 %v1559_v47, %s5482_s7  ;;  %v2105_v47 = vmul.f32 %v5568_v8, %v2101_v45 }
 0x279   : > { %v1592_v44 = vunpack.c.l.bf16 %v1587_v60  ;;  %v1703_v39 = vld [vmem:[#allocation3 + $0x8] sm:$0xf]  ;;  %v2106_v60 = vmul.f32 %v5584_v11, %v2102_v40 }
 0x27a   : > { %v1596_v6 = vmul.f32 %v5629_v33, %v6027_v43  ;;  %v1597_v63 = vmul.f32 %v6030_v46, %v5635_v36  ;;  %v6043_v58 = vmul.f32 %v5676_v14, %v6027_v43  ;;  %v6047_v30 = vmul.f32 %v6030_v46, %v5690_v26 }
 0x27b   : > { %v1598_v56 = vmul.f32 %v5626_v31, %v1592_v44  ;;  %v6053_v4 = vmul.f32 %v5648_v51, %v6027_v43  ;;  %v1708_v12 = vunpack.c.l.bf16 %v1703_v39  ;;  %v6057_v50 = vmul.f32 %v6030_v46, %v5666_v0  ;;  %v6080_v44 = vld [vmem:[#allocation3 + $0x8] sm:$0xf] }
 0x27c   : > { %v1602_v42 = vpack.c.bf16 %v1597_v63, %v1596_v6  ;;  %v1434_v10 = vmul.f32 %v5568_v8, %v6027_v43  ;;  %v1435_v21 = vmul.f32 %v5584_v11, %v6030_v46  ;;  %v1712_v9 = vmul.f32 %v5684_v20, %v6027_v43  ;;  %v6082_v63 = vld [vmem:[#allocation3 + $0x8] sm:$0xf] }
 0x27d   : > { %v1603_v54 = vpack.c.bf16 %v1598_v56, %v1598_v56  ;;  %v1713_v23 = vmul.f32 %v6030_v46, %v5699_v28  ;;  %v1714_v24 = vmul.f32 %v5680_v17, %v1708_v12  ;;  %v6084_v56 = vld [vmem:[#allocation3 + $0x8] sm:$0xf]  ;;  %v2108_v39 = vpack.c.bf16 %v2106_v60, %v2105_v47 }
 0x27e   : > { %v1438_v59 = vpack.c.bf16 %v1435_v21, %v1434_v10 }
 0x27f   : > { %1610 = vrot.lane.b32.xlu1 %v1602_v42, %s5484_s9  ;;  %v1718_v35 = vpack.c.bf16 %v1713_v23, %v1712_v9  ;;  %v1719_v57 = vpack.c.bf16 %v1714_v24, %v1714_v24  ;;  %v6086_v42 = vld [vmem:[#allocation3 + $0x8] sm:$0xf]  ;;  %2110 = vst [vmem:[#allocation7 + $0x138] sm:$0xff] %v2108_v39 }
 0x280   : > { %1612 = vrot.lane.b32.xlu2 %v1603_v54, %s5484_s9  ;;  %1682 = vrot.lane.b32.xlu0 %v6024_v49, %s5479_s29  ;;  %1440 = vst [vmem:[#allocation7 + $0x120] sm:$0xff] %v1438_v59 }
 0x288   : > { %1726 = vrot.lane.b32.xlu2 %v1718_v35, %s5488_s13  ;;  %1728 = vrot.lane.b32.xlu0 %v1719_v57, %s5488_s13 }
 0x2a7   : > { %v2090_v34 = vpop.permute.xlu1 %2089 }
 0x2a8   : > { %v2091_v6 = vrot.slane %v2090_v34, 4 }
 0x2aa   : > { %v2092_v16 = vsel %vm353_vm6, %v2091_v6, %v2090_v34  ;;  %2096 = vst.msk [vmem:[#allocation3 + $0x8] sm:$0xf] %vm234_vm0, %v2091_v6 }
 0x2ab   : > { %2095 = vst.msk [vmem:[#allocation3] sm:$0xff] %vm5548_vm3, %v2092_v16 }
 0x2b1   : > { %v2228_v54 = vld [vmem:[#allocation3 + $0x8] sm:$0xf] }
 0x2b2   : > { %v2256_v12 = vld [vmem:[#allocation3 + $0x8] sm:$0xf]  ;;  %2237 = vrot.lane.b32.xlu2 %v2228_v54, %s5482_s7  ;;  %v2227_v29 = vld [vmem:[#allocation3] sm:$0xff] }
 0x2b3   : > { %v2261_v61 = vunpack.c.l.bf16 %v2256_v12  ;;  %2235 = vrot.lane.b32.xlu1 %v2227_v29, %s5482_s7  ;;  %v2259_v10 = vunpack.c.l.bf16 %v2227_v29  ;;  %v2260_v21 = vunpack.c.h.bf16 %v2227_v29  ;;  %v2183_v22 = vld [vmem:[#allocation3] sm:$0xff]  ;;  %v2372_v24 = vld [vmem:[#allocation3 + $0x8] sm:$0xf] }
 0x2b4   : > { %v6094_v48 = vunpack.c.l.bf16 %v2183_v22  ;;  %v6099_v25 = vunpack.c.h.bf16 %v2183_v22  ;;  %v2111_v57 = vld [vmem:[#allocation3] sm:$0xff]  ;;  %v2377_v19 = vunpack.c.l.bf16 %v2372_v24 }
 0x2b5   : > { %v2265_v9 = vmul.f32 %v5629_v33, %v2259_v10  ;;  %v2266_v23 = vmul.f32 %v2260_v21, %v5635_v36  ;;  %v2267_v59 = vmul.f32 %v5626_v31, %v2261_v61  ;;  %v2099_v6 = vunpack.c.l.bf16 %v2111_v57 }
 0x2b6   : > { %v6103_v45 = vmul.f32 %v5676_v14, %v6094_v48  ;;  %v6108_v34 = vmul.f32 %v6099_v25, %v5690_v26  ;;  %v6112_v47 = vmul.f32 %v5648_v51, %v6094_v48  ;;  %v6117_v60 = vmul.f32 %v6099_v25, %v5666_v0 }
 0x2b7   : > { %v2271_v35 = vpack.c.bf16 %v2266_v23, %v2265_v9  ;;  %v2272_v40 = vpack.c.bf16 %v2267_v59, %v2267_v59  ;;  %v2100_v39 = vunpack.c.h.bf16 %v2111_v57  ;;  %v2383_v54 = vmul.f32 %v5680_v17, %v2377_v19  ;;  %v2344_v59 = vld [vmem:[#allocation3 + $0x8] sm:$0xf]  ;;  %v5226_v57 = vld [vmem:[%s7077_s3 + $0x38] sm:$0xff]  ;;  %v5233_v19 = vld [vmem:[%s7077_s3 + $0x70] sm:$0xff] }
 0x2b8   : > { %v2103_v61 = vmul.f32 %v5568_v8, %v2099_v6  ;;  %v2381_v22 = vmul.f32 %v5684_v20, %v2259_v10  ;;  %v2382_v9 = vmul.f32 %v2260_v21, %v5699_v28  ;;  %v5234_v10 = vld [vmem:[%s7077_s3 + $0x78] sm:$0xff]  ;;  %1900 = vmatpush.bf16.msrb.mxu2 %v5226_v57  ;;  %v5225_v21 = vld [vmem:[%s7077_s3 + $0x30] sm:$0xff]  ;;  %v5232_v6 = vld [vmem:[%s7077_s3 + $0x68] sm:$0xff] }
 0x2b9   : > { %2279 = vrot.lane.b32.xlu0 %v2271_v35, %s5484_s9  ;;  %v2388_v24 = vpack.c.bf16 %v2383_v54, %v2383_v54  ;;  %1913 = vmatpush.bf16.msra.mxu1 %v5234_v10  ;;  %v5231_v54 = vld [vmem:[%s7077_s3 + $0x60] sm:$0xff] }
 0x2ba   : > { %2351 = vrot.lane.b32.xlu2 %v2227_v29, %s5479_s29  ;;  %v2104_v29 = vmul.f32 %v5584_v11, %v2100_v39  ;;  %v2387_v35 = vpack.c.bf16 %v2382_v9, %v2381_v22  ;;  %v5223_v39 = vld [vmem:[%s7077_s3 + $0x20] sm:$0xff]  ;;  %v5221_v22 = vld [vmem:[%s7077_s3 + $0x10] sm:$0xff] }
 0x2bb   : > { %2281 = vrot.lane.b32.xlu1 %v2272_v40, %s5484_s9  ;;  %v5224_v40 = vld [vmem:[%s7077_s3 + $0x28] sm:$0xff]  ;;  %v5229_v9 = vld [vmem:[%s7077_s3 + $0x50] sm:$0xff] }
 0x2bc   : > { %v2107_v23 = vpack.c.bf16 %v2104_v29, %v2103_v61  ;;  %1901 = vmatpush.bf16.msrb.mxu2 %v5225_v21  ;;  %v5222_v61 = vld [vmem:[%s7077_s3 + $0x18] sm:$0xff] }
 0x2bd   : > { %1914 = vmatpush.bf16.msra.mxu1 %v5233_v19  ;;  %v5230_v29 = vld [vmem:[%s7077_s3 + $0x58] sm:$0xff] }
 0x2be   : > { %2109 = vst [vmem:[#allocation7 + $0x128] sm:$0xff] %v2107_v23  ;;  %v5220_v23 = vld [vmem:[%s7077_s3 + $0x8] sm:$0xff] }
 0x2c0   : > { %1902 = vmatpush.bf16.msrb.mxu2 %v5224_v40 }
 0x2c1   : > { %2353 = vrot.lane.b32.xlu0 %v2344_v59, %s5479_s29  ;;  %1915 = vmatpush.bf16.msra.mxu1 %v5232_v6  ;;  %v5228_v59 = vld [vmem:[%s7077_s3 + $0x48] sm:$0xff] }
 0x2c2   : > { %2397 = vrot.lane.b32.xlu2 %v2388_v24, %s5488_s13  ;;  %v5219_v24 = vld [vmem:[%s7077_s3] sm:$0xff] }
 0x2c3   : > { %2395 = vrot.lane.b32.xlu1 %v2387_v35, %s5488_s13  ;;  %v5227_v35 = vld [vmem:[%s7077_s3 + $0x40] sm:$0xff] }
 0x2c4   : > { %1903 = vmatpush.bf16.msrb.mxu2 %v5223_v39 }
 0x2c5   : > { %1916 = vmatpush.bf16.msra.mxu1 %v5231_v54 }
 0x2c8   : > { %1904 = vmatpush.bf16.msrb.mxu2 %v5222_v61 }
 0x2c9   : > { %1917 = vmatpush.bf16.msra.mxu1 %v5230_v29 }
 0x2cc   : > { %1905 = vmatpush.bf16.msrb.mxu2 %v5221_v22 }
 0x2cd   : > { %1918 = vmatpush.bf16.msra.mxu1 %v5229_v9 }
 0x2d0   : > { %1906 = vmatpush.bf16.msrb.mxu2 %v5220_v23 }
 0x2d1   : > { %1919 = vmatpush.bf16.msra.mxu1 %v5228_v59 }
 0x2d2   : > { %v1567_v57 = vpop.permute.xlu2 %1566 }
 0x2d3   : > { %v1574_v19 = vrot.slane %v1567_v57, 4 }
 0x2d4   : > { %1907 = vmatpush.bf16.msrb.mxu2 %v5219_v24 }
 0x2d5   : > { %1920 = vmatpush.bf16.msra.mxu1 %v5227_v35 }
 0x2da   : > { %v1613_v39 = vpop.permute.xlu2 %1612 }
 0x2db   : > { %v1619_v22 = vrot.slane %v1613_v39, 4 }
 0x2e9   : > { %v1685_v10 = vpop.permute.xlu1 %1684 }
 0x2ea   : > { %v1569_v21 = vpop.permute.xlu0 %1568  ;;  %v1691_v61 = vrot.slane %v1685_v10, 4 }
 0x2eb   : > { %v1575_v40 = vrot.slane %v1569_v21, 4 }
 0x2ed   : > { %v1578_v6 = vsel %vm399_vm8, %v1574_v19, %v1575_v40  ;;  %v1727_v19 = vpop.permute.xlu2 %1726 }
 0x2ee   : > { %v1579_v54 = vsel %vm544_vm11, %v1567_v57, %v1578_v6  ;;  %v1734_v57 = vrot.slane %v1727_v19, 4 }
 0x2ef   : > { %1584 = vst [vmem:[#allocation7 + $0x1a0] sm:$0xff] %v1579_v54 }
 0x2f1   : > { %v1611_v29 = vpop.permute.xlu1 %1610 }
 0x2f2   : > { %v1683_v9 = vpop.permute.xlu0 %1682  ;;  %v1618_v23 = vrot.slane %v1611_v29, 4 }
 0x2f3   : > { %v1690_v59 = vrot.slane %v1683_v9, 4 }
 0x2f4   : > { %v1622_v12 = vsel %vm399_vm8, %v1618_v23, %v1619_v22  ;;  %v1751_v23 = vunpack.c.h.bf16 %v1579_v54 }
 0x2f5   : > { %v1694_v24 = vsel %vm399_vm8, %v1690_v59, %v1691_v61  ;;  %v1623_v35 = vsel %vm598_vm2, %v1611_v29, %v1622_v12  ;;  %v1750_v61 = vunpack.c.l.bf16 %v1579_v54  ;;  %v5246_v54 = vld [vmem:[%s7077_s3 + $0x58] sm:$0xff] }
 0x2f6   : > { %v1695_v21 = vsel %vm681_vm9, %v1683_v9, %v1694_v24  ;;  %1628 = vst [vmem:[#allocation7 + $0x1c0] sm:$0xff] %v1623_v35  ;;  %v1752_v10 = vunpack.c.l.bf16 %v1623_v35  ;;  %v1753_v16 = vunpack.c.h.bf16 %v1623_v35  ;;  %v5242_v35 = vld [vmem:[%s7077_s3 + $0x38] sm:$0xff] }
 0x2f7   : > { %1700 = vst [vmem:[#allocation7 + $0x200] sm:$0xff] %v1695_v21  ;;  %v1757_v32 = vunpack.c.l.bf16 %v1695_v21  ;;  %v1758_v62 = vunpack.c.h.bf16 %v1695_v21  ;;  %v5250_v21 = vld [vmem:[%s7077_s3 + $0x78] sm:$0xff]  ;;  %2569 = vmatpush.bf16.msra.mxu0 %v5242_v35 }
 0x2f8   : > { %v1754_v9 = vmax.f32 %v1750_v61, %v1752_v10  ;;  %v1755_v24 = vmax.f32 %v1751_v23, %v1753_v16  ;;  %2582 = vmatpush.bf16.msrb.mxu3 %v5250_v21  ;;  %v5238_v16 = vld [vmem:[%s7077_s3 + $0x18] sm:$0xff]  ;;  %v5244_v10 = vld [vmem:[%s7077_s3 + $0x48] sm:$0xff]  ;;  %v5243_v61 = vld [vmem:[%s7077_s3 + $0x40] sm:$0xff] }
 0x2fa   : > { %v1729_v40 = vpop.permute.xlu0 %1728 }
 0x2fb   : > { %v1735_v6 = vrot.slane %v1729_v40, 4 }
 0x2fd   : > { %v1738_v39 = vsel %vm399_vm8, %v1734_v57, %v1735_v6  ;;  %v5245_v57 = vld [vmem:[%s7077_s3 + $0x50] sm:$0xff]  ;;  %v5236_v6 = vld [vmem:[%s7077_s3 + $0x8] sm:$0xff] }
 0x2fe   : > { %v1739_v22 = vsel %vm735_vm13, %v1727_v19, %v1738_v39  ;;  %v5237_v19 = vld [vmem:[%s7077_s3 + $0x10] sm:$0xff] }
 0x2ff   : > { %1744 = vst [vmem:[#allocation7 + $0x220] sm:$0xff] %v1739_v22  ;;  %v1759_v12 = vunpack.c.l.bf16 %v1739_v22  ;;  %v1760_v29 = vunpack.c.h.bf16 %v1739_v22  ;;  %v5235_v22 = vld [vmem:[%s7077_s3] sm:$0xff] }
 0x301   : > { %v1761_v59 = vmax.f32 %v1757_v32, %v1759_v12  ;;  %v1762_v1 = vmax.f32 %v1758_v62, %v1760_v29  ;;  %v5241_v62 = vld [vmem:[%s7077_s3 + $0x30] sm:$0xff]  ;;  %v5247_v32 = vld [vmem:[%s7077_s3 + $0x60] sm:$0xff] }
 0x302   : > { %2570 = vmatpush.bf16.msra.mxu0 %v5241_v62 }
 0x303   : > { %v1768_v7 = vmax.f32 %v1754_v9, %v1761_v59  ;;  %v1769_v28 = vmax.f32 %v1755_v24, %v1762_v1  ;;  %v5249_v1 = vld [vmem:[%s7077_s3 + $0x70] sm:$0xff] }
 0x304   : > { %2583 = vmatpush.bf16.msrb.mxu3 %v5249_v1 }
 0x305   : > { %v1770_v40 = vpack.c.bf16 %v1768_v7, %v1768_v7  ;;  %v1771_v20 = vpack.c.bf16 %v1769_v28, %v1769_v28  ;;  %v5240_v7 = vld [vmem:[%s7077_s3 + $0x28] sm:$0xff]  ;;  %v5239_v28 = vld [vmem:[%s7077_s3 + $0x20] sm:$0xff] }
 0x306   : > { %2571 = vmatpush.bf16.msra.mxu0 %v5240_v7 }
 0x307   : > { %1908 = vmatmul.bf16.vlgmr.msrb.gmra.mxu2 %v1770_v40  ;;  %1921 = vmatmul.bf16.vlgmr.msra.gmra.mxu1 %v1771_v20  ;;  %v5248_v20 = vld [vmem:[%s7077_s3 + $0x68] sm:$0xff] }
 0x308   : > { %2584 = vmatpush.bf16.msrb.mxu3 %v5248_v20 }
 0x30a   : > { %2572 = vmatpush.bf16.msra.mxu0 %v5239_v28 }
 0x30c   : > { %2585 = vmatpush.bf16.msrb.mxu3 %v5247_v32  ;;  %v2238_v39 = vpop.permute.xlu2 %2237 }
 0x30d   : > { %v2244_v12 = vrot.slane %v2238_v39, 4 }
 0x30e   : > { %2573 = vmatpush.bf16.msra.mxu0 %v5238_v16 }
 0x310   : > { %2586 = vmatpush.bf16.msrb.mxu3 %v5246_v54 }
 0x312   : > { %2574 = vmatpush.bf16.msra.mxu0 %v5237_v19 }
 0x314   : > { %2587 = vmatpush.bf16.msrb.mxu3 %v5245_v57  ;;  %v2352_v59 = vpop.permute.xlu2 %2351 }
 0x315   : > { %v2359_v32 = vrot.slane %v2352_v59, 4 }
 0x316   : > { %2575 = vmatpush.bf16.msra.mxu0 %v5236_v6 }
 0x318   : > { %2588 = vmatpush.bf16.msrb.mxu3 %v5244_v10 }
 0x31a   : > { %2576 = vmatpush.bf16.msra.mxu0 %v5235_v22 }
 0x31c   : > { %2589 = vmatpush.bf16.msrb.mxu3 %v5243_v61  ;;  %v2398_v20 = vpop.permute.xlu2 %2397 }
 0x31d   : > { %v2404_v19 = vrot.slane %v2398_v20, 4 }
 0x325   : > { %v2236_v23 = vpop.permute.xlu1 %2235 }
 0x326   : > { %v2243_v29 = vrot.slane %v2236_v23, 4 }
 0x328   : > { %v2247_v9 = vsel %vm399_vm8, %v2243_v29, %v2244_v12 }
 0x329   : > { %v2248_v24 = vsel %vm544_vm11, %v2236_v23, %v2247_v9 }
 0x32a   : > { %2253 = vst [vmem:[#allocation7 + $0x1a8] sm:$0xff] %v2248_v24  ;;  %v2419_v12 = vunpack.c.l.bf16 %v2248_v24  ;;  %v2420_v29 = vunpack.c.h.bf16 %v2248_v24  ;;  %v7095_v24 = vmov 0.0  }
 0x32b   : > { %v2280_v40 = vpop.permute.xlu0 %2279 }
 0x32c   : > { %v2287_v21 = vrot.slane %v2280_v40, 4 }
 0x32d   : > { %v2282_v35 = vpop.permute.xlu1 %2281 }
 0x32e   : > { %v2288_v62 = vrot.slane %v2282_v35, 4 }
 0x330   : > { %v2291_v1 = vsel %vm399_vm8, %v2287_v21, %v2288_v62 }
 0x331   : > { %v2292_v7 = vsel %vm598_vm2, %v2280_v40, %v2291_v1 }
 0x332   : > { %2297 = vst [vmem:[#allocation7 + $0x1c8] sm:$0xff] %v2292_v7  ;;  %v2421_v22 = vunpack.c.l.bf16 %v2292_v7  ;;  %v2422_v61 = vunpack.c.h.bf16 %v2292_v7  ;;  %v314_v7 = vand.u32 7, %v5546_v2 }
 0x333   : > { %v2354_v28 = vpop.permute.xlu0 %2353 }
 0x334   : > { %v2360_v16 = vrot.slane %v2354_v28, 4  ;;  %v2423_v62 = vmax.f32 %v2419_v12, %v2421_v22  ;;  %v2424_v20 = vmax.f32 %v2420_v29, %v2422_v61  ;;  %vm322_vm7 = vcmp.ge.s32.totalorder %v314_v7, 1 }
 0x335   : > { %v2396_v54 = vpop.permute.xlu1 %2395  ;;  %vm326_vm10 = vcmp.le.s32.totalorder %v314_v7, 6 }
 0x336   : > { %v2363_v57 = vsel %vm399_vm8, %v2359_v32, %v2360_v16  ;;  %v2403_v6 = vrot.slane %v2396_v54, 4 }
 0x337   : > { %v2364_v10 = vsel %vm681_vm9, %v2352_v59, %v2363_v57 }
 0x338   : > { %2369 = vst [vmem:[#allocation7 + $0x208] sm:$0xff] %v2364_v10  ;;  %v2407_v39 = vsel %vm399_vm8, %v2403_v6, %v2404_v19  ;;  %v2426_v9 = vunpack.c.l.bf16 %v2364_v10  ;;  %v2427_v35 = vunpack.c.h.bf16 %v2364_v10  ;;  %v4489_v19 = vsel %vm326_vm10, 1.0, %v7095_v24 }
 0x339   : > { %v2408_v23 = vsel %vm735_vm13, %v2396_v54, %v2407_v39  ;;  %v6246_v54 = vsel %vm322_vm7, 1.0, %v7095_v24  ;;  %2017 = vrot.lane.b32.xlu0 %v4489_v19, %s5489_s26  ;;  %vm261_vm7 = vcmask 68608   ;;  %vm264_vm10 = vcmask 667208   ;;  %s5502_s26 = smov 46  }
 0x33a   : > { %2413 = vst [vmem:[#allocation7 + $0x228] sm:$0xff] %v2408_v23  ;;  %v2428_v40 = vunpack.c.l.bf16 %v2408_v23  ;;  %v2429_v21 = vunpack.c.h.bf16 %v2408_v23  ;;  %1984 = vrot.lane.b32.xlu1 %v6246_v54, %s5490_s28  ;;  %2038 = vrot.lane.b32.xlu2 %v6246_v54, %s5480_s30  ;;  %v7096_v23 = vmov 0   ;;  %s5494_s30 = smov 55   ;;  %s5503_s28 = smov 64  }
 0x33b   : > { %263 = vst.msk [vmem:[#allocation5 + $0x4] sm:$0xf] %vm261_vm7, %v7096_v23 }
 0x33c   : > { %v2430_v1 = vmax.f32 %v2426_v9, %v2428_v40  ;;  %v2431_v28 = vmax.f32 %v2427_v35, %v2429_v21  ;;  %266 = vst.msk [vmem:[#allocation5 + $0x4] sm:$0xf] %vm264_vm10, %v7096_v23 }
 0x33d   : > { %268 = vst.msk [vmem:[#allocation5 + $0x4] sm:$0xf] %vm267_vm15, %v7096_v23 }
 0x33e   : > { %v2437_v32 = vmax.f32 %v2423_v62, %v2430_v1  ;;  %v2438_v59 = vmax.f32 %v2424_v20, %v2431_v28  ;;  %262 = vst.msk [vmem:[#allocation5] sm:$0xf] %vm261_vm7, %v7096_v23  ;;  %vm1941_vm7 = vcmask 519168  }
 0x33f   : > { %265 = vst.msk [vmem:[#allocation5] sm:$0xf] %vm264_vm10, %v7096_v23  ;;  %vm2617_vm10 = vcmask 1043968  }
 0x340   : > { %v2439_v16 = vpack.c.bf16 %v2437_v32, %v2437_v32  ;;  %v2440_v57 = vpack.c.bf16 %v2438_v59, %v2438_v59 }
 0x342   : > { %2577 = vmatmul.bf16.vlgmr.msra.gmra.mxu0 %v2439_v16  ;;  %2590 = vmatmul.bf16.vlgmr.msrb.gmra.mxu3 %v2440_v57 }
 0x343   : > { %1962 = vrot.lane.b32.xlu2 %v4489_v19, %s5475_s25  ;;  %s5492_s25 = smov 47  }
 0x344   : > { %v2717_v12 = vld [vmem:[#allocation5 + $0x4] sm:$0xf] }
 0x345   : > { %2722 = vrot.lane.b32.xlu1 %v2717_v12, %s5492_s25  ;;  %v2056_v29 = vld [vmem:[#allocation5 + $0x4] sm:$0xf] }
 0x346   : > { %v2002_v9 = vld [vmem:[#allocation5 + $0x4] sm:$0xf] }
 0x347   : > { %v2669_v28 = vld [vmem:[#allocation5 + $0x4] sm:$0xf] }
 0x348   : > { %v1945_v32 = vld [vmem:[#allocation5 + $0x4] sm:$0xf] }
 0x34b   : > { %2061 = vrot.lane.b32.xlu2 %v2056_v29, %s5482_s7 }
 0x384   : > { %v1922_v6 = vpop.f32.mrf.mxu1 }
 0x38a   : > { %v1909_v10 = vpop.f32.mrf.mxu2 }
 0x38b   : > { %v1923_v2 = vadd.f32 %v1922_v6, %v1909_v10 }
 0x38c   : > { %v1924_v39 = vpop.f32.mrf.mxu1 }
 0x38d   : > { %v1926_v22 = vpack.c.bf16 %v1923_v2, %v1923_v2 }
 0x38f   : > { %1928 = vrot.lane.b32.xlu0 %v1926_v22, %s5491_s14 }
 0x392   : > { %v1911_v61 = vpop.f32.mrf.mxu2 }
 0x394   : > { %v6267_v16 = vpop.permute.xlu2 %2038 }
 0x397   : > { %2071 = vrot.lane.b32.xlu0 %v4489_v19, %s5477_s27  ;;  %s5493_s27 = smov 119  }
 0x398   : > { %2007 = vrot.lane.b32.xlu2 %v2002_v9, %s5493_s27 }
 0x39d   : > { %v6270_v7 = vpop.permute.xlu2 %1962 }
 0x3a0   : > { %1950 = vrot.lane.b32.xlu2 %v1945_v32, %s5483_s8 }
 0x3a5   : > { %v2062_v2 = vpop.permute.xlu2 %2061 }
 0x3a6   : > { %2066 = vst.msk [vmem:[#allocation8 + $0x3c] sm:$0xf] %vm1941_vm7, %v2062_v2 }
 0x3ab   : > { %v6265_v59 = vpop.permute.xlu0 %2017 }
 0x3ac   : > { %v6282_v12 = vpop.permute.xlu1 %1984 }
 0x3b7   : > { %v2723_v32 = vpop.permute.xlu1 %2722 }
 0x3b8   : > { %2727 = vst.msk [vmem:[#allocation8 + $0x3c] sm:$0xf] %vm2617_vm10, %v2723_v32 }
 0x3bf   : > { %v2578_v40 = vpop.f32.mrf.mxu0 }
 0x3c5   : > { %v2591_v35 = vpop.f32.mrf.mxu3 }
 0x3c6   : > { %v2592_v21 = vadd.f32 %v2591_v35, %v2578_v40 }
 0x3c7   : > { %v2580_v62 = vpop.f32.mrf.mxu0 }
 0x3c8   : > { %v2595_v1 = vpack.c.bf16 %v2592_v21, %v2592_v21 }
 0x3ca   : > { %2597 = vrot.lane.b32.xlu1 %v2595_v1, %s5491_s14 }
 0x3cd   : > { %v2593_v20 = vpop.f32.mrf.mxu3 }
 0x3d2   : > { %2674 = vrot.lane.b32.xlu1 %v2669_v28, %s5494_s30 }
 0x401   : > { %v1929_v57 = vpop.permute.xlu0 %1928 }
 0x402   : > { %1931 = vst.msk [vmem:[#allocation5] sm:$0xf] %vm267_vm15, %v1929_v57 }
 0x409   : > { %v5349_v24 = vld [vmem:[#allocation5] sm:$0xff]  }
 0x40a   : > { %v2055_v19 = vld [vmem:[#allocation5] sm:$0xf]  ;;  %v6273_v6 = vunpack.c.h.bf16 %v5349_v24  ;;  %v6275_v10 = vunpack.c.l.bf16 %v5349_v24 }
 0x40b   : > { %2059 = vrot.lane.b32.xlu1 %v2055_v19, %s5482_s7  ;;  %v2001_v9 = vld [vmem:[#allocation5] sm:$0xf] }
 0x40c   : > { %v2042_v39 = vmul.f32 %v6273_v6, %v6267_v16  ;;  %v2041_v22 = vmul.f32 %v6275_v10, %v6267_v16  ;;  %v1937_v29 = vmul.f32 %v6275_v10, %v6246_v54  ;;  %v1938_v40 = vmul.f32 %v6273_v6, %v6246_v54  ;;  %v1944_v57 = vld [vmem:[#allocation5] sm:$0xf] }
 0x40d   : > { %v2020_v35 = vmul.f32 %v6275_v10, %v6265_v59  ;;  %v1987_v21 = vmul.f32 %v6275_v10, %v6282_v12  ;;  %v1988_v24 = vmul.f32 %v6273_v6, %v6282_v12  ;;  %v2021_v19 = vmul.f32 %v6273_v6, %v6265_v59 }
 0x40e   : > { %v2044_v61 = vpack.c.bf16 %v2042_v39, %v2042_v39  ;;  %v2043_v23 = vpack.c.bf16 %v2041_v22, %v2041_v22  ;;  %v1939_v62 = vpack.c.bf16 %v1937_v29, %v1937_v29  ;;  %v1940_v1 = vpack.c.bf16 %v1938_v40, %v1938_v40 }
 0x40f   : > { %v2022_v20 = vpack.c.bf16 %v2020_v35, %v2020_v35  ;;  %v1989_v28 = vpack.c.bf16 %v1987_v21, %v1987_v21  ;;  %v1990_v2 = vpack.c.bf16 %v1988_v24, %v1988_v24  ;;  %v2023_v39 = vpack.c.bf16 %v2021_v19, %v2021_v19 }
 0x410   : > { %2049 = vrot.lane.b32.xlu0 %v2044_v61, %s5487_s12  ;;  %2047 = vrot.lane.b32.xlu2 %v2043_v23, %s5487_s12  ;;  %1942 = vst.msk [vmem:[#allocation8] sm:$0xf] %vm1941_vm7, %v1939_v62  ;;  %v1965_v22 = vmul.f32 %v6275_v10, %v6270_v7  ;;  %v1966_v61 = vmul.f32 %v6273_v6, %v6270_v7 }
 0x411   : > { %1943 = vst.msk [vmem:[#allocation8 + $0x4] sm:$0xf] %vm1941_vm7, %v1940_v1 }
 0x412   : > { %v1967_v23 = vpack.c.bf16 %v1965_v22, %v1965_v22  ;;  %v1968_v29 = vpack.c.bf16 %v1966_v61, %v1966_v61 }
 0x413   : > { %2005 = vrot.lane.b32.xlu1 %v2001_v9, %s5493_s27  ;;  %v2008_v9 = vpop.permute.xlu2 %2007 }
 0x414   : > { %2012 = vst.msk [vmem:[#allocation8 + $0x24] sm:$0xf] %vm1941_vm7, %v2008_v9 }
 0x418   : > { %2026 = vrot.lane.b32.xlu0 %v2022_v20, %s5495_s15  ;;  %1993 = vrot.lane.b32.xlu2 %v1989_v28, %s5496_s16 }
 0x41b   : > { %1948 = vrot.lane.b32.xlu1 %v1944_v57, %s5483_s8  ;;  %v1951_v20 = vpop.permute.xlu2 %1950 }
 0x41c   : > { %1955 = vst.msk [vmem:[#allocation8 + $0xc] sm:$0xf] %vm1941_vm7, %v1951_v20 }
 0x420   : > { %1995 = vrot.lane.b32.xlu0 %v1990_v2, %s5496_s16  ;;  %s231_s16 = scalar_lea.vmem %s7079_s5, %s5179_s21 }
 0x423   : > { %2028 = vrot.lane.b32.xlu1 %v2023_v39, %s5495_s15 }
 0x428   : > { %1971 = vrot.lane.b32.xlu0 %v1967_v23, %s5486_s11 }
 0x42b   : > { %1973 = vrot.lane.b32.xlu1 %v1968_v29, %s5486_s11 }
 0x43c   : > { %v2598_v40 = vpop.permute.xlu1 %2597 }
 0x43d   : > { %2600 = vst.msk [vmem:[#allocation5] sm:$0xf] %vm267_vm15, %v2598_v40  ;;  %v2621_v40 = vld [vmem:[#allocation5 + $0x4] sm:$0xf]  ;;  %vm2925_vm15 = vcmask 523264  }
 0x444   : > { %v2716_v35 = vld [vmem:[#allocation5] sm:$0xf]  ;;  %v2675_v9 = vpop.permute.xlu1 %2674 }
 0x445   : > { %v5389_v21 = vld [vmem:[#allocation5] sm:$0xff]   ;;  %2720 = vrot.lane.b32.xlu0 %v2716_v35, %s5492_s25  ;;  %2679 = vst.msk [vmem:[#allocation8 + $0x24] sm:$0xf] %vm2617_vm10, %v2675_v9 }
 0x446   : > { %v5391_v62 = vunpack.c.h.bf16 %v5389_v21  ;;  %v5390_v1 = vunpack.c.l.bf16 %v5389_v21  ;;  %v2668_v19 = vld [vmem:[#allocation5] sm:$0xf]  ;;  %v2072_v21 = vpop.permute.xlu0 %2071 }
 0x447   : > { %v2074_v20 = vmul.f32 %v6275_v10, %v2072_v21 }
 0x448   : > { %v2703_v28 = vmul.f32 %v5391_v62, %v6267_v16  ;;  %v2702_v32 = vmul.f32 %v5390_v1, %v6267_v16  ;;  %v2684_v2 = vmul.f32 %v5390_v1, %v6265_v59  ;;  %v2654_v39 = vmul.f32 %v5390_v1, %v6282_v12 }
 0x449   : > { %v2685_v22 = vmul.f32 %v5391_v62, %v6265_v59  ;;  %v2655_v29 = vmul.f32 %v5391_v62, %v6282_v12  ;;  %v2620_v59 = vld [vmem:[#allocation5] sm:$0xf] }
 0x44a   : > { %v2705_v57 = vpack.c.bf16 %v2703_v28, %v2703_v28  ;;  %v2704_v24 = vpack.c.bf16 %v2702_v32, %v2702_v32  ;;  %v2686_v61 = vpack.c.bf16 %v2684_v2, %v2684_v2  ;;  %v2656_v23 = vpack.c.bf16 %v2654_v39, %v2654_v39 }
 0x44b   : > { %v2687_v16 = vpack.c.bf16 %v2685_v22, %v2685_v22  ;;  %v2657_v35 = vpack.c.bf16 %v2655_v29, %v2655_v29  ;;  %v2636_v28 = vmul.f32 %v5390_v1, %v6270_v7  ;;  %v2637_v32 = vmul.f32 %v5391_v62, %v6270_v7 }
 0x44c   : > { %2710 = vrot.lane.b32.xlu2 %v2705_v57, %s5497_s17  ;;  %2708 = vrot.lane.b32.xlu1 %v2704_v24, %s5497_s17  ;;  %v2076_v57 = vpack.c.bf16 %v2074_v20, %v2074_v20  ;;  %v2605_v2 = vmul.f32 %v5390_v1, %v6246_v54  ;;  %v2606_v39 = vmul.f32 %v5391_v62, %v6246_v54  ;;  %v1589_v20 = vld [vmem:[#allocation3 + $0x14] sm:$0xf] }
 0x44d   : > { %2672 = vrot.lane.b32.xlu0 %v2668_v19, %s5494_s30  ;;  %v2638_v24 = vpack.c.bf16 %v2636_v28, %v2636_v28  ;;  %v2639_v12 = vpack.c.bf16 %v2637_v32, %v2637_v32  ;;  %v2733_v19 = vmul.f32 %v5391_v62, %v2072_v21  ;;  %v2732_v29 = vmul.f32 %v5390_v1, %v2072_v21 }
 0x44e   : > { %v2608_v7 = vpack.c.bf16 %v2606_v39, %v2606_v39  ;;  %v7097_v62 = vpack.c.bf16 %v6047_v30, %v6043_v58  ;;  %v1636_v28 = vunpack.c.l.bf16 %v6086_v42  ;;  %v338_v58 = vld [vmem:[%s7076_s2 + $0x18] sm:$0xff]  ;;  %v1644_v42 = vmul.f32 %v5640_v38, %v5690_v26 }
 0x44f   : > { %v2735_v22 = vpack.c.bf16 %v2733_v19, %v2733_v19  ;;  %v1525_v38 = vmul.f32 %v6030_v46, %v5695_v27 }
 0x454   : > { %2690 = vrot.lane.b32.xlu2 %v2686_v61, %s5498_s19  ;;  %2660 = vrot.lane.b32.xlu1 %v2656_v23, %s5499_s22  ;;  %v2607_v61 = vpack.c.bf16 %v2605_v2, %v2605_v2  ;;  %v2075_v23 = vmul.f32 %v6273_v6, %v2072_v21  ;;  %v337_v6 = vld [vmem:[%s7076_s2 + $0x10] sm:$0xff]  ;;  %v1595_v21 = vunpack.c.l.bf16 %v1589_v20  ;;  %v1476_v20 = vunpack.c.l.bf16 %v6082_v63 }
 0x455   : > { %2692 = vrot.lane.b32.xlu0 %v2687_v16, %s5498_s19  ;;  %v1633_v16 = vld [vmem:[#allocation3 + $0x14] sm:$0xf] }
 0x456   : > { %v2077_v9 = vpack.c.bf16 %v2075_v23, %v2075_v23  ;;  %v1601_v32 = vmul.f32 %v5626_v31, %v1595_v21  ;;  %v1520_v23 = vunpack.c.l.bf16 %v6084_v56 }
 0x45c   : > { %2662 = vrot.lane.b32.xlu2 %v2657_v35, %s5499_s22  ;;  %2626 = vrot.lane.b32.xlu1 %v2621_v40, %s5500_s23  ;;  %v1639_v40 = vunpack.c.l.bf16 %v1633_v16  ;;  %v2734_v35 = vpack.c.bf16 %v2732_v29, %v2732_v29  ;;  %v6367_v29 = vld [vmem:[#allocation3 + $0xc] sm:$0xff] }
 0x45d   : > { %2624 = vrot.lane.b32.xlu0 %v2620_v59, %s5500_s23 }
 0x45e   : > { %v1645_v59 = vmul.f32 %v5650_v52, %v1639_v40 }
 0x460   : > { %v1649_v1 = vpack.c.bf16 %v1645_v59, %v1645_v59  ;;  %v1705_v59 = vld [vmem:[#allocation3 + $0x14] sm:$0xf] }
 0x464   : > { %2080 = vrot.lane.b32.xlu1 %v2076_v57, %s5484_s9  ;;  %2642 = vrot.lane.b32.xlu2 %v2638_v24, %s5501_s24  ;;  %v1642_v57 = vmul.f32 %v5650_v52, %v1636_v28  ;;  %v1643_v24 = vmul.f32 %v5676_v14, %v5638_v37  ;;  %v1524_v37 = vmul.f32 %v5678_v15, %v6027_v43 }
 0x465   : > { %2644 = vrot.lane.b32.xlu0 %v2639_v12, %s5501_s24  ;;  %v1605_v12 = vpack.c.bf16 %v1601_v32, %v1601_v32  ;;  %v1482_v28 = vmul.f32 %v5654_v55, %v1476_v20 }
 0x466   : > { %v1647_v19 = vpack.c.bf16 %v1642_v57, %v1642_v57  ;;  %v6355_v39 = vpack.c.bf16 %v1644_v42, %v1643_v24  ;;  %v2300_v24 = vld [vmem:[#allocation3 + $0x8] sm:$0xf]  ;;  %v1445_v42 = vld [vmem:[#allocation3 + $0x14] sm:$0xf] }
 0x46a   : > { %v2048_v10 = vpop.permute.xlu2 %2047 }
 0x46b   : > { %2053 = vst.msk [vmem:[#allocation8 + $0x30] sm:$0xf] %vm1941_vm7, %v2048_v10  ;;  %v1530_v10 = vpack.c.bf16 %v1525_v38, %v1524_v37 }
 0x46c   : > { %2740 = vrot.lane.b32.xlu1 %v2735_v22, %s5502_s26  ;;  %2611 = vrot.lane.b32.xlu2 %v2607_v61, %s5503_s28  ;;  %v1517_v61 = vld [vmem:[#allocation3 + $0x14] sm:$0xf] }
 0x46d   : > { %2613 = vrot.lane.b32.xlu0 %v2608_v7, %s5503_s28  ;;  %v1523_v7 = vunpack.c.l.bf16 %v1517_v61 }
 0x46f   : > { %v1529_v46 = vmul.f32 %v5652_v53, %v1523_v7  ;;  %v2230_v7 = vld [vmem:[#allocation3 + $0x14] sm:$0xf] }
 0x471   : > { %v1533_v56 = vpack.c.bf16 %v1529_v46, %v1529_v46 }
 0x472   : > { %v1994_v54 = vpop.permute.xlu2 %1993 }
 0x473   : > { %1999 = vst.msk [vmem:[#allocation8 + $0x18] sm:$0xf] %vm1941_vm7, %v1994_v54  ;;  %v1561_v54 = vld [vmem:[#allocation3 + $0x14] sm:$0xf] }
 0x474   : > { %1654 = vrot.lane.b32.xlu1 %v7097_v62, %s5485_s10  ;;  %2082 = vrot.lane.b32.xlu2 %v2077_v9, %s5484_s9  ;;  %v1526_v9 = vmul.f32 %v5652_v53, %v1520_v23 }
 0x475   : > { %2738 = vrot.lane.b32.xlu0 %v2734_v35, %s5502_s26 }
 0x476   : > { %v1531_v40 = vpack.c.bf16 %v1526_v9, %v1526_v9 }
 0x47c   : > { %1660 = vrot.lane.b32.xlu1 %v1649_v1, %s5485_s10  ;;  %2766 = vperm.xlu2 %5460, %v337_v6   ;;  %v1711_v1 = vunpack.c.l.bf16 %v1705_v59 }
 0x47d   : > { %v2060_v30 = vpop.permute.xlu1 %2059  ;;  %2771 = vperm.xlu0 %5461, %v338_v58  }
 0x47e   : > { %2065 = vst.msk [vmem:[#allocation8 + $0x38] sm:$0xf] %vm1941_vm7, %v2060_v30  ;;  %v1717_v58 = vmul.f32 %v5680_v17, %v1711_v1  ;;  %v1487_v30 = vpack.c.bf16 %v1482_v28, %v1482_v28  ;;  %v2194_v1 = vmul.f32 %v6099_v25, %v5695_v27 }
 0x480   : > { %v1721_v63 = vpack.c.bf16 %v1717_v58, %v1717_v58 }
 0x482   : > { %v2050_v2 = vpop.permute.xlu0 %2049 }
 0x483   : > { %2054 = vst.msk [vmem:[#allocation8 + $0x34] sm:$0xf] %vm1941_vm7, %v2050_v2 }
 0x484   : > { %1616 = vrot.lane.b32.xlu1 %v1605_v12, %s5484_s9  ;;  %1656 = vrot.lane.b32.xlu2 %v1647_v19, %s5485_s10  ;;  %v2305_v12 = vunpack.c.l.bf16 %v2300_v24 }
 0x485   : > { %v2006_v22 = vpop.permute.xlu1 %2005  ;;  %1658 = vrot.lane.b32.xlu0 %v6355_v39, %s5485_s10 }
 0x486   : > { %2011 = vst.msk [vmem:[#allocation8 + $0x20] sm:$0xf] %vm1941_vm7, %v2006_v22  ;;  %v2311_v2 = vmul.f32 %v5650_v52, %v2305_v12 }
 0x488   : > { %v2316_v22 = vpack.c.bf16 %v2311_v2, %v2311_v2  ;;  %v5182_v2 = vld [vmem:[%s7075_s1 + $0x20] sm:$0xf0] }
 0x48a   : > { %v2027_v16 = vpop.permute.xlu0 %2026 }
 0x48b   : > { %2032 = vst.msk [vmem:[#allocation8 + $0x28] sm:$0xf] %vm1941_vm7, %v2027_v16 }
 0x48c   : > { %1538 = vrot.lane.b32.xlu1 %v1530_v10, %s5487_s12  ;;  %1570 = vrot.lane.b32.xlu2 %v6367_v29, %s5482_s7 }
 0x48d   : > { %v1949_v43 = vpop.permute.xlu1 %1948  ;;  %1614 = vrot.lane.b32.xlu0 %v5646_v41, %s5484_s9 }
 0x48e   : > { %1954 = vst.msk [vmem:[#allocation8 + $0x8] sm:$0xf] %vm1941_vm7, %v1949_v43 }
 0x492   : > { %v1996_v62 = vpop.permute.xlu0 %1995 }
 0x493   : > { %2000 = vst.msk [vmem:[#allocation8 + $0x1c] sm:$0xf] %vm1941_vm7, %v1996_v62 }
 0x494   : > { %1544 = vrot.lane.b32.xlu1 %v1533_v56, %s5487_s12  ;;  %1540 = vrot.lane.b32.xlu2 %v1531_v40, %s5487_s12 }
 0x495   : > { %v2029_v35 = vpop.permute.xlu1 %2028  ;;  %1572 = vrot.lane.b32.xlu0 %v1561_v54, %s5482_s7  ;;  %v2346_v54 = vld [vmem:[#allocation3 + $0x14] sm:$0xf] }
 0x496   : > { %2033 = vst.msk [vmem:[#allocation8 + $0x2c] sm:$0xf] %vm1941_vm7, %v2029_v35 }
 0x49a   : > { %v1972_v6 = vpop.permute.xlu0 %1971 }
 0x49b   : > { %1977 = vst.msk [vmem:[#allocation8 + $0x10] sm:$0xf] %vm1941_vm7, %v1972_v6  ;;  %v2193_v6 = vmul.f32 %v5678_v15, %v6094_v48 }
 0x49c   : > { %1730 = vrot.lane.b32.xlu2 %v5745_v18, %s5488_s13 }
 0x49d   : > { %v1974_v21 = vpop.permute.xlu1 %1973  ;;  %1542 = vrot.lane.b32.xlu0 %v5739_v5, %s5487_s12  ;;  %v2199_v58 = vpack.c.bf16 %v2194_v1, %v2193_v6  ;;  %v5260_v1 = vld [vmem:[%s7078_s4 + $0x4] sm:$0xf] }
 0x49e   : > { %1978 = vst.msk [vmem:[#allocation8 + $0x14] sm:$0xf] %vm1941_vm7, %v1974_v21  ;;  %v2186_v21 = vld [vmem:[#allocation3 + $0x14] sm:$0xf] }
 0x4a4   : > { %1496 = vrot.lane.b32.xlu2 %v1487_v30, %s5486_s11  ;;  %v2192_v30 = vunpack.c.l.bf16 %v2186_v21  ;;  %v4816_v21 = vld [vmem:[%s7078_s4 + $0x8] sm:$0xf0] }
 0x4a5   : > { %1732 = vrot.lane.b32.xlu0 %v1721_v63, %s5488_s13 }
 0x4a6   : > { %v2711_v32 = vpop.permute.xlu2 %2710  ;;  %v2198_v25 = vmul.f32 %v5652_v53, %v2192_v30 }
 0x4a7   : > { %2715 = vst.msk [vmem:[#allocation8 + $0x34] sm:$0xf] %vm2617_vm10, %v2711_v32 }
 0x4a8   : > { %v2202_v24 = vpack.c.bf16 %v2198_v25, %v2198_v25  ;;  %v4872_v25 = vld [vmem:[%s7078_s4 + $0x30] sm:$0xf] }
 0x4ac   : > { %1450 = vrot.lane.b32.xlu2 %v6024_v49, %s5483_s8 }
 0x4ad   : > { %1498 = vrot.lane.b32.xlu0 %v5749_v13, %s5486_s11 }
 0x4ae   : > { %v2691_v57 = vpop.permute.xlu2 %2690 }
 0x4af   : > { %2696 = vst.msk [vmem:[#allocation8 + $0x28] sm:$0xf] %vm2617_vm10, %v2691_v57 }
 0x4b4   : > { %1456 = vrot.lane.b32.xlu2 %v1445_v42, %s5483_s8 }
 0x4b5   : > { %1686 = vrot.lane.b32.xlu0 %v6367_v29, %s5479_s29 }
 0x4b6   : > { %v2663_v19 = vpop.permute.xlu2 %2662 }
 0x4b7   : > { %2667 = vst.msk [vmem:[#allocation8 + $0x1c] sm:$0xf] %vm2617_vm10, %v2663_v19  ;;  %v2721_v49 = vpop.permute.xlu0 %2720  ;;  %v4769_v19 = vld [vmem:[%s7075_s1 + $0x18] sm:$0xf] }
 0x4b8   : > { %2726 = vst.msk [vmem:[#allocation8 + $0x38] sm:$0xf] %vm2617_vm10, %v2721_v49 }
 0x4bc   : > { %2325 = vrot.lane.b32.xlu2 %v2316_v22, %s5485_s10 }
 0x4bd   : > { %1452 = vrot.lane.b32.xlu0 %v6080_v44, %s5483_s8 }
 0x4be   : > { %v2643_v37 = vpop.permute.xlu2 %2642  ;;  %v2709_v38 = vpop.permute.xlu1 %2708 }
 0x4bf   : > { %2648 = vst.msk [vmem:[#allocation8 + $0x10] sm:$0xf] %vm2617_vm10, %v2643_v37  ;;  %v2673_v61 = vpop.permute.xlu0 %2672  ;;  %v5258_v10 = vld [vmem:[#allocation8 + $0x38] sm:$0xff] }
 0x4c0   : > { %2714 = vst.msk [vmem:[#allocation8 + $0x30] sm:$0xf] %vm2617_vm10, %v2709_v38  ;;  %2840 = vmatpush.bf16.msra.mxu2 %v5258_v10  ;;  %v4770_v10 = vor.u32 %v5182_v2, %v4769_v19  ;;  %v5273_v19 = vld [vmem:[%s7078_s4 + $0x24] sm:$0xf0] }
 0x4c1   : > { %2678 = vst.msk [vmem:[#allocation8 + $0x20] sm:$0xf] %vm2617_vm10, %v2673_v61 }
 0x4c4   : > { %2241 = vrot.lane.b32.xlu2 %v2230_v7, %s5482_s7 }
 0x4c5   : > { %2327 = vrot.lane.b32.xlu0 %v6355_v39, %s5485_s10  ;;  %v2140_v39 = vld [vmem:[#allocation3 + $0x8] sm:$0xf] }
 0x4c6   : > { %v2612_v23 = vpop.permute.xlu2 %2611  ;;  %v2661_v16 = vpop.permute.xlu1 %2660  ;;  %v2145_v62 = vunpack.c.l.bf16 %v2140_v39 }
 0x4c7   : > { %2618 = vst.msk [vmem:[#allocation8] sm:$0xf] %vm2617_vm10, %v2612_v23  ;;  %v5257_v44 = vld [vmem:[#allocation8 + $0x30] sm:$0xff]  ;;  %v2693_v43 = vpop.permute.xlu0 %2692  ;;  %v5266_v23 = vld [vmem:[%s7078_s4 + $0x34] sm:$0xf] }
 0x4c8   : > { %2666 = vst.msk [vmem:[#allocation8 + $0x18] sm:$0xf] %vm2617_vm10, %v2661_v16  ;;  %2841 = vmatpush.bf16.msra.mxu2 %v5257_v44  ;;  %v2151_v35 = vmul.f32 %v5654_v55, %v2145_v62  ;;  %v4840_v16 = vld [vmem:[%s7078_s4 + $0x38] sm:$0xf0] }
 0x4c9   : > { %2697 = vst.msk [vmem:[#allocation8 + $0x2c] sm:$0xf] %vm2617_vm10, %v2693_v43  ;;  %v5181_v43 = vld [vmem:[%s7075_s1 + $0x1c] sm:$0xf] }
 0x4cc   : > { %2211 = vrot.lane.b32.xlu2 %v5739_v5, %s5487_s12  ;;  %v5255_v5 = vld [vmem:[#allocation8 + $0x20] sm:$0xff] }
 0x4cd   : > { %2283 = vrot.lane.b32.xlu0 %v5646_v41, %s5484_s9 }
 0x4ce   : > { %v2083_v46 = vpop.permute.xlu2 %2082  ;;  %v2627_v9 = vpop.permute.xlu1 %2626 }
 0x4cf   : > { %2087 = vst.msk [vmem:[#allocation8 + $0x44] sm:$0xf] %vm1941_vm7, %v2083_v46  ;;  %v2625_v56 = vpop.permute.xlu0 %2624  ;;  %v5254_v20 = vld [vmem:[#allocation8 + $0x18] sm:$0xff]  ;;  %v4771_v46 = vld [vmem:[%s7075_s1 + $0x24] sm:$0xf0] }
 0x4d0   : > { %2631 = vst.msk [vmem:[#allocation8 + $0xc] sm:$0xf] %vm2617_vm10, %v2627_v9  ;;  %v5256_v40 = vld [vmem:[#allocation8 + $0x28] sm:$0xff]  ;;  %v4843_v9 = vor.u32 %v5266_v23, %v4840_v16  ;;  %v5271_v23 = vld [vmem:[%s7078_s4 + $0x14] sm:$0xf0] }
 0x4d1   : > { %2630 = vst.msk [vmem:[#allocation8 + $0x8] sm:$0xf] %vm2617_vm10, %v2625_v56  ;;  %2842 = vmatpush.bf16.msra.mxu2 %v5256_v40  ;;  %v5264_v40 = vld [vmem:[%s7078_s4 + $0x24] sm:$0xf] }
 0x4d4   : > { %2357 = vrot.lane.b32.xlu2 %v2346_v54, %s5479_s29  ;;  %v4774_v54 = vor.u32 %v5181_v43, %v4771_v46 }
 0x4d5   : > { %2399 = vrot.lane.b32.xlu0 %v5745_v18, %s5488_s13  ;;  %2843 = vmatpush.bf16.msra.mxu2 %v5255_v5  ;;  %v2156_v18 = vpack.c.bf16 %v2151_v35, %v2151_v35  ;;  %v4824_v35 = vld [vmem:[%s7078_s4 + $0x18] sm:$0xf0] }
 0x4d6   : > { %v2081_v41 = vpop.permute.xlu1 %2080  ;;  %v6434_v28 = vpop.permute.xlu2 %2766 }
 0x4d7   : > { %2086 = vst.msk [vmem:[#allocation8 + $0x40] sm:$0xf] %vm1941_vm7, %v2081_v41  ;;  %v2645_v59 = vpop.permute.xlu0 %2644  ;;  %v5262_v41 = vld [vmem:[%s7078_s4 + $0x14] sm:$0xf] }
 0x4d8   : > { %2649 = vst.msk [vmem:[#allocation8 + $0x14] sm:$0xf] %vm2617_vm10, %v2645_v59  ;;  %v5252_v42 = vld [vmem:[#allocation8 + $0x8] sm:$0xff] }
 0x4d9   : > { %2844 = vmatpush.bf16.msra.mxu2 %v5254_v20  ;;  %v4827_v20 = vor.u32 %v5262_v41, %v4824_v35 }
 0x4dc   : > { %2165 = vrot.lane.b32.xlu2 %v2156_v18, %s5486_s11 }
 0x4dd   : > { %2207 = vrot.lane.b32.xlu0 %v2199_v58, %s5487_s12 }
 0x4de   : > { %v2741_v63 = vpop.permute.xlu1 %2740  ;;  %v1657_v57 = vpop.permute.xlu2 %1656 }
 0x4df   : > { %2745 = vst.msk [vmem:[#allocation8 + $0x44] sm:$0xf] %vm2617_vm10, %v2741_v63  ;;  %v2614_v48 = vpop.permute.xlu0 %2613  ;;  %v5253_v32 = vld [vmem:[#allocation8 + $0x10] sm:$0xff]  ;;  %v1663_v49 = vrot.slane %v1657_v57, 4  ;;  %v4819_v63 = vor.u32 %v5260_v1, %v4816_v21  ;;  %v5275_v57 = vld [vmem:[%s7078_s4 + $0x34] sm:$0xf0] }
 0x4e0   : > { %2619 = vst.msk [vmem:[#allocation8 + $0x4] sm:$0xf] %vm2617_vm10, %v2614_v48  ;;  %2845 = vmatpush.bf16.msra.mxu2 %v5253_v32  ;;  %v5106_v1 = vld [vmem:[#allocation7 + $0x1c0] sm:$0xf] }
 0x4e4   : > { %2846 = vmatpush.bf16.msra.mxu2 %v5252_v42  ;;  %v4873_v42 = vor.u32 %v5275_v57, %v4872_v25  ;;  %v5090_v57 = vld [vmem:[#allocation7 + $0x1a0] sm:$0xf] }
 0x4e5   : > { %2213 = vrot.lane.b32.xlu0 %v2202_v24, %s5487_s12 }
 0x4e6   : > { %v1655_v12 = vpop.permute.xlu1 %1654  ;;  %v1571_v62 = vpop.permute.xlu2 %1570  ;;  %3352 = vmatpush.bf16.msra.mxu3 %v4873_v42 }
 0x4e7   : > { %v1662_v22 = vrot.slane %v1655_v12, 4  ;;  %v2739_v37 = vpop.permute.xlu0 %2738  ;;  %v5251_v38 = vld [vmem:[#allocation8] sm:$0xff] }
 0x4e8   : > { %2744 = vst.msk [vmem:[#allocation8 + $0x40] sm:$0xf] %vm2617_vm10, %v2739_v37  ;;  %2847 = vmatpush.bf16.msra.mxu2 %v5251_v38 }
 0x4e9   : > { %v1666_v61 = vsel %vm399_vm8, %v1662_v22, %v1663_v49 }
 0x4ea   : > { %v1667_v7 = vsel %vm652_vm14, %v1655_v12, %v1666_v61  ;;  %v4864_v12 = vld [vmem:[%s7078_s4 + $0x20] sm:$0xf] }
 0x4eb   : > { %1672 = vst [vmem:[#allocation7 + $0x1e0] sm:$0xff] %v1667_v7  ;;  %2848 = vmatmul.bf16.vlgmr.msra.gmra.mxu2 %v4770_v10  ;;  %v4865_v37 = vor.u32 %v5273_v19, %v4864_v12  ;;  %v4856_v7 = vld [vmem:[%s7078_s4 + $0x10] sm:$0xf] }
 0x4ed   : > { %2167 = vrot.lane.b32.xlu0 %v5749_v13, %s5486_s11  ;;  %v4832_v13 = vld [vmem:[%s7078_s4 + $0x28] sm:$0xf0]  ;;  %3353 = vmatpush.bf16.msra.mxu3 %v4865_v37 }
 0x4ee   : > { %v1661_v44 = vpop.permute.xlu1 %1660  ;;  %v4835_v5 = vor.u32 %v5264_v40, %v4832_v13  ;;  %v1541_v48 = vpop.permute.xlu2 %1540  ;;  %v4848_v13 = vld [vmem:[%s7078_s4] sm:$0xf] }
 0x4ef   : > { %v6465_v39 = vpop.permute.xlu0 %2771  ;;  %v5259_v56 = vld [vmem:[#allocation8 + $0x40] sm:$0xff]  ;;  %v1665_v18 = vrot.slane %v1661_v44, 4  ;;  %v1547_v2 = vrot.slane %v1541_v48, 4 }
 0x4f0   : > { %2861 = vmatpush.bf16.msrb.mxu1 %v5259_v56  ;;  %v4857_v56 = vor.u32 %v5271_v23, %v4856_v7  ;;  %v5154_v23 = vld [vmem:[#allocation7 + $0x220] sm:$0xf] }
 0x4f2   : > { %v5122_v46 = vld [vmem:[#allocation7 + $0x1e0] sm:$0xf]  ;;  %3354 = vmatpush.bf16.msra.mxu3 %v4857_v56 }
 0x4f3   : > { %4811 = vmatmul.msk.bf16.vlgmr.msrb.gmra.mxu1 %vm483_vm1, %v4774_v54  ;;  %v5269_v54 = vld [vmem:[%s7078_s4 + $0x4] sm:$0xf0] }
 0x4f4   : > { %2947 = vmatpush.bf16.msra.mxu1 %v4843_v9  ;;  %v4849_v35 = vor.u32 %v5269_v54, %v4848_v13 }
 0x4f6   : > { %v1617_v59 = vpop.permute.xlu1 %1616  ;;  %3355 = vmatpush.bf16.msra.mxu3 %v4849_v35  ;;  %v1731_v12 = vpop.permute.xlu2 %1730 }
 0x4f7   : > { %v1659_v6 = vpop.permute.xlu0 %1658  ;;  %v1621_v38 = vrot.slane %v1617_v59, 4  ;;  %v1736_v19 = vrot.slane %v1731_v12, 4 }
 0x4f8   : > { %2948 = vmatpush.bf16.msra.mxu1 %v4835_v5  ;;  %v1664_v58 = vrot.slane %v1659_v6, 4  ;;  %v1576_v5 = vrot.slane %v1571_v62, 4 }
 0x4fa   : > { %v1668_v30 = vsel %vm399_vm8, %v1664_v58, %v1665_v18 }
 0x4fb   : > { %v1669_v32 = vsel %vm652_vm14, %v1659_v6, %v1668_v30 }
 0x4fc   : > { %2949 = vmatpush.bf16.msra.mxu1 %v4827_v20  ;;  %1673 = vst [vmem:[#allocation7 + $0x1f0] sm:$0xff] %v1669_v32 }
 0x4fe   : > { %v1539_v24 = vpop.permute.xlu1 %1538  ;;  %v6524_v7 = vpop.permute.xlu2 %1496 }
 0x4ff   : > { %v1546_v49 = vrot.slane %v1539_v24, 4  ;;  %v1615_v22 = vpop.permute.xlu0 %1614 }
 0x500   : > { %2950 = vmatpush.bf16.msra.mxu1 %v4819_v63  ;;  %v1620_v10 = vrot.slane %v1615_v22, 4 }
 0x501   : > { %v1550_v61 = vsel %vm399_vm8, %v1546_v49, %v1547_v2 }
 0x502   : > { %v1551_v16 = vsel %vm515_vm4, %v1539_v24, %v1550_v61  ;;  %v1624_v44 = vsel %vm399_vm8, %v1620_v10, %v1621_v38 }
 0x503   : > { %1556 = vst [vmem:[#allocation7 + $0x180] sm:$0xff] %v1551_v16  ;;  %v1625_v43 = vsel %vm598_vm2, %v1615_v22, %v1624_v44  ;;  %v5338_v9 = vld [vmem:[#allocation7 + $0x1ec] sm:$0xf0] }
 0x504   : > { %1629 = vst [vmem:[#allocation7 + $0x1d0] sm:$0xff] %v1625_v43  ;;  %v5123_v40 = vor.u32 %v5338_v9, %v5122_v46 }
 0x506   : > { %4177 = vmatpush.bf16.msrb.mxu1 %v5123_v40  ;;  %v1545_v58 = vpop.permute.xlu1 %1544  ;;  %v1451_v46 = vpop.permute.xlu2 %1450 }
 0x507   : > { %v1573_v41 = vpop.permute.xlu0 %1572  ;;  %v1549_v63 = vrot.slane %v1545_v58, 4  ;;  %v1458_v56 = vrot.slane %v1451_v46, 4 }
 0x508   : > { %v1577_v59 = vrot.slane %v1573_v41, 4 }
 0x50a   : > { %v1580_v20 = vsel %vm399_vm8, %v1576_v5, %v1577_v59  ;;  %v5074_v37 = vld [vmem:[#allocation7 + $0x180] sm:$0xf] }
 0x50b   : > { %v1581_v6 = vsel %vm544_vm11, %v1571_v62, %v1580_v20  ;;  %v5334_v21 = vld [vmem:[#allocation7 + $0x1cc] sm:$0xf0] }
 0x50c   : > { %1585 = vst [vmem:[#allocation7 + $0x1b0] sm:$0xff] %v1581_v6  ;;  %v5107_v18 = vor.u32 %v5334_v21, %v5106_v1 }
 0x50e   : > { %4178 = vmatpush.bf16.msrb.mxu1 %v5107_v18  ;;  %v6530_v5 = vpop.permute.xlu2 %1456 }
 0x50f   : > { %v1543_v30 = vpop.permute.xlu0 %1542 }
 0x510   : > { %v1548_v48 = vrot.slane %v1543_v30, 4 }
 0x512   : > { %v1552_v32 = vsel %vm399_vm8, %v1548_v48, %v1549_v63  ;;  %v4838_v63 = vld [vmem:[%s7078_s4 + $0x30] sm:$0xf]  ;;  %v5267_v48 = vld [vmem:[%s7078_s4 + $0x34] sm:$0xf0] }
 0x513   : > { %v1553_v25 = vsel %vm515_vm4, %v1543_v30, %v1552_v32  ;;  %v5330_v24 = vld [vmem:[#allocation7 + $0x1ac] sm:$0xf0]  ;;  %v4839_v32 = vor.u32 %v5267_v48, %v4838_v63 }
 0x514   : > { %1557 = vst [vmem:[#allocation7 + $0x190] sm:$0xff] %v1553_v25  ;;  %v5091_v42 = vor.u32 %v5330_v24, %v5090_v57  ;;  %v4830_v24 = vld [vmem:[%s7078_s4 + $0x20] sm:$0xf] }
 0x515   : > { %2933 = vmatpush.bf16.msrb.mxu0 %v4839_v32 }
 0x516   : > { %4179 = vmatpush.bf16.msrb.mxu1 %v5091_v42  ;;  %v6536_v59 = vpop.permute.xlu2 %2325  ;;  %v5265_v42 = vld [vmem:[%s7078_s4 + $0x24] sm:$0xf0] }
 0x517   : > { %v1733_v62 = vpop.permute.xlu0 %1732 }
 0x518   : > { %v1737_v2 = vrot.slane %v1733_v62, 4  ;;  %v4822_v62 = vld [vmem:[%s7078_s4 + $0x10] sm:$0xf] }
 0x51a   : > { %v1740_v49 = vsel %vm399_vm8, %v1736_v19, %v1737_v2  ;;  %v5263_v19 = vld [vmem:[%s7078_s4 + $0x14] sm:$0xf0]  ;;  %v4814_v2 = vld [vmem:[%s7078_s4] sm:$0xf] }
 0x51b   : > { %v1741_v22 = vsel %vm735_vm13, %v1731_v12, %v1740_v49  ;;  %v5326_v38 = vld [vmem:[#allocation7 + $0x18c] sm:$0xf0]  ;;  %v4831_v12 = vor.u32 %v5265_v42, %v4830_v24  ;;  %v4823_v49 = vor.u32 %v5263_v19, %v4822_v62  ;;  %v7099_v42 = vpack.c.bf16 %v6108_v34, %v6103_v45  ;;  %v5274_v45 = vld [vmem:[%s7078_s4 + $0x34] sm:$0xf]  ;;  %v4874_v34 = vld [vmem:[%s7078_s4 + $0x38] sm:$0xf0] }
 0x51c   : > { %1745 = vst [vmem:[#allocation7 + $0x230] sm:$0xff] %v1741_v22  ;;  %v5075_v61 = vor.u32 %v5326_v38, %v5074_v37  ;;  %v5261_v22 = vld [vmem:[%s7078_s4 + $0x4] sm:$0xf0] }
 0x51d   : > { %2934 = vmatpush.bf16.msrb.mxu0 %v4831_v12  ;;  %v4815_v37 = vor.u32 %v5261_v22, %v4814_v2 }
 0x51e   : > { %4180 = vmatpush.bf16.msrb.mxu1 %v5075_v61  ;;  %v6540_v6 = vpop.permute.xlu2 %2241 }
 0x51f   : > { %v6522_v10 = vpop.permute.xlu0 %1498 }
 0x521   : > { %2935 = vmatpush.bf16.msrb.mxu0 %v4823_v49  ;;  %v2374_v49 = vld [vmem:[#allocation3 + $0x14] sm:$0xf] }
 0x522   : > { %v2380_v22 = vunpack.c.l.bf16 %v2374_v49 }
 0x523   : > { %v5346_v16 = vld [vmem:[#allocation7 + $0x22c] sm:$0xf0] }
 0x524   : > { %v5155_v44 = vor.u32 %v5346_v16, %v5154_v23 }
 0x525   : > { %2936 = vmatpush.bf16.msrb.mxu0 %v4815_v37  ;;  %v5272_v37 = vld [vmem:[%s7078_s4 + $0x24] sm:$0xf] }
 0x526   : > { %4196 = vmatpush.bf16.msrb.mxu3 %v5155_v44  ;;  %v2212_v21 = vpop.permute.xlu2 %2211 }
 0x527   : > { %v6526_v43 = vpop.permute.xlu0 %1686  ;;  %v2217_v58 = vrot.slane %v2212_v21, 4 }
 0x52f   : > { %v1453_v9 = vpop.permute.xlu0 %1452 }
 0x530   : > { %v1459_v40 = vrot.slane %v1453_v9, 4 }
 0x532   : > { %v1462_v13 = vsel %vm399_vm8, %v1458_v56, %v1459_v40 }
 0x533   : > { %v1463_v54 = vsel %vm401_vm12, %v1451_v46, %v1462_v13 }
 0x534   : > { %1468 = vst [vmem:[#allocation7 + $0x140] sm:$0xff] %v1463_v54 }
 0x537   : > { %v6532_v41 = vpop.permute.xlu0 %2327 }
 0x53f   : > { %v6534_v35 = vpop.permute.xlu0 %2283 }
 0x547   : > { %v6538_v20 = vpop.permute.xlu0 %2399 }
 0x54f   : > { %v6542_v1 = vpop.permute.xlu0 %2207 }
 0x557   : > { %v2214_v18 = vpop.permute.xlu0 %2213 }
 0x558   : > { %v2218_v30 = vrot.slane %v2214_v18, 4 }
 0x55a   : > { %v2221_v25 = vsel %vm399_vm8, %v2217_v58, %v2218_v30 }
 0x55b   : > { %v2222_v57 = vsel %vm515_vm4, %v2212_v21, %v2221_v25  ;;  %v1677_v25 = vld [vmem:[#allocation3 + $0x14] sm:$0xf] }
 0x55c   : > { %2226 = vst [vmem:[#allocation7 + $0x198] sm:$0xff] %v2222_v57  ;;  %v2302_v57 = vld [vmem:[#allocation3 + $0x14] sm:$0xf] }
 0x55d   : > { %v2308_v24 = vunpack.c.l.bf16 %v2302_v57 }
 0x56e   : > { %v2849_v38 = vpop.f32.mrf.mxu2 }
 0x56f   : > { %v2850_v61 = vadd.f32 %v2849_v38, %v6434_v28  ;;  %v1473_v28 = vld [vmem:[#allocation3 + $0x14] sm:$0xf]  ;;  %v4877_v38 = vor.u32 %v5274_v45, %v4874_v34  ;;  %v1692_v34 = vrot.slane %v6526_v43, 4 }
 0x570   : > { %v2863_v23 = vpop.f32.mrf.mxu1  ;;  %v1479_v63 = vunpack.c.l.bf16 %v1473_v28  ;;  %v2142_v28 = vld [vmem:[#allocation3 + $0x14] sm:$0xf] }
 0x571   : > { %v2864_v16 = vadd.f32 %v2863_v23, %v2850_v61  ;;  %v4866_v61 = vld [vmem:[%s7078_s4 + $0x28] sm:$0xf0]  ;;  %v2386_v23 = vmul.f32 %v5680_v17, %v2380_v22  ;;  %3366 = vmatpush.bf16.msra.mxu0 %v4877_v38 }
 0x572   : > { %v1485_v48 = vmul.f32 %v5654_v55, %v1479_v63  ;;  %v2148_v63 = vunpack.c.l.bf16 %v2142_v28  ;;  %v5108_v28 = vld [vmem:[#allocation7 + $0x1d0] sm:$0xf0] }
 0x573   : > { %v2868_v46 = vmax.f32 %v2864_v16, 0.0  ;;  %v2184_v16 = vld [vmem:[#allocation3 + $0x8] sm:$0xf] }
 0x574   : > { %v1489_v32 = vpack.c.bf16 %v1485_v48, %v1485_v48  ;;  %v2154_v48 = vmul.f32 %v5654_v55, %v2148_v63 }
 0x575   : > { %v2870_v13 = vpack.c.bf16 %v2868_v46, %v2868_v46  ;;  %v2390_v46 = vpack.c.bf16 %v2386_v23, %v2386_v23 }
 0x576   : > { %v2851_v44 = vpop.f32.mrf.mxu2 }
 0x577   : > { %v2852_v9 = vadd.f32 %v2851_v44, %v6465_v39  ;;  %v2882_v18 = vunpack.c.l.b16 %v2870_v13  ;;  %v7098_v39 = vpack.c.bf16 %v6057_v50, %v6053_v4  ;;  %v2314_v4 = vmul.f32 %v5650_v52, %v2308_v24  ;;  %v2258_v50 = vld [vmem:[#allocation3 + $0x14] sm:$0xf]  ;;  %v5268_v13 = vld [vmem:[%s7078_s4 + $0x4] sm:$0xf] }
 0x578   : > { %v2865_v56 = vpop.f32.mrf.mxu1  ;;  %v2264_v62 = vunpack.c.l.bf16 %v2258_v50  ;;  %v4869_v44 = vor.u32 %v5272_v37, %v4866_v61 }
 0x579   : > { %v2866_v40 = vadd.f32 %v2865_v56, %v2852_v9  ;;  %v2318_v12 = vpack.c.bf16 %v2314_v4, %v2314_v4  ;;  %v2189_v9 = vunpack.c.l.bf16 %v2184_v16  ;;  %v5270_v56 = vld [vmem:[%s7078_s4 + $0x14] sm:$0xf] }
 0x57a   : > { %v2270_v19 = vmul.f32 %v5626_v31, %v2264_v62  ;;  %3367 = vmatpush.bf16.msra.mxu0 %v4869_v44  ;;  %v1504_v62 = vrot.slane %v6522_v10, 4 }
 0x57b   : > { %v2869_v54 = vmax.f32 %v2866_v40, 0.0  ;;  %v4858_v40 = vld [vmem:[%s7078_s4 + $0x18] sm:$0xf0] }
 0x57c   : > { %v2274_v2 = vpack.c.bf16 %v2270_v19, %v2270_v19 }
 0x57d   : > { %v2871_v21 = vpack.c.bf16 %v2869_v54, %v2869_v54  ;;  %v4861_v54 = vor.u32 %v5270_v56, %v4858_v40 }
 0x57f   : > { %v2883_v58 = vunpack.c.l.b16 %v2871_v21  ;;  %v4850_v21 = vld [vmem:[%s7078_s4 + $0x8] sm:$0xf0]  ;;  %3368 = vmatpush.bf16.msra.mxu0 %v4861_v54 }
 0x581   : > { %v2884_v30 = vpack.c.b16 %v2883_v58, %v2882_v18  ;;  %v2195_v18 = vmul.f32 %v5652_v53, %v2189_v9  ;;  %v4853_v58 = vor.u32 %v5268_v13, %v4850_v21  ;;  %v5124_v13 = vld [vmem:[#allocation7 + $0x1f0] sm:$0xf0]  ;;  %v5138_v21 = vld [vmem:[#allocation7 + $0x200] sm:$0xf] }
 0x583   : > { %3303 = vrot.lane.b32.xlu1 %v2884_v30, %s5503_s28  ;;  %4844 = vmatmul.msk.bf16.vlgmr.msrb.gmra.mxu0 %vm2925_vm15, %v2884_v30 }
 0x584   : > { %4845 = vmatmul.msk.bf16.vlgmr.msra.gmra.mxu1 %vm2925_vm15, %v2884_v30  ;;  %v2200_v30 = vpack.c.bf16 %v2195_v18, %v2195_v18  ;;  %3369 = vmatpush.bf16.msra.mxu0 %v4853_v58 }
 0x58b   : > { %1494 = vrot.lane.b32.xlu1 %v7098_v39, %s5486_s11  ;;  %v7100_v39 = vpack.c.bf16 %v6117_v60, %v6112_v47 }
 0x593   : > { %1500 = vrot.lane.b32.xlu1 %v1489_v32, %s5486_s11  ;;  %v2158_v32 = vpack.c.bf16 %v2154_v48, %v2154_v48  ;;  %v5332_v48 = vld [vmem:[#allocation7 + $0x1c4] sm:$0xf] }
 0x59b   : > { %1688 = vrot.lane.b32.xlu1 %v1677_v25, %s5479_s29 }
 0x5a3   : > { %1454 = vrot.lane.b32.xlu1 %v6367_v29, %s5483_s8 }
 0x5ab   : > { %2323 = vrot.lane.b32.xlu1 %v7099_v42, %s5485_s10 }
 0x5b3   : > { %2329 = vrot.lane.b32.xlu1 %v2318_v12, %s5485_s10 }
 0x5bb   : > { %2285 = vrot.lane.b32.xlu1 %v2274_v2, %s5484_s9 }
 0x5c3   : > { %2239 = vrot.lane.b32.xlu1 %v6367_v29, %s5482_s7 }
 0x5cb   : > { %2401 = vrot.lane.b32.xlu1 %v2390_v46, %s5488_s13 }
 0x5d3   : > { %2209 = vrot.lane.b32.xlu1 %v2200_v30, %s5487_s12  ;;  %v5336_v30 = vld [vmem:[#allocation7 + $0x1e4] sm:$0xf] }
 0x5db   : > { %2355 = vrot.lane.b32.xlu1 %v6367_v29, %s5479_s29  ;;  %v1503_v29 = vrot.slane %v6524_v7, 4 }
 0x5e3   : > { %2163 = vrot.lane.b32.xlu1 %v7100_v39, %s5486_s11 }
 0x5eb   : > { %2169 = vrot.lane.b32.xlu1 %v2158_v32, %s5486_s11  ;;  %v5111_v32 = vor.u32 %v5332_v48, %v5108_v28 }
 0x5f5   : > { %v3304_v25 = vpop.permute.xlu1 %3303 }
 0x5f6   : > { %4878 = vmatmul.msk.bf16.vlgmr.msra.gmra.mxu3 %vm2925_vm15, %v3304_v25  ;;  %4879 = vmatmul.msk.bf16.vlgmr.msra.gmra.mxu0 %vm2925_vm15, %v3304_v25 }
 0x5fd   : > { %v1495_v57 = vpop.permute.xlu1 %1494 }
 0x5fe   : > { %v1502_v24 = vrot.slane %v1495_v57, 4 }
 0x600   : > { %v1506_v42 = vsel %vm399_vm8, %v1502_v24, %v1503_v29  ;;  %v2938_v4 = vpop.f32.mrf.mxu0  ;;  %v5042_v24 = vld [vmem:[#allocation7 + $0x140] sm:$0xf] }
 0x601   : > { %v1507_v47 = vsel %vm459_vm5, %v1495_v57, %v1506_v42  ;;  %v2952_v60 = vpop.f32.mrf.mxu1  ;;  %v5092_v57 = vld [vmem:[#allocation7 + $0x1b0] sm:$0xf0] }
 0x602   : > { %1512 = vst [vmem:[#allocation7 + $0x160] sm:$0xff] %v1507_v47  ;;  %v2957_v50 = vpack.c.bf16 %v2952_v60, %v2938_v4  ;;  %v5328_v47 = vld [vmem:[#allocation7 + $0x1a4] sm:$0xf] }
 0x603   : > { %v5095_v60 = vor.u32 %v5328_v47, %v5092_v57  ;;  %v2358_v57 = vpop.permute.xlu2 %2357 }
 0x604   : > { %2961 = vrot.lane.b32.xlu2 %v2957_v50, %s5481_s6  ;;  %v5026_v50 = vld [vmem:[#allocation7 + $0x120] sm:$0xf] }
 0x605   : > { %v1501_v12 = vpop.permute.xlu1 %1500 }
 0x606   : > { %v1505_v19 = vrot.slane %v1501_v12, 4  ;;  %v5314_v12 = vld [vmem:[#allocation7 + $0x12c] sm:$0xf0] }
 0x608   : > { %v1508_v2 = vsel %vm399_vm8, %v1504_v62, %v1505_v19  ;;  %v2940_v49 = vpop.f32.mrf.mxu0  ;;  %v5076_v62 = vld [vmem:[#allocation7 + $0x190] sm:$0xf0]  ;;  %v2333_v19 = vrot.slane %v6532_v41, 4 }
 0x609   : > { %v1509_v7 = vsel %vm459_vm5, %v6522_v10, %v1508_v2  ;;  %v2954_v22 = vpop.f32.mrf.mxu1  ;;  %v5058_v16 = vld [vmem:[#allocation7 + $0x160] sm:$0xf]  ;;  %v1461_v10 = vrot.slane %v6530_v5, 4  ;;  %v2332_v5 = vrot.slane %v6536_v59, 4 }
 0x60a   : > { %1513 = vst [vmem:[#allocation7 + $0x170] sm:$0xff] %v1509_v7  ;;  %v2958_v45 = vpack.c.bf16 %v2954_v22, %v2940_v49  ;;  %v5027_v49 = vor.u32 %v5314_v12, %v5026_v50  ;;  %v5324_v7 = vld [vmem:[#allocation7 + $0x184] sm:$0xf] }
 0x60b   : > { %v5079_v22 = vor.u32 %v5324_v7, %v5076_v62 }
 0x60c   : > { %2963 = vrot.lane.b32.xlu1 %v2958_v45, %s5481_s6 }
 0x60d   : > { %v1689_v37 = vpop.permute.xlu1 %1688 }
 0x60e   : > { %v1693_v38 = vrot.slane %v1689_v37, 4 }
 0x610   : > { %v1696_v61 = vsel %vm399_vm8, %v1692_v34, %v1693_v38  ;;  %v5320_v38 = vld [vmem:[#allocation7 + $0x164] sm:$0xf] }
 0x611   : > { %v1697_v23 = vsel %vm681_vm9, %v6526_v43, %v1696_v61  ;;  %v5322_v44 = vld [vmem:[#allocation7 + $0x16c] sm:$0xf0]  ;;  %v5127_v43 = vor.u32 %v5336_v30, %v5124_v13  ;;  %v5060_v34 = vld [vmem:[#allocation7 + $0x170] sm:$0xf0] }
 0x612   : > { %1701 = vst [vmem:[#allocation7 + $0x210] sm:$0xff] %v1697_v23  ;;  %v5059_v46 = vor.u32 %v5322_v44, %v5058_v16  ;;  %v5063_v61 = vor.u32 %v5320_v38, %v5060_v34  ;;  %v2289_v44 = vrot.slane %v6534_v35, 4  ;;  %v5028_v13 = vld [vmem:[#allocation7 + $0x130] sm:$0xf0] }
 0x614   : > { %4181 = vmatpush.bf16.msrb.mxu1 %v5059_v46 }
 0x615   : > { %v1455_v9 = vpop.permute.xlu1 %1454 }
 0x616   : > { %v1460_v56 = vrot.slane %v1455_v9, 4 }
 0x618   : > { %v1464_v40 = vsel %vm399_vm8, %v1460_v56, %v1461_v10  ;;  %v5316_v10 = vld [vmem:[#allocation7 + $0x144] sm:$0xf] }
 0x619   : > { %v1465_v54 = vsel %vm401_vm12, %v1455_v9, %v1464_v40  ;;  %v5342_v18 = vld [vmem:[#allocation7 + $0x20c] sm:$0xf0]  ;;  %v5312_v40 = vld [vmem:[#allocation7 + $0x124] sm:$0xf] }
 0x61a   : > { %1469 = vst [vmem:[#allocation7 + $0x150] sm:$0xff] %v1465_v54  ;;  %v5139_v58 = vor.u32 %v5342_v18, %v5138_v21  ;;  %v2246_v21 = vrot.slane %v6540_v6, 4  ;;  %v2215_v6 = vrot.slane %v6542_v1, 4 }
 0x61c   : > { %4197 = vmatpush.bf16.msrb.mxu3 %v5139_v58 }
 0x61d   : > { %v2324_v63 = vpop.permute.xlu1 %2323 }
 0x61e   : > { %v2331_v39 = vrot.slane %v2324_v63, 4 }
 0x620   : > { %4216 = vmatpush.bf16.msra.mxu3 %v5127_v43  ;;  %v2335_v25 = vsel %vm399_vm8, %v2331_v39, %v2332_v5 }
 0x621   : > { %v2336_v29 = vsel %vm652_vm14, %v2324_v63, %v2335_v25  ;;  %v5318_v42 = vld [vmem:[#allocation7 + $0x14c] sm:$0xf0]  ;;  %v5044_v23 = vld [vmem:[#allocation7 + $0x150] sm:$0xf0]  ;;  %v2405_v63 = vrot.slane %v6538_v20, 4 }
 0x622   : > { %2341 = vst [vmem:[#allocation7 + $0x1e8] sm:$0xff] %v2336_v29  ;;  %v5043_v4 = vor.u32 %v5318_v42, %v5042_v24  ;;  %v5047_v9 = vor.u32 %v5316_v10, %v5044_v23  ;;  %v2362_v24 = vrot.slane %v2358_v57, 4 }
 0x624   : > { %4217 = vmatpush.bf16.msra.mxu3 %v5111_v32  ;;  %4182 = vmatpush.bf16.msrb.mxu1 %v5043_v4 }
 0x625   : > { %v2330_v59 = vpop.permute.xlu1 %2329 }
 0x626   : > { %v2334_v2 = vrot.slane %v2330_v59, 4 }
 0x628   : > { %4218 = vmatpush.bf16.msra.mxu3 %v5095_v60  ;;  %v2337_v45 = vsel %vm399_vm8, %v2333_v19, %v2334_v2  ;;  %4183 = vmatpush.bf16.msrb.mxu1 %v5027_v49  ;;  %v2168_v2 = vpop.permute.xlu0 %2167 }
 0x629   : > { %v2338_v37 = vsel %vm652_vm14, %v6532_v41, %v2337_v45  ;;  %v5031_v41 = vor.u32 %v5312_v40, %v5028_v13  ;;  %v2173_v49 = vrot.slane %v2168_v2, 4 }
 0x62a   : > { %2342 = vst [vmem:[#allocation7 + $0x1f8] sm:$0xff] %v2338_v37 }
 0x62c   : > { %4219 = vmatpush.bf16.msra.mxu3 %v5079_v22 }
 0x62d   : > { %v2286_v16 = vpop.permute.xlu1 %2285 }
 0x62e   : > { %v2290_v46 = vrot.slane %v2286_v16, 4 }
 0x630   : > { %4220 = vmatpush.bf16.msra.mxu3 %v5063_v61  ;;  %v2293_v56 = vsel %vm399_vm8, %v2289_v44, %v2290_v46 }
 0x631   : > { %v2294_v54 = vsel %vm598_vm2, %v6534_v35, %v2293_v56 }
 0x632   : > { %2298 = vst [vmem:[#allocation7 + $0x1d8] sm:$0xff] %v2294_v54 }
 0x634   : > { %4221 = vmatpush.bf16.msra.mxu3 %v5047_v9 }
 0x635   : > { %v2240_v18 = vpop.permute.xlu1 %2239 }
 0x636   : > { %v2245_v58 = vrot.slane %v2240_v18, 4 }
 0x638   : > { %4222 = vmatpush.bf16.msra.mxu3 %v5031_v41  ;;  %v2249_v30 = vsel %vm399_vm8, %v2245_v58, %v2246_v21 }
 0x639   : > { %v2250_v43 = vsel %vm544_vm11, %v2240_v18, %v2249_v30 }
 0x63a   : > { %2254 = vst [vmem:[#allocation7 + $0x1b8] sm:$0xff] %v2250_v43 }
 0x63d   : > { %v2402_v28 = vpop.permute.xlu1 %2401 }
 0x63e   : > { %v2406_v5 = vrot.slane %v2402_v28, 4 }
 0x640   : > { %v2409_v39 = vsel %vm399_vm8, %v2405_v63, %v2406_v5 }
 0x641   : > { %v2410_v35 = vsel %vm735_vm13, %v6538_v20, %v2409_v39  ;;  %v2166_v20 = vpop.permute.xlu2 %2165 }
 0x642   : > { %2414 = vst [vmem:[#allocation7 + $0x238] sm:$0xff] %v2410_v35  ;;  %v2172_v12 = vrot.slane %v2166_v20, 4 }
 0x645   : > { %v2210_v48 = vpop.permute.xlu1 %2209 }
 0x646   : > { %v2216_v32 = vrot.slane %v2210_v48, 4 }
 0x648   : > { %v2219_v25 = vsel %vm399_vm8, %v2215_v6, %v2216_v32 }
 0x649   : > { %v2220_v29 = vsel %vm515_vm4, %v6542_v1, %v2219_v25 }
 0x64a   : > { %2225 = vst [vmem:[#allocation7 + $0x188] sm:$0xff] %v2220_v29 }
 0x64d   : > { %v2356_v42 = vpop.permute.xlu1 %2355 }
 0x64e   : > { %v2361_v4 = vrot.slane %v2356_v42, 4 }
 0x650   : > { %v2365_v47 = vsel %vm399_vm8, %v2361_v4, %v2362_v24 }
 0x651   : > { %v2366_v60 = vsel %vm681_vm9, %v2356_v42, %v2365_v47 }
 0x652   : > { %2370 = vst [vmem:[#allocation7 + $0x218] sm:$0xff] %v2366_v60 }
 0x655   : > { %v2164_v50 = vpop.permute.xlu1 %2163 }
 0x656   : > { %v2171_v62 = vrot.slane %v2164_v50, 4 }
 0x658   : > { %v2175_v59 = vsel %vm399_vm8, %v2171_v62, %v2172_v12 }
 0x659   : > { %v2176_v19 = vsel %vm459_vm5, %v2164_v50, %v2175_v59 }
 0x65a   : > { %2181 = vst [vmem:[#allocation7 + $0x168] sm:$0xff] %v2176_v19 }
 0x65d   : > { %v2170_v1 = vpop.permute.xlu1 %2169 }
 0x65e   : > { %v2962_v7 = vpop.permute.xlu2 %2961  ;;  %v2174_v22 = vrot.slane %v2170_v1, 4 }
 0x65f   : > { %v2965_v45 = vrot.slane %v2962_v7, 4 }
 0x660   : > { %v2177_v34 = vsel %vm399_vm8, %v2173_v49, %v2174_v22 }
 0x661   : > { %v2967_v37 = vsel %vm353_vm6, %v2965_v45, %v2962_v7  ;;  %2974 = vst.msk [vmem:[#allocation4 + $0x8] sm:$0xf] %vm234_vm0, %v2965_v45  ;;  %v2178_v38 = vsel %vm459_vm5, %v2168_v2, %v2177_v34 }
 0x662   : > { %2973 = vst.msk [vmem:[#allocation4] sm:$0xff] %vm5548_vm3, %v2967_v37 }
 0x663   : > { %2182 = vst [vmem:[#allocation7 + $0x178] sm:$0xff] %v2178_v38 }
 0x668   : > { %v2992_v61 = vld [vmem:[#allocation4 + $0x8] sm:$0xf] }
 0x669   : > { %v2977_v23 = vld [vmem:[#allocation4] sm:$0xff]  ;;  %3001 = vrot.lane.b32.xlu0 %v2992_v61, %s5483_s8  ;;  %v3136_v46 = vld [vmem:[#allocation4 + $0x8] sm:$0xf] }
 0x66a   : > { %3231 = vrot.lane.b32.xlu1 %v2977_v23, %s5479_s29  ;;  %v6682_v16 = vunpack.c.l.bf16 %v2977_v23  ;;  %v6684_v44 = vunpack.c.h.bf16 %v2977_v23  ;;  %v3141_v10 = vunpack.c.l.bf16 %v3136_v46  ;;  %v3020_v54 = vld [vmem:[#allocation4 + $0x8] sm:$0xf] }
 0x66b   : > { %v3025_v18 = vunpack.c.l.bf16 %v3020_v54  ;;  %v3180_v5 = vld [vmem:[#allocation4 + $0x8] sm:$0xf] }
 0x66c   : > { %v2983_v9 = vmul.f32 %v5568_v8, %v6682_v16  ;;  %v2984_v56 = vmul.f32 %v5584_v11, %v6684_v44  ;;  %v3147_v13 = vmul.f32 %v5626_v31, %v3141_v10  ;;  %v3185_v25 = vunpack.c.l.bf16 %v3180_v5  ;;  %v3224_v57 = vld [vmem:[#allocation4 + $0x8] sm:$0xf]  ;;  %v7102_v5 = vld [vmem:[#allocation10_spill] sm:$0xff] }
 0x66d   : > { %v3031_v43 = vmul.f32 %v5654_v55, %v3025_v18  ;;  %v3064_v24 = vld [vmem:[#allocation4 + $0x8] sm:$0xf]  ;;  %v3189_v38 = vmul.f32 %v5676_v14, %v6682_v16  ;;  %v3190_v61 = vmul.f32 %v6684_v44, %v5690_v26  ;;  %v3145_v54 = vmul.f32 %v5629_v33, %v6682_v16 }
 0x66e   : > { %v2987_v40 = vpack.c.bf16 %v2984_v56, %v2983_v9  ;;  %v3152_v21 = vpack.c.bf16 %v3147_v13, %v3147_v13  ;;  %v3191_v29 = vmul.f32 %v5650_v52, %v3185_v25  ;;  %v3069_v60 = vunpack.c.l.bf16 %v3064_v24  ;;  %v3108_v20 = vld [vmem:[#allocation4 + $0x8] sm:$0xf] }
 0x66f   : > { %v3036_v39 = vpack.c.bf16 %v3031_v43, %v3031_v43  ;;  %v3252_v59 = vld [vmem:[#allocation4 + $0x8] sm:$0xf]  ;;  %v3195_v10 = vpack.c.bf16 %v3190_v61, %v3189_v38  ;;  %v3074_v13 = vmul.f32 %v6684_v44, %v5695_v27 }
 0x670   : > { %2989 = vst [vmem:[#allocation7] sm:$0xff] %v2987_v40  ;;  %v3196_v47 = vpack.c.bf16 %v3191_v29, %v3191_v29  ;;  %v3075_v62 = vmul.f32 %v5652_v53, %v3069_v60  ;;  %v3257_v7 = vunpack.c.l.bf16 %v3252_v59  ;;  %v3073_v40 = vmul.f32 %v5678_v15, %v6682_v16 }
 0x672   : > { %3115 = vrot.lane.b32.xlu1 %v2977_v23, %s5482_s7  ;;  %v3080_v49 = vpack.c.bf16 %v3075_v62, %v3075_v62  ;;  %v3263_v46 = vmul.f32 %v5680_v17, %v3257_v7  ;;  %v3079_v18 = vpack.c.bf16 %v3074_v13, %v3073_v40 }
 0x673   : > { %v3371_v41 = vpop.f32.mrf.mxu0 }
 0x674   : > { %v3268_v9 = vpack.c.bf16 %v3263_v46, %v3263_v46 }
 0x679   : > { %v3357_v58 = vpop.f32.mrf.mxu3 }
 0x67a   : > { %v3376_v30 = vpack.c.bf16 %v3371_v41, %v3357_v58  ;;  %3161 = vrot.lane.b32.xlu1 %v3152_v21, %s5484_s9  ;;  %v3146_v41 = vmul.f32 %v6684_v44, %v5635_v36 }
 0x67b   : > { %v3373_v35 = vpop.f32.mrf.mxu0 }
 0x67c   : > { %3380 = vrot.lane.b32.xlu2 %v3376_v30, %s5481_s6  ;;  %v3151_v58 = vpack.c.bf16 %v3146_v41, %v3145_v54 }
 0x67e   : > { %v2964_v28 = vpop.permute.xlu1 %2963 }
 0x67f   : > { %v2966_v63 = vrot.slane %v2964_v28, 4 }
 0x681   : > { %v2968_v48 = vsel %vm353_vm6, %v2966_v63, %v2964_v28  ;;  %2976 = vst.msk [vmem:[#allocation4 + $0x14] sm:$0xf] %vm234_vm0, %v2966_v63  ;;  %v3359_v6 = vpop.f32.mrf.mxu3  ;;  %v7101_v28 = vld [vmem:[#allocation9_spill] sm:$0xff] }
 0x682   : > { %2975 = vst.msk [vmem:[#allocation4 + $0xc] sm:$0xff] %vm5548_vm3, %v2968_v48  ;;  %v3377_v32 = vpack.c.bf16 %v3373_v35, %v3359_v6  ;;  %3045 = vrot.lane.b32.xlu1 %v3036_v39, %s5486_s11  ;;  %v3261_v63 = vmul.f32 %v7101_v28, %v6682_v16  ;;  %v3262_v39 = vmul.f32 %v6684_v44, %v7102_v5 }
 0x683   : > { %v3029_v35 = vmul.f32 %v5648_v51, %v6682_v16  ;;  %v3030_v48 = vmul.f32 %v6684_v44, %v5666_v0 }
 0x684   : > { %3233 = vrot.lane.b32.xlu2 %v3224_v57, %s5479_s29  ;;  %3382 = vrot.lane.b32.xlu0 %v3377_v32, %s5481_s6  ;;  %v3267_v32 = vpack.c.bf16 %v3262_v39, %v3261_v63 }
 0x685   : > { %v3035_v25 = vpack.c.bf16 %v3030_v48, %v3029_v35 }
 0x688   : > { %v3226_v42 = vld [vmem:[#allocation4 + $0x14] sm:$0xf] }
 0x689   : > { %v6703_v4 = vld [vmem:[#allocation4 + $0xc] sm:$0xff]  ;;  %v3110_v19 = vld [vmem:[#allocation4 + $0x14] sm:$0xf] }
 0x68a   : > { %3237 = vrot.lane.b32.xlu1 %v3226_v42, %s5479_s29  ;;  %v6709_v50 = vunpack.c.l.bf16 %v6703_v4  ;;  %v6712_v12 = vunpack.c.h.bf16 %v6703_v4  ;;  %v3182_v24 = vld [vmem:[#allocation4 + $0x14] sm:$0xf] }
 0x68b   : > { %v3188_v44 = vunpack.c.l.bf16 %v3182_v24  ;;  %v2994_v42 = vld [vmem:[#allocation4 + $0x14] sm:$0xf] }
 0x68c   : > { %3117 = vrot.lane.b32.xlu2 %v3108_v20, %s5482_s7  ;;  %3205 = vrot.lane.b32.xlu0 %v3196_v47, %s5485_s10  ;;  %v6717_v2 = vmul.f32 %v5648_v51, %v6709_v50  ;;  %v6721_v1 = vmul.f32 %v6712_v12, %v5666_v0  ;;  %v2985_v22 = vmul.f32 %v5568_v8, %v6709_v50  ;;  %v3066_v60 = vld [vmem:[#allocation4 + $0x14] sm:$0xf] }
 0x68d   : > { %v2986_v45 = vmul.f32 %v5584_v11, %v6712_v12  ;;  %v3193_v56 = vmul.f32 %v6712_v12, %v5690_v26  ;;  %v3076_v30 = vmul.f32 %v5678_v15, %v6709_v50  ;;  %v3077_v43 = vmul.f32 %v6712_v12, %v5695_v27  ;;  %v3138_v20 = vld [vmem:[#allocation4 + $0x14] sm:$0xf] }
 0x68e   : > { %v3037_v34 = vpack.c.bf16 %v6721_v1, %v6717_v2  ;;  %v3264_v57 = vmul.f32 %v7101_v28, %v6709_v50  ;;  %v3265_v29 = vmul.f32 %v6712_v12, %v7102_v5  ;;  %v3194_v47 = vmul.f32 %v5650_v52, %v3188_v44 }
 0x68f   : > { %v2988_v37 = vpack.c.bf16 %v2986_v45, %v2985_v22  ;;  %v3081_v6 = vpack.c.bf16 %v3077_v43, %v3076_v30  ;;  %v3072_v59 = vunpack.c.l.bf16 %v3066_v60  ;;  %v3254_v22 = vld [vmem:[#allocation4 + $0x14] sm:$0xf]  ;;  %v3149_v40 = vmul.f32 %v6712_v12, %v5635_v36 }
 0x690   : > { %v3269_v16 = vpack.c.bf16 %v3265_v29, %v3264_v57  ;;  %v3198_v62 = vpack.c.bf16 %v3194_v47, %v3194_v47  ;;  %v3022_v45 = vld [vmem:[#allocation4 + $0x14] sm:$0xf]  ;;  %v3260_v61 = vunpack.c.l.bf16 %v3254_v22 }
 0x691   : > { %2990 = vst [vmem:[#allocation7 + $0x10] sm:$0xff] %v2988_v37  ;;  %v3028_v46 = vunpack.c.l.bf16 %v3022_v45 }
 0x692   : > { %3121 = vrot.lane.b32.xlu1 %v3110_v19, %s5482_s7  ;;  %v3144_v19 = vunpack.c.l.bf16 %v3138_v20 }
 0x694   : > { %2999 = vrot.lane.b32.xlu2 %v2977_v23, %s5483_s8  ;;  %3089 = vrot.lane.b32.xlu0 %v3080_v49, %s5487_s12  ;;  %v3192_v23 = vmul.f32 %v5676_v14, %v6709_v50  ;;  %v3078_v49 = vmul.f32 %v5652_v53, %v3072_v59  ;;  %v3150_v7 = vmul.f32 %v5626_v31, %v3144_v19 }
 0x696   : > { %v3197_v21 = vpack.c.bf16 %v3193_v56, %v3192_v23  ;;  %v3082_v37 = vpack.c.bf16 %v3078_v49, %v3078_v49  ;;  %v3154_v38 = vpack.c.bf16 %v3150_v7, %v3150_v7  ;;  %v3148_v56 = vmul.f32 %v5629_v33, %v6709_v50 }
 0x698   : > { %v3153_v13 = vpack.c.bf16 %v3149_v40, %v3148_v56 }
 0x69a   : > { %3003 = vrot.lane.b32.xlu1 %v6703_v4, %s5483_s8 }
 0x69c   : > { %3203 = vrot.lane.b32.xlu2 %v3195_v10, %s5485_s10  ;;  %3277 = vrot.lane.b32.xlu0 %v3268_v9, %s5488_s13  ;;  %v3266_v10 = vmul.f32 %v5680_v17, %v3260_v61  ;;  %v3034_v9 = vmul.f32 %v5654_v55, %v3028_v46 }
 0x69e   : > { %v3270_v23 = vpack.c.bf16 %v3266_v10, %v3266_v10 }
 0x6a2   : > { %3207 = vrot.lane.b32.xlu1 %v3197_v21, %s5485_s10 }
 0x6a4   : > { %3087 = vrot.lane.b32.xlu2 %v3079_v18, %s5487_s12  ;;  %3159 = vrot.lane.b32.xlu0 %v3151_v58, %s5484_s9 }
 0x6aa   : > { %3091 = vrot.lane.b32.xlu1 %v3081_v6, %s5487_s12 }
 0x6ac   : > { %3275 = vrot.lane.b32.xlu2 %v3267_v32, %s5488_s13  ;;  %3043 = vrot.lane.b32.xlu0 %v3035_v25, %s5486_s11 }
 0x6b2   : > { %3279 = vrot.lane.b32.xlu1 %v3269_v16, %s5488_s13 }
 0x6b4   : > { %3005 = vrot.lane.b32.xlu2 %v2994_v42, %s5483_s8  ;;  %3235 = vrot.lane.b32.xlu0 %v6703_v4, %s5479_s29 }
 0x6bc   : > { %3209 = vrot.lane.b32.xlu2 %v3198_v62, %s5485_s10  ;;  %3119 = vrot.lane.b32.xlu0 %v6703_v4, %s5482_s7  ;;  %v3038_v4 = vpack.c.bf16 %v3034_v9, %v3034_v9 }
 0x6c4   : > { %3093 = vrot.lane.b32.xlu2 %v3082_v37, %s5487_s12  ;;  %3165 = vrot.lane.b32.xlu0 %v3154_v38, %s5484_s9 }
 0x6cc   : > { %3281 = vrot.lane.b32.xlu2 %v3270_v23, %s5488_s13  ;;  %3049 = vrot.lane.b32.xlu0 %v3038_v4, %s5486_s11 }
 0x6d4   : > { %3163 = vrot.lane.b32.xlu2 %v3153_v13, %s5484_s9 }
 0x6d6   : > { %v3381_v54 = vpop.permute.xlu2 %3380 }
 0x6d7   : > { %v3384_v41 = vrot.slane %v3381_v54, 4 }
 0x6d9   : > { %v3386_v21 = vsel %vm353_vm6, %v3384_v41, %v3381_v54  ;;  %3393 = vst.msk [vmem:[#allocation4 + $0x8] sm:$0xf] %vm234_vm0, %v3384_v41 }
 0x6da   : > { %3392 = vst.msk [vmem:[#allocation4] sm:$0xff] %vm5548_vm3, %v3386_v21 }
 0x6db   : > { %v3002_v59 = vpop.permute.xlu0 %3001 }
 0x6dc   : > { %v3232_v18 = vpop.permute.xlu1 %3231  ;;  %3047 = vrot.lane.b32.xlu2 %v3037_v34, %s5486_s11  ;;  %v3008_v38 = vrot.slane %v3002_v59, 4 }
 0x6dd   : > { %v3239_v12 = vrot.slane %v3232_v18, 4 }
 0x6de   : > { %v3234_v50 = vpop.permute.xlu2 %3233 }
 0x6df   : > { %v3240_v58 = vrot.slane %v3234_v50, 4 }
 0x6e0   : > { %v3643_v30 = vld [vmem:[#allocation4 + $0x8] sm:$0xf] }
 0x6e1   : > { %v3527_v43 = vld [vmem:[#allocation4 + $0x8] sm:$0xf]  ;;  %v3243_v63 = vsel %vm399_vm8, %v3239_v12, %v3240_v58  ;;  %3652 = vrot.lane.b32.xlu0 %v3643_v30, %s5479_s29  ;;  %v3642_v6 = vld [vmem:[#allocation4] sm:$0xff] }
 0x6e2   : > { %3536 = vrot.lane.b32.xlu1 %v3527_v43, %s5482_s7  ;;  %v3599_v39 = vld [vmem:[#allocation4 + $0x8] sm:$0xf]  ;;  %v3244_v35 = vsel %vm681_vm9, %v3232_v18, %v3243_v63  ;;  %v3396_v25 = vld [vmem:[#allocation4] sm:$0xff]  ;;  %v6814_v20 = vunpack.c.l.bf16 %v3642_v6  ;;  %v6816_v62 = vunpack.c.h.bf16 %v3642_v6 }
 0x6e3   : > { %v3604_v48 = vunpack.c.l.bf16 %v3599_v39  ;;  %3249 = vst [vmem:[#allocation7 + $0xe0] sm:$0xff] %v3244_v35  ;;  %v3439_v1 = vld [vmem:[#allocation4 + $0x8] sm:$0xf]  ;;  %v3398_v47 = vunpack.c.l.bf16 %v3396_v25  ;;  %v3399_v49 = vunpack.c.h.bf16 %v3396_v25 }
 0x6e4   : > { %v3116_v32 = vpop.permute.xlu1 %3115  ;;  %3650 = vrot.lane.b32.xlu2 %v3642_v6, %s5479_s29  ;;  %v3444_v16 = vunpack.c.l.bf16 %v3439_v1  ;;  %v3411_v44 = vld [vmem:[#allocation4 + $0x8] sm:$0xf]  ;;  %v3564_v46 = vmul.f32 %v5629_v33, %v6814_v20  ;;  %v3565_v10 = vmul.f32 %v6816_v62, %v5635_v36  ;;  %v3492_v58 = vmul.f32 %v5678_v15, %v6814_v20 }
 0x6e5   : > { %v3610_v2 = vmul.f32 %v5650_v52, %v3604_v48  ;;  %v3123_v57 = vrot.slane %v3116_v32, 4  ;;  %v3402_v7 = vmul.f32 %v5568_v8, %v3398_v47  ;;  %v3555_v45 = vld [vmem:[#allocation4 + $0x8] sm:$0xf]  ;;  %v3403_v37 = vmul.f32 %v5584_v11, %v3399_v49 }
 0x6e6   : > { %v3118_v34 = vpop.permute.xlu2 %3117  ;;  %v3450_v19 = vmul.f32 %v5654_v55, %v3444_v16  ;;  %v3560_v4 = vunpack.c.l.bf16 %v3555_v45  ;;  %v3570_v54 = vpack.c.bf16 %v3565_v10, %v3564_v46  ;;  %v3483_v18 = vld [vmem:[#allocation4 + $0x8] sm:$0xf]  ;;  %v3493_v30 = vmul.f32 %v6816_v62, %v5695_v27 }
 0x6e7   : > { %v3124_v29 = vrot.slane %v3118_v34, 4  ;;  %v3615_v24 = vpack.c.bf16 %v3610_v2, %v3610_v2  ;;  %v3406_v56 = vpack.c.bf16 %v3403_v37, %v3402_v7  ;;  %v3488_v39 = vunpack.c.l.bf16 %v3483_v18 }
 0x6e8   : > { %v3455_v23 = vpack.c.bf16 %v3450_v19, %v3450_v19  ;;  %v3566_v41 = vmul.f32 %v5626_v31, %v3560_v4  ;;  %v3498_v48 = vpack.c.bf16 %v3493_v30, %v3492_v58  ;;  %v3448_v10 = vmul.f32 %v5648_v51, %v6814_v20 }
 0x6e9   : > { %v3127_v42 = vsel %vm399_vm8, %v3123_v57, %v3124_v29  ;;  %3420 = vrot.lane.b32.xlu0 %v3411_v44, %s5483_s8  ;;  %3408 = vst [vmem:[#allocation7 + $0x8] sm:$0xff] %v3406_v56  ;;  %v3608_v44 = vmul.f32 %v5676_v14, %v6814_v20 }
 0x6ea   : > { %3624 = vrot.lane.b32.xlu1 %v3615_v24, %s5485_s10  ;;  %v3128_v60 = vsel %vm544_vm11, %v3116_v32, %v3127_v42  ;;  %v3571_v63 = vpack.c.bf16 %v3566_v41, %v3566_v41  ;;  %v3609_v42 = vmul.f32 %v6816_v62, %v5690_v26 }
 0x6eb   : > { %3133 = vst [vmem:[#allocation7 + $0x80] sm:$0xff] %v3128_v60 }
 0x6ec   : > { %v6820_v22 = vpop.permute.xlu1 %3161  ;;  %3418 = vrot.lane.b32.xlu2 %v3642_v6, %s5483_s8  ;;  %v3614_v7 = vpack.c.bf16 %v3609_v42, %v3608_v44 }
 0x6ee   : > { %v3000_v61 = vpop.permute.xlu2 %2999 }
 0x6ef   : > { %v3007_v9 = vrot.slane %v3000_v61, 4 }
 0x6f1   : > { %v3011_v40 = vsel %vm399_vm8, %v3007_v9, %v3008_v38  ;;  %3534 = vrot.lane.b32.xlu0 %v3642_v6, %s5482_s7  ;;  %v3494_v6 = vmul.f32 %v5652_v53, %v3488_v39 }
 0x6f2   : > { %3464 = vrot.lane.b32.xlu1 %v3455_v23, %s5486_s11  ;;  %v3012_v13 = vsel %vm401_vm12, %v3000_v61, %v3011_v40  ;;  %v3449_v23 = vmul.f32 %v6816_v62, %v5666_v0 }
 0x6f3   : > { %3017 = vst [vmem:[#allocation7 + $0x20] sm:$0xff] %v3012_v13  ;;  %v3499_v57 = vpack.c.bf16 %v3494_v6, %v3494_v6 }
 0x6f4   : > { %v6833_v21 = vpop.permute.xlu1 %3045  ;;  %3578 = vrot.lane.b32.xlu2 %v3570_v54, %s5484_s9 }
 0x6f6   : > { %v3204_v50 = vpop.permute.xlu2 %3203  ;;  %v3383_v12 = vpop.permute.xlu0 %3382 }
 0x6f7   : > { %v3385_v43 = vrot.slane %v3383_v12, 4  ;;  %v3211_v34 = vrot.slane %v3204_v50, 4 }
 0x6f9   : > { %v3387_v35 = vsel %vm353_vm6, %v3385_v43, %v3383_v12  ;;  %3395 = vst.msk [vmem:[#allocation4 + $0x14] sm:$0xf] %vm234_vm0, %v3385_v43  ;;  %3580 = vrot.lane.b32.xlu0 %v3571_v63, %s5484_s9  ;;  %v3454_v43 = vpack.c.bf16 %v3449_v23, %v3448_v10  ;;  %v3052_v23 = vrot.slane %v6833_v21, 4  ;;  %v2112_v21 = vld [vmem:[#allocation3 + $0x8] sm:$0xf]  ;;  %vm7103_vm0 = vcmask 261120  }
 0x6fa   : > { %3394 = vst.msk [vmem:[#allocation4 + $0xc] sm:$0xff] %vm5548_vm3, %v3387_v35  ;;  %vm7104_vm3 = vmmov %vm7103_vm0 }
 0x6fb   : > { %vm7105_vm1 = vmmov %vm7103_vm0 }
 0x6fc   : > { %v6846_v32 = vpop.permute.xlu1 %3237  ;;  %3506 = vrot.lane.b32.xlu2 %v3498_v48, %s5487_s12  ;;  %vm7106_vm6 = vmmov %vm7103_vm0 }
 0x6fe   : > { %v3088_v2 = vpop.permute.xlu2 %3087  ;;  %v3206_v1 = vpop.permute.xlu0 %3205 }
 0x6ff   : > { %v3212_v25 = vrot.slane %v3206_v1, 4  ;;  %v3095_v19 = vrot.slane %v3088_v2, 4 }
 0x700   : > { %v3645_v16 = vld [vmem:[#allocation4 + $0x14] sm:$0xf] }
 0x701   : > { %v3215_v29 = vsel %vm399_vm8, %v3211_v34, %v3212_v25  ;;  %3508 = vrot.lane.b32.xlu0 %v3499_v57, %s5487_s12  ;;  %v3644_v24 = vld [vmem:[#allocation4 + $0xc] sm:$0xff]  ;;  %v3557_v45 = vld [vmem:[#allocation4 + $0x14] sm:$0xf] }
 0x702   : > { %v3216_v3 = vsel %vm652_vm14, %v3204_v50, %v3215_v29  ;;  %3654 = vrot.lane.b32.xlu1 %v3644_v24, %s5479_s29  ;;  %v3397_v37 = vld [vmem:[#allocation4 + $0xc] sm:$0xff]  ;;  %v6860_v38 = vunpack.c.l.bf16 %v3644_v24  ;;  %v6862_v61 = vunpack.c.h.bf16 %v3644_v24  ;;  %v3563_v4 = vunpack.c.l.bf16 %v3557_v45  ;;  %v3485_v6 = vld [vmem:[#allocation4 + $0x14] sm:$0xf] }
 0x703   : > { %3221 = vst [vmem:[#allocation7 + $0xc0] sm:$0xff] %v3216_v3  ;;  %v3400_v56 = vunpack.c.l.bf16 %v3397_v37  ;;  %v3401_v40 = vunpack.c.h.bf16 %v3397_v37  ;;  %v3491_v34 = vunpack.c.l.bf16 %v3485_v6  ;;  %v3168_v3 = vrot.slane %v6820_v22, 4  ;;  %v3441_v10 = vld [vmem:[#allocation4 + $0x14] sm:$0xf] }
 0x704   : > { %v6857_v47 = vpop.permute.xlu1 %3121  ;;  %3656 = vrot.lane.b32.xlu2 %v3645_v16, %s5479_s29  ;;  %v3567_v54 = vmul.f32 %v5629_v33, %v6860_v38  ;;  %v3568_v41 = vmul.f32 %v6862_v61, %v5635_v36  ;;  %v3569_v63 = vmul.f32 %v5626_v31, %v3563_v4  ;;  %v3495_v57 = vmul.f32 %v5678_v15, %v6860_v38 }
 0x705   : > { %v3404_v18 = vmul.f32 %v5568_v8, %v3400_v56  ;;  %v3405_v50 = vmul.f32 %v5584_v11, %v3401_v40  ;;  %v3496_v29 = vmul.f32 %v6862_v61, %v5695_v27  ;;  %v3497_v42 = vmul.f32 %v5652_v53, %v3491_v34 }
 0x706   : > { %v3276_v60 = vpop.permute.xlu2 %3275  ;;  %v3090_v59 = vpop.permute.xlu0 %3089  ;;  %v3572_v1 = vpack.c.bf16 %v3568_v41, %v3567_v54  ;;  %v3573_v31 = vpack.c.bf16 %v3569_v63, %v3569_v63  ;;  %v3611_v40 = vmul.f32 %v5676_v14, %v6860_v38  ;;  %v3447_v54 = vunpack.c.l.bf16 %v3441_v10 }
 0x707   : > { %v3096_v49 = vrot.slane %v3090_v59, 4  ;;  %v3283_v12 = vrot.slane %v3276_v60, 4  ;;  %v3500_v45 = vpack.c.bf16 %v3496_v29, %v3495_v57  ;;  %v3242_v6 = vrot.slane %v6846_v32, 4 }
 0x709   : > { %v3099_v46 = vsel %vm399_vm8, %v3095_v19, %v3096_v49  ;;  %3622 = vrot.lane.b32.xlu0 %v3614_v7, %s5485_s10  ;;  %v3529_v7 = vld [vmem:[#allocation4 + $0x14] sm:$0xf] }
 0x70a   : > { %v3100_v9 = vsel %vm515_vm4, %v3088_v2, %v3099_v46  ;;  %3422 = vrot.lane.b32.xlu1 %v3644_v24, %s5483_s8  ;;  %v3407_v2 = vpack.c.bf16 %v3405_v50, %v3404_v18  ;;  %v3501_v46 = vpack.c.bf16 %v3497_v42, %v3497_v42  ;;  %v3451_v42 = vmul.f32 %v5648_v51, %v6860_v38 }
 0x70b   : > { %3105 = vst [vmem:[#allocation7 + $0x60] sm:$0xff] %v3100_v9 }
 0x70c   : > { %v3004_v13 = vpop.permute.xlu1 %3003  ;;  %3538 = vrot.lane.b32.xlu2 %v3644_v24, %s5482_s7  ;;  %3409 = vst [vmem:[#allocation7 + $0x18] sm:$0xff] %v3407_v2  ;;  %v3601_v24 = vld [vmem:[#allocation4 + $0x14] sm:$0xf] }
 0x70d   : > { %v3009_v39 = vrot.slane %v3004_v13, 4  ;;  %v3607_v49 = vunpack.c.l.bf16 %v3601_v24  ;;  %v3413_v24 = vld [vmem:[#allocation4 + $0x14] sm:$0xf] }
 0x70e   : > { %v3278_v58 = vpop.permute.xlu0 %3277  ;;  %v3006_v30 = vpop.permute.xlu2 %3005 }
 0x70f   : > { %v3284_v35 = vrot.slane %v3278_v58, 4  ;;  %v3010_v48 = vrot.slane %v3006_v30, 4  ;;  %v3613_v53 = vmul.f32 %v5650_v52, %v3607_v49 }
 0x711   : > { %v3287_v33 = vsel %vm399_vm8, %v3283_v12, %v3284_v35  ;;  %v3013_v36 = vsel %vm399_vm8, %v3009_v39, %v3010_v48  ;;  %3462 = vrot.lane.b32.xlu0 %v3454_v43, %s5486_s11  ;;  %v3617_v52 = vpack.c.bf16 %v3613_v53, %v3613_v53  ;;  %v3680_v39 = vmul.f32 %v7101_v28, %v6814_v20  ;;  %v3673_v48 = vld [vmem:[#allocation4 + $0x14] sm:$0xf] }
 0x712   : > { %v3288_v8 = vsel %vm735_vm13, %v3276_v60, %v3287_v33  ;;  %v3014_v11 = vsel %vm401_vm12, %v3004_v13, %v3013_v36  ;;  %3582 = vrot.lane.b32.xlu1 %v3572_v1, %s5484_s9  ;;  %v3612_v13 = vmul.f32 %v6862_v61, %v5690_v26  ;;  %v3453_v26 = vmul.f32 %v5654_v55, %v3447_v54  ;;  %v334_v55 = vld [vmem:[%s7075_s1 + $0x38] sm:$0xf] }
 0x713   : > { %3293 = vst [vmem:[#allocation7 + $0x100] sm:$0xff] %v3288_v8  ;;  %v3681_v35 = vmul.f32 %v6816_v62, %v7102_v5  ;;  %v3679_v34 = vunpack.c.l.bf16 %v3673_v48  ;;  %v3683_v48 = vmul.f32 %v7101_v28, %v6860_v38 }
 0x714   : > { %3018 = vst [vmem:[#allocation7 + $0x30] sm:$0xff] %v3014_v11  ;;  %v3208_v25 = vpop.permute.xlu1 %3207  ;;  %3584 = vrot.lane.b32.xlu2 %v3573_v31, %s5484_s9  ;;  %v3616_v14 = vpack.c.bf16 %v3612_v13, %v3611_v40  ;;  %v3457_v11 = vpack.c.bf16 %v3453_v26, %v3453_v26 }
 0x715   : > { %v3213_v60 = vrot.slane %v3208_v25, 4  ;;  %v3686_v31 = vpack.c.bf16 %v3681_v35, %v3680_v39 }
 0x716   : > { %v3160_v16 = vpop.permute.xlu0 %3159  ;;  %v3210_v44 = vpop.permute.xlu2 %3209 }
 0x717   : > { %v3167_v59 = vrot.slane %v3160_v16, 4  ;;  %v3214_v19 = vrot.slane %v3210_v44, 4 }
 0x719   : > { %v3171_v37 = vsel %vm399_vm8, %v3167_v59, %v3168_v3  ;;  %v3217_v15 = vsel %vm399_vm8, %v3213_v60, %v3214_v19  ;;  %3540 = vrot.lane.b32.xlu0 %v3529_v7, %s5482_s7  ;;  %v3685_v3 = vmul.f32 %v5680_v17, %v3679_v34  ;;  %v3452_v60 = vmul.f32 %v6862_v61, %v5666_v0 }
 0x71a   : > { %v3172_v27 = vsel %vm598_vm2, %v3160_v16, %v3171_v37  ;;  %v3218_v22 = vsel %vm652_vm14, %v3208_v25, %v3217_v15  ;;  %3510 = vrot.lane.b32.xlu1 %v3500_v45, %s5487_s12  ;;  %v3795_v25 = vunpack.c.l.b16 %v334_v55  ;;  %v3126_v59 = vrot.slane %v6857_v47, 4  ;;  %v5463_v45 = vld [vmem:[#allocation3] sm:$0xff]  ;;  %v4994_v37 = vld [vmem:[#allocation7 + $0xe0] sm:$0xf]  ;;  %v5308_v53 = vld [vmem:[#allocation7 + $0x104] sm:$0xf] }
 0x71b   : > { %3177 = vst [vmem:[#allocation7 + $0xa0] sm:$0xff] %v3172_v27  ;;  %v3689_v49 = vpack.c.bf16 %v3685_v3, %v3685_v3  ;;  %v5010_v15 = vld [vmem:[#allocation7 + $0x100] sm:$0xf]  ;;  %v5304_v27 = vld [vmem:[#allocation7 + $0xe4] sm:$0xf]  ;;  %v3456_v51 = vpack.c.bf16 %v3452_v60, %v3451_v42 }
 0x71c   : > { %3222 = vst [vmem:[#allocation7 + $0xd0] sm:$0xff] %v3218_v22  ;;  %v3092_v9 = vpop.permute.xlu1 %3091  ;;  %3512 = vrot.lane.b32.xlu2 %v3501_v46, %s5487_s12  ;;  %v6928_v29 = vpack.c.b16 %v3795_v25, %v3795_v25  ;;  %v4946_v3 = vld [vmem:[#allocation7 + $0x80] sm:$0xf]  ;;  %v340_v60 = vld [vmem:[%s7076_s2 + $0x30] sm:$0x7] }
 0x71d   : > { %v3097_v41 = vrot.slane %v3092_v9, 4 }
 0x71e   : > { %v3044_v4 = vpop.permute.xlu0 %3043  ;;  %v3094_v56 = vpop.permute.xlu2 %3093  ;;  %5168 = vmatmul.msk.bf16.vlgmr.msrb.gmra.mxu3 %vm7103_vm0, %v6928_v29 }
 0x71f   : > { %v3051_v18 = vrot.slane %v3044_v4, 4  ;;  %v3098_v50 = vrot.slane %v3094_v56, 4 }
 0x721   : > { %v3055_v12 = vsel %vm399_vm8, %v3051_v18, %v3052_v23  ;;  %v3101_v58 = vsel %vm399_vm8, %v3097_v41, %v3098_v50  ;;  %3628 = vrot.lane.b32.xlu0 %v3617_v52, %s5485_s10  ;;  %v2114_v18 = vld [vmem:[#allocation3 + $0x14] sm:$0xf]  ;;  %v3671_v50 = vld [vmem:[#allocation4 + $0x8] sm:$0xf] }
 0x722   : > { %v3056_v30 = vsel %vm459_vm5, %v3044_v4, %v3055_v12  ;;  %v3102_v43 = vsel %vm515_vm4, %v3092_v9, %v3101_v58  ;;  %2121 = vrot.lane.b32.xlu1 %v2112_v21, %s5483_s8  ;;  %v4978_v58 = vld [vmem:[#allocation7 + $0xc0] sm:$0xf]  ;;  %v5300_v21 = vld [vmem:[#allocation7 + $0xc4] sm:$0xf]  ;;  %v3676_v35 = vunpack.c.l.bf16 %v3671_v50  ;;  %v4884_v50 = vld [vmem:[#allocation7 + $0x10] sm:$0xf0] }
 0x723   : > { %3061 = vst [vmem:[#allocation7 + $0x40] sm:$0xff] %v3056_v30  ;;  %v5302_v40 = vld [vmem:[#allocation7 + $0xcc] sm:$0xf0]  ;;  %v4980_v13 = vld [vmem:[#allocation7 + $0xd0] sm:$0xf0] }
 0x724   : > { %3106 = vst [vmem:[#allocation7 + $0x70] sm:$0xff] %v3102_v43  ;;  %v3280_v63 = vpop.permute.xlu1 %3279  ;;  %3626 = vrot.lane.b32.xlu2 %v3616_v14, %s5485_s10  ;;  %v4979_v30 = vor.u32 %v5302_v40, %v4978_v58  ;;  %v4983_v43 = vor.u32 %v5300_v21, %v4980_v13  ;;  %v6947_v14 = vld [vmem:[%s7075_s1 + $0x30] sm:$0xff]  ;;  %v5296_v25 = vld [vmem:[#allocation7 + $0xa4] sm:$0xf] }
 0x725   : > { %v3285_v33 = vrot.slane %v3280_v63, 4  ;;  %v5339_v58 = vld [vmem:[#allocation7 + $0x1f4] sm:$0xf0] }
 0x726   : > { %v3282_v2 = vpop.permute.xlu2 %3281  ;;  %v3236_v1 = vpop.permute.xlu0 %3235 }
 0x727   : > { %v3286_v36 = vrot.slane %v3282_v2, 4  ;;  %v3241_v8 = vrot.slane %v3236_v1, 4 }
 0x729   : > { %v3289_v20 = vsel %vm399_vm8, %v3285_v33, %v3286_v36  ;;  %v3245_v62 = vsel %vm399_vm8, %v3241_v8, %v3242_v6  ;;  %3468 = vrot.lane.b32.xlu0 %v3457_v11, %s5486_s11  ;;  %v3684_v6 = vmul.f32 %v6862_v61, %v7102_v5  ;;  %v3682_v8 = vmul.f32 %v5680_v17, %v3676_v35  ;;  %v4962_v5 = vld [vmem:[#allocation7 + $0xa0] sm:$0xf] }
 0x72a   : > { %v3290_v32 = vsel %vm735_vm13, %v3280_v63, %v3289_v20  ;;  %v3246_v57 = vsel %vm681_vm9, %v3236_v1, %v3245_v62  ;;  %3694 = vrot.lane.b32.xlu1 %v3686_v31, %s5488_s13  ;;  %v3794_v63 = vunpack.c.h.b16 %v6947_v14  ;;  %v5464_v1 = vld [vmem:[#allocation3 + $0xc] sm:$0xff] }
 0x72b   : > { %3294 = vst [vmem:[#allocation7 + $0x110] sm:$0xff] %v3290_v32  ;;  %v3688_v28 = vpack.c.bf16 %v3684_v6, %v3683_v48  ;;  %v3687_v31 = vpack.c.bf16 %v3682_v8, %v3682_v8  ;;  %v5344_v48 = vld [vmem:[#allocation7 + $0x224] sm:$0xf]  ;;  %v5130_v6 = vld [vmem:[#allocation7 + $0x1e8] sm:$0xf] }
 0x72c   : > { %3250 = vst [vmem:[#allocation7 + $0xf0] sm:$0xff] %v3246_v57  ;;  %3424 = vrot.lane.b32.xlu2 %v3413_v24, %s5483_s8  ;;  %v6957_v2 = vpack.c.b16 %v3794_v63, %v3794_v63 }
 0x72e   : > { %v3164_v16 = vpop.permute.xlu2 %3163  ;;  %v3120_v44 = vpop.permute.xlu0 %3119 }
 0x72f   : > { %v3125_v19 = vrot.slane %v3120_v44, 4  ;;  %v3169_v52 = vrot.slane %v3164_v16, 4 }
 0x731   : > { %v3129_v7 = vsel %vm399_vm8, %v3125_v19, %v3126_v59  ;;  %2119 = vrot.lane.b32.xlu0 %v5463_v45, %s5483_s8  ;;  %v5290_v59 = vld [vmem:[#allocation7 + $0x6c] sm:$0xf0]  ;;  %v4932_v19 = vld [vmem:[#allocation7 + $0x70] sm:$0xf0]  ;;  %v5288_v45 = vld [vmem:[#allocation7 + $0x64] sm:$0xf] }
 0x732   : > { %v3130_v22 = vsel %vm544_vm11, %v3120_v44, %v3129_v7  ;;  %3700 = vrot.lane.b32.xlu1 %v3689_v49, %s5488_s13  ;;  %v5310_v46 = vld [vmem:[#allocation7 + $0x10c] sm:$0xf0]  ;;  %v5012_v0 = vld [vmem:[#allocation7 + $0x110] sm:$0xf0]  ;;  %v339_v49 = vld [vmem:[%s7076_s2 + $0x20] sm:$0xff] }
 0x733   : > { %3134 = vst [vmem:[#allocation7 + $0x90] sm:$0xff] %v3130_v22  ;;  %v5306_v47 = vld [vmem:[#allocation7 + $0xec] sm:$0xf0]  ;;  %v5011_v10 = vor.u32 %v5310_v46, %v5010_v15  ;;  %v4996_v9 = vld [vmem:[#allocation7 + $0xf0] sm:$0xf0]  ;;  %v5015_v23 = vor.u32 %v5308_v53, %v5012_v0  ;;  %v4935_v15 = vor.u32 %v5288_v45, %v4932_v19 }
 0x734   : > { %3466 = vrot.lane.b32.xlu2 %v3456_v51, %s5486_s11  ;;  %v4995_v4 = vor.u32 %v5306_v47, %v4994_v37  ;;  %v4999_v56 = vor.u32 %v5304_v27, %v4996_v9  ;;  %v4930_v7 = vld [vmem:[#allocation7 + $0x60] sm:$0xf]  ;;  %v5284_v53 = vld [vmem:[#allocation7 + $0x44] sm:$0xf]  ;;  %v4900_v9 = vld [vmem:[#allocation7 + $0x30] sm:$0xf0] }
 0x735   : > { %4184 = vmatpush.bf16.msrb.mxu1 %v5011_v10  ;;  %4223 = vmatpush.bf16.msra.mxu3 %v5015_v23  ;;  %v4931_v37 = vor.u32 %v5290_v59, %v4930_v7  ;;  %v4914_v46 = vld [vmem:[#allocation7 + $0x40] sm:$0xf]  ;;  %v5282_v10 = vld [vmem:[#allocation7 + $0x2c] sm:$0xf0]  ;;  %v5082_v19 = vld [vmem:[#allocation7 + $0x188] sm:$0xf] }
 0x736   : > { %4164 = vmatpush.bf16.msrb.mxu2 %v4995_v4  ;;  %4203 = vmatpush.bf16.msrb.mxu0 %v4999_v56  ;;  %v3166_v54 = vpop.permute.xlu0 %3165  ;;  %v3048_v41 = vpop.permute.xlu2 %3047  ;;  %v4898_v23 = vld [vmem:[#allocation7 + $0x20] sm:$0xf]  ;;  %v5280_v4 = vld [vmem:[#allocation7 + $0x24] sm:$0xf]  ;;  %v5327_v45 = vld [vmem:[#allocation7 + $0x194] sm:$0xf0] }
 0x737   : > { %v3170_v12 = vrot.slane %v3166_v54, 4  ;;  %v3053_v11 = vrot.slane %v3048_v41, 4  ;;  %v4899_v40 = vor.u32 %v5282_v10, %v4898_v23  ;;  %v4903_v13 = vor.u32 %v5280_v4, %v4900_v9  ;;  %v5132_v10 = vld [vmem:[#allocation7 + $0x1f8] sm:$0xf0]  ;;  %v5337_v9 = vld [vmem:[#allocation7 + $0x1ec] sm:$0xf] }
 0x738   : > { %4224 = vmatmul.bf16.vlgmr.msra.gmra.mxu3 %v6957_v2  ;;  %4185 = vmatmul.bf16.vlgmr.msrb.gmra.mxu1 %v6957_v2  ;;  %v5135_v4 = vor.u32 %v5337_v9, %v5132_v10 }
 0x739   : > { %v3173_v26 = vsel %vm399_vm8, %v3169_v52, %v3170_v12  ;;  %2125 = vrot.lane.b32.xlu0 %v2114_v18, %s5483_s8  ;;  %v5278_v18 = vld [vmem:[#allocation7 + $0xc] sm:$0xf0]  ;;  %v3793_v52 = vunpack.c.l.b16 %v6947_v14  ;;  %v5156_v12 = vld [vmem:[#allocation7 + $0x230] sm:$0xf0] }
 0x73a   : > { %v3174_v39 = vsel %vm598_vm2, %v3164_v16, %v3173_v26  ;;  %4165 = vmatpush.bf16.msrb.mxu2 %v4979_v30  ;;  %4204 = vmatpush.bf16.msrb.mxu0 %v4983_v43  ;;  %v5294_v17 = vld [vmem:[#allocation7 + $0x8c] sm:$0xf0]  ;;  %v4948_v57 = vld [vmem:[#allocation7 + $0x90] sm:$0xf0]  ;;  %v5292_v16 = vld [vmem:[#allocation7 + $0x84] sm:$0xf]  ;;  %v5159_v14 = vor.u32 %v5344_v48, %v5156_v12 }
 0x73b   : > { %3178 = vst [vmem:[#allocation7 + $0xb0] sm:$0xff] %v3174_v39  ;;  %v4947_v44 = vor.u32 %v5294_v17, %v4946_v3  ;;  %v4951_v42 = vor.u32 %v5292_v16, %v4948_v57  ;;  %v4882_v43 = vld [vmem:[#allocation7] sm:$0xf]  ;;  %v5276_v26 = vld [vmem:[#allocation7 + $0x4] sm:$0xf]  ;;  %v6986_v8 = vpack.c.b16 %v3793_v52, %v3793_v52 }
 0x73c   : > { %2123 = vrot.lane.b32.xlu2 %v5464_v1, %s5483_s8  ;;  %v4883_v39 = vor.u32 %v5278_v18, %v4882_v43  ;;  %v4887_v35 = vor.u32 %v5276_v26, %v4884_v50  ;;  %v5343_v3 = vld [vmem:[#allocation7 + $0x214] sm:$0xf0]  ;;  %v5333_v50 = vld [vmem:[#allocation7 + $0x1cc] sm:$0xf] }
 0x73d   : > { %v5325_v48 = vld [vmem:[#allocation7 + $0x18c] sm:$0xf] }
 0x73e   : > { %v3050_v33 = vpop.permute.xlu0 %3049  ;;  %v6962_v36 = vpop.permute.xlu2 %3650 }
 0x73f   : > { %v3054_v55 = vrot.slane %v3050_v33, 4  ;;  %v3658_v54 = vrot.slane %v6962_v36, 4  ;;  %v5131_v33 = vor.u32 %v5339_v58, %v5130_v6  ;;  %v5100_v58 = vld [vmem:[#allocation7 + $0x1b8] sm:$0xf0] }
 0x741   : > { %v3057_v38 = vsel %vm399_vm8, %v3053_v11, %v3054_v55  ;;  %3698 = vrot.lane.b32.xlu0 %v3688_v28, %s5488_s13  ;;  %v5140_v11 = vld [vmem:[#allocation7 + $0x210] sm:$0xf0]  ;;  %v5335_v55 = vld [vmem:[#allocation7 + $0x1d4] sm:$0xf0] }
 0x742   : > { %v3058_v61 = vsel %vm459_vm5, %v3048_v41, %v3057_v38  ;;  %v5298_v34 = vld [vmem:[#allocation7 + $0xac] sm:$0xf0]  ;;  %v4964_v20 = vld [vmem:[#allocation7 + $0xb0] sm:$0xf0]  ;;  %v5347_v28 = vld [vmem:[#allocation7 + $0x234] sm:$0xf0] }
 0x743   : > { %3062 = vst [vmem:[#allocation7 + $0x50] sm:$0xff] %v3058_v61  ;;  %v4963_v62 = vor.u32 %v5298_v34, %v4962_v5  ;;  %v4967_v32 = vor.u32 %v5296_v25, %v4964_v20  ;;  %v5340_v5 = vld [vmem:[#allocation7 + $0x204] sm:$0xf]  ;;  %v5162_v20 = vld [vmem:[#allocation7 + $0x228] sm:$0xf] }
 0x744   : > { %3696 = vrot.lane.b32.xlu2 %v3687_v31, %s5488_s13  ;;  %v5143_v34 = vor.u32 %v5340_v5, %v5140_v11  ;;  %v5068_v5 = vld [vmem:[#allocation7 + $0x178] sm:$0xf0] }
 0x745   : > { %4166 = vmatpush.bf16.msrb.mxu2 %v4963_v62  ;;  %4205 = vmatpush.bf16.msrb.mxu0 %v4967_v32  ;;  %v5163_v62 = vor.u32 %v5347_v28, %v5162_v20  ;;  %v5331_v32 = vld [vmem:[#allocation7 + $0x1b4] sm:$0xf0] }
 0x746   : > { %v6969_v24 = vpop.permute.xlu2 %3418 }
 0x747   : > { %v3426_v61 = vrot.slane %v6969_v24, 4 }
 0x749   : > { %4167 = vmatpush.bf16.msrb.mxu2 %v4947_v44  ;;  %4206 = vmatpush.bf16.msrb.mxu0 %v4951_v42  ;;  %v5098_v44 = vld [vmem:[#allocation7 + $0x1a8] sm:$0xf] }
 0x74a   : > { %4330 = vperm.xlu0 %5461, %v340_v60   ;;  %v5286_v27 = vld [vmem:[#allocation7 + $0x4c] sm:$0xf0]  ;;  %v4916_v22 = vld [vmem:[#allocation7 + $0x50] sm:$0xf0]  ;;  %v5099_v42 = vor.u32 %v5331_v32, %v5098_v44  ;;  %v5146_v60 = vld [vmem:[#allocation7 + $0x208] sm:$0xf] }
 0x74b   : > { %v4915_v0 = vor.u32 %v5286_v27, %v4914_v46  ;;  %v4919_v47 = vor.u32 %v5284_v53, %v4916_v22  ;;  %v5147_v59 = vor.u32 %v5343_v3, %v5146_v60  ;;  %v5083_v27 = vor.u32 %v5327_v45, %v5082_v19  ;;  %v5323_v22 = vld [vmem:[#allocation7 + $0x174] sm:$0xf0] }
 0x74c   : > { %3788 = vperm.xlu2 %5460, %v339_v49  }
 0x74d   : > { %4168 = vmatpush.bf16.msrb.mxu2 %v4931_v37  ;;  %4207 = vmatpush.bf16.msrb.mxu0 %v4935_v15 }
 0x74e   : > { %v6977_v51 = vpop.permute.xlu2 %3578 }
 0x751   : > { %4169 = vmatpush.bf16.msrb.mxu2 %v4915_v0  ;;  %4208 = vmatpush.bf16.msrb.mxu0 %v4919_v47  ;;  %v5066_v0 = vld [vmem:[#allocation7 + $0x168] sm:$0xf] }
 0x752   : > { %v5067_v47 = vor.u32 %v5323_v22, %v5066_v0 }
 0x753   : > { %v3653_v56 = vpop.permute.xlu0 %3652 }
 0x754   : > { %v3659_v41 = vrot.slane %v3653_v56, 4  ;;  %v3537_v1 = vpop.permute.xlu1 %3536  ;;  %v3586_v56 = vrot.slane %v6977_v51, 4 }
 0x755   : > { %4170 = vmatpush.bf16.msrb.mxu2 %v4899_v40  ;;  %4209 = vmatpush.bf16.msrb.mxu0 %v4903_v13  ;;  %v3543_v37 = vrot.slane %v3537_v1, 4 }
 0x756   : > { %v3662_v21 = vsel %vm399_vm8, %v3658_v54, %v3659_v41  ;;  %v6982_v30 = vpop.permute.xlu2 %3506  ;;  %v5116_v54 = vld [vmem:[#allocation7 + $0x1d8] sm:$0xf0] }
 0x757   : > { %v3663_v63 = vsel %vm681_vm9, %v6962_v36, %v3662_v21  ;;  %v5114_v36 = vld [vmem:[#allocation7 + $0x1c8] sm:$0xf]  ;;  %v5119_v12 = vor.u32 %v5333_v50, %v5116_v54  ;;  %v5329_v21 = vld [vmem:[#allocation7 + $0x1ac] sm:$0xf] }
 0x758   : > { %3668 = vst [vmem:[#allocation7 + $0xe8] sm:$0xff] %v3663_v63  ;;  %v5115_v25 = vor.u32 %v5335_v55, %v5114_v36  ;;  %v5103_v26 = vor.u32 %v5329_v21, %v5100_v58  ;;  %v3514_v63 = vrot.slane %v6982_v30, 4  ;;  %v5321_v36 = vld [vmem:[#allocation7 + $0x16c] sm:$0xf] }
 0x759   : > { %4171 = vmatpush.bf16.msrb.mxu2 %v4883_v39  ;;  %4210 = vmatpush.bf16.msrb.mxu0 %v4887_v35 }
 0x75b   : > { %v3421_v38 = vpop.permute.xlu0 %3420 }
 0x75c   : > { %v3427_v31 = vrot.slane %v3421_v38, 4  ;;  %4172 = vmatmul.bf16.vlgmr.msrb.gmra.mxu2 %v6986_v8  ;;  %4211 = vmatmul.bf16.vlgmr.msrb.gmra.mxu0 %v6986_v8  ;;  %v6996_v49 = vpop.permute.xlu1 %3624 }
 0x75d   : > { %4235 = vmatpush.bf16.msra.mxu2 %v5159_v14  ;;  %4255 = vmatpush.bf16.msra.mxu0 %v5131_v33 }
 0x75e   : > { %v3430_v17 = vsel %vm399_vm8, %v3426_v61, %v3427_v31  ;;  %v6992_v57 = vpop.permute.xlu2 %3656  ;;  %v5071_v31 = vor.u32 %v5321_v36, %v5068_v5 }
 0x75f   : > { %v3431_v16 = vsel %vm401_vm12, %v6969_v24, %v3430_v17  ;;  %v3661_v6 = vrot.slane %v6992_v57, 4  ;;  %v5002_v17 = vld [vmem:[#allocation7 + $0xe8] sm:$0xf]  ;;  %v5305_v57 = vld [vmem:[#allocation7 + $0xec] sm:$0xf] }
 0x760   : > { %3436 = vst [vmem:[#allocation7 + $0x28] sm:$0xff] %v3431_v16 }
 0x761   : > { %4236 = vmatpush.bf16.msra.mxu2 %v5143_v34  ;;  %4256 = vmatpush.bf16.msra.mxu0 %v5115_v25  ;;  %v3631_v34 = vrot.slane %v6996_v49, 4 }
 0x763   : > { %v3535_v7 = vpop.permute.xlu0 %3534 }
 0x764   : > { %v3542_v15 = vrot.slane %v3535_v7, 4  ;;  %v3465_v40 = vpop.permute.xlu1 %3464 }
 0x765   : > { %4274 = vmatpush.bf16.msrb.mxu2 %v5163_v62  ;;  %4257 = vmatpush.bf16.msra.mxu0 %v5099_v42 }
 0x766   : > { %v3546_v46 = vsel %vm399_vm8, %v3542_v15, %v3543_v37  ;;  %v6999_v24 = vpop.permute.xlu2 %3538 }
 0x767   : > { %v3547_v53 = vsel %vm544_vm11, %v3535_v7, %v3546_v46 }
 0x768   : > { %3552 = vst [vmem:[#allocation7 + $0x88] sm:$0xff] %v3547_v53 }
 0x769   : > { %4275 = vmatpush.bf16.msrb.mxu2 %v5147_v59  ;;  %4258 = vmatpush.bf16.msra.mxu0 %v5083_v27  ;;  %v3471_v59 = vrot.slane %v3465_v40, 4 }
 0x76b   : > { %v3581_v23 = vpop.permute.xlu0 %3580 }
 0x76c   : > { %v3587_v13 = vrot.slane %v3581_v23, 4  ;;  %5169 = vmatmul.msk.bf16.vlgmr.msra.gmra.mxu2 %vm7104_vm3, %v6928_v29  ;;  %v3544_v23 = vrot.slane %v6999_v24, 4 }
 0x76d   : > { %4259 = vmatpush.bf16.msra.mxu0 %v5067_v47  ;;  %4294 = vmatpush.bf16.msra.mxu2 %v5135_v4 }
 0x76e   : > { %v3590_v41 = vsel %vm399_vm8, %v3586_v56, %v3587_v13  ;;  %v3585_v18 = vpop.permute.xlu2 %3584 }
 0x76f   : > { %v3591_v52 = vsel %vm598_vm2, %v6977_v51, %v3590_v41  ;;  %v5084_v51 = vld [vmem:[#allocation7 + $0x198] sm:$0xf0]  ;;  %v3589_v7 = vrot.slane %v3585_v18, 4 }
 0x770   : > { %3596 = vst [vmem:[#allocation7 + $0xa8] sm:$0xff] %v3591_v52  ;;  %v5087_v28 = vor.u32 %v5325_v48, %v5084_v51 }
 0x771   : > { %4295 = vmatpush.bf16.msra.mxu2 %v5119_v12 }
 0x773   : > { %v3509_v43 = vpop.permute.xlu0 %3508 }
 0x774   : > { %v3515_v39 = vrot.slane %v3509_v43, 4  ;;  %v3655_v35 = vpop.permute.xlu1 %3654 }
 0x775   : > { %4296 = vmatpush.bf16.msra.mxu2 %v5103_v26  ;;  %v3660_v1 = vrot.slane %v3655_v35, 4 }
 0x776   : > { %v3518_v14 = vsel %vm399_vm8, %v3514_v63, %v3515_v39  ;;  %v3513_v33 = vpop.permute.xlu2 %3512 }
 0x777   : > { %v3519_v11 = vsel %vm515_vm4, %v6982_v30, %v3518_v14  ;;  %v3664_v55 = vsel %vm399_vm8, %v3660_v1, %v3661_v6  ;;  %v3517_v40 = vrot.slane %v3513_v33, 4 }
 0x778   : > { %3524 = vst [vmem:[#allocation7 + $0x68] sm:$0xff] %v3519_v11  ;;  %v3665_v38 = vsel %vm681_vm9, %v3655_v35, %v3664_v55  ;;  %vm4333_vm9 = vcmask 64512  }
 0x779   : > { %3669 = vst [vmem:[#allocation7 + $0xf8] sm:$0xff] %v3665_v38  ;;  %4297 = vmatpush.bf16.msra.mxu2 %v5087_v28 }
 0x77b   : > { %v3623_v61 = vpop.permute.xlu0 %3622 }
 0x77c   : > { %v3630_v25 = vrot.slane %v3623_v61, 4  ;;  %v3423_v20 = vpop.permute.xlu1 %3422  ;;  %5170 = vmatmul.msk.bf16.vlgmr.msrb.gmra.mxu2 %vm7105_vm1, %v6928_v29 }
 0x77d   : > { %4298 = vmatpush.bf16.msra.mxu2 %v5071_v31  ;;  %v3428_v27 = vrot.slane %v3423_v20, 4 }
 0x77e   : > { %v3634_v30 = vsel %vm399_vm8, %v3630_v25, %v3631_v34  ;;  %v3627_v62 = vpop.permute.xlu2 %3626 }
 0x77f   : > { %v3635_v32 = vsel %vm652_vm14, %v3623_v61, %v3634_v30  ;;  %v3632_v58 = vrot.slane %v3627_v62, 4 }
 0x780   : > { %3640 = vst [vmem:[#allocation7 + $0xc8] sm:$0xff] %v3635_v32  ;;  %v5307_v3 = vld [vmem:[#allocation7 + $0xf4] sm:$0xf0]  ;;  %v5004_v16 = vld [vmem:[#allocation7 + $0xf8] sm:$0xf0] }
 0x781   : > { %v5003_v44 = vor.u32 %v5307_v3, %v5002_v17  ;;  %v5007_v42 = vor.u32 %v5305_v57, %v5004_v16  ;;  %v5297_v32 = vld [vmem:[#allocation7 + $0xac] sm:$0xf] }
 0x783   : > { %v3463_v60 = vpop.permute.xlu0 %3462  ;;  %4242 = vmatpush.bf16.msra.mxu1 %v5003_v44  ;;  %4281 = vmatpush.bf16.msrb.mxu3 %v5007_v42 }
 0x784   : > { %v3470_v19 = vrot.slane %v3463_v60, 4  ;;  %v3583_v49 = vpop.permute.xlu1 %3582 }
 0x785   : > { %v3588_v45 = vrot.slane %v3583_v49, 4 }
 0x786   : > { %v3474_v37 = vsel %vm399_vm8, %v3470_v19, %v3471_v59  ;;  %v3425_v15 = vpop.permute.xlu2 %3424  ;;  %v4954_v19 = vld [vmem:[#allocation7 + $0x88] sm:$0xf] }
 0x787   : > { %v3475_v22 = vsel %vm459_vm5, %v3463_v60, %v3474_v37  ;;  %v3592_v46 = vsel %vm399_vm8, %v3588_v45, %v3589_v7  ;;  %v3429_v53 = vrot.slane %v3425_v15, 4  ;;  %v4986_v33 = vld [vmem:[#allocation7 + $0xc8] sm:$0xf]  ;;  %v5301_v51 = vld [vmem:[#allocation7 + $0xcc] sm:$0xf] }
 0x788   : > { %3480 = vst [vmem:[#allocation7 + $0x48] sm:$0xff] %v3475_v22  ;;  %v3593_v0 = vsel %vm598_vm2, %v3583_v49, %v3592_v46  ;;  %v5293_v49 = vld [vmem:[#allocation7 + $0x8c] sm:$0xf]  ;;  %v4938_v46 = vld [vmem:[#allocation7 + $0x68] sm:$0xf] }
 0x789   : > { %3597 = vst [vmem:[#allocation7 + $0xb8] sm:$0xff] %v3593_v0  ;;  %v3432_v47 = vsel %vm399_vm8, %v3428_v27, %v3429_v53  ;;  %v5289_v53 = vld [vmem:[#allocation7 + $0x6c] sm:$0xf] }
 0x78a   : > { %v3433_v10 = vsel %vm401_vm12, %v3423_v20, %v3432_v47 }
 0x78b   : > { %3437 = vst [vmem:[#allocation7 + $0x38] sm:$0xff] %v3433_v10  ;;  %v3541_v9 = vpop.permute.xlu0 %3540 }
 0x78c   : > { %v3545_v4 = vrot.slane %v3541_v9, 4  ;;  %v3511_v56 = vpop.permute.xlu1 %3510 }
 0x78d   : > { %v3516_v13 = vrot.slane %v3511_v56, 4 }
 0x78e   : > { %v3548_v54 = vsel %vm399_vm8, %v3544_v23, %v3545_v4  ;;  %v3467_v41 = vpop.permute.xlu2 %3466 }
 0x78f   : > { %v3549_v18 = vsel %vm544_vm11, %v6999_v24, %v3548_v54  ;;  %v3520_v50 = vsel %vm399_vm8, %v3516_v13, %v3517_v40  ;;  %v3472_v48 = vrot.slane %v3467_v41, 4  ;;  %v4922_v40 = vld [vmem:[#allocation7 + $0x48] sm:$0xf]  ;;  %v5285_v13 = vld [vmem:[#allocation7 + $0x4c] sm:$0xf] }
 0x790   : > { %3553 = vst [vmem:[#allocation7 + $0x98] sm:$0xff] %v3549_v18  ;;  %v3521_v52 = vsel %vm515_vm4, %v3511_v56, %v3520_v50  ;;  %v5299_v34 = vld [vmem:[#allocation7 + $0xb4] sm:$0xf0]  ;;  %v4972_v25 = vld [vmem:[#allocation7 + $0xb8] sm:$0xf0] }
 0x791   : > { %3525 = vst [vmem:[#allocation7 + $0x78] sm:$0xff] %v3521_v52  ;;  %v4975_v16 = vor.u32 %v5297_v32, %v4972_v25  ;;  %v5345_v25 = vld [vmem:[#allocation7 + $0x22c] sm:$0xf] }
 0x792   : > { %v5283_v52 = vld [vmem:[#allocation7 + $0x34] sm:$0xf0]  ;;  %v5313_v32 = vld [vmem:[#allocation7 + $0x12c] sm:$0xf] }
 0x793   : > { %v3629_v12 = vpop.permute.xlu0 %3628 }
 0x794   : > { %v3633_v21 = vrot.slane %v3629_v12, 4  ;;  %v2122_v43 = vpop.permute.xlu1 %2121  ;;  %v4908_v12 = vld [vmem:[#allocation7 + $0x38] sm:$0xf0] }
 0x795   : > { %v2128_v17 = vrot.slane %v2122_v43, 4  ;;  %v5281_v43 = vld [vmem:[#allocation7 + $0x2c] sm:$0xf] }
 0x796   : > { %v3636_v26 = vsel %vm399_vm8, %v3632_v58, %v3633_v21  ;;  %v2124_v63 = vpop.permute.xlu2 %2123  ;;  %v4906_v21 = vld [vmem:[#allocation7 + $0x28] sm:$0xf] }
 0x797   : > { %v3637_v39 = vsel %vm652_vm14, %v3627_v62, %v3636_v26  ;;  %v4970_v62 = vld [vmem:[#allocation7 + $0xa8] sm:$0xf]  ;;  %v5295_v44 = vld [vmem:[#allocation7 + $0x94] sm:$0xf0]  ;;  %v4956_v42 = vld [vmem:[#allocation7 + $0x98] sm:$0xf0] }
 0x798   : > { %3641 = vst [vmem:[#allocation7 + $0xd8] sm:$0xff] %v3637_v39  ;;  %v4971_v3 = vor.u32 %v5299_v34, %v4970_v62  ;;  %v4955_v7 = vor.u32 %v5295_v44, %v4954_v19  ;;  %v4959_v45 = vor.u32 %v5293_v49, %v4956_v42  ;;  %v5291_v37 = vld [vmem:[#allocation7 + $0x74] sm:$0xf0]  ;;  %v4940_v15 = vld [vmem:[#allocation7 + $0x78] sm:$0xf0]  ;;  %v2129_v27 = vrot.slane %v2124_v63, 4 }
 0x799   : > { %v4939_v47 = vor.u32 %v5291_v37, %v4938_v46  ;;  %v4943_v10 = vor.u32 %v5289_v53, %v4940_v15  ;;  %v5341_v44 = vld [vmem:[#allocation7 + $0x20c] sm:$0xf] }
 0x79b   : > { %v3469_v35 = vpop.permute.xlu0 %3468 }
 0x79c   : > { %v3473_v6 = vrot.slane %v3469_v35, 4  ;;  %v3695_v24 = vpop.permute.xlu1 %3694  ;;  %v4907_v35 = vor.u32 %v5283_v52, %v4906_v21 }
 0x79d   : > { %v3702_v55 = vrot.slane %v3695_v24, 4 }
 0x79e   : > { %v3476_v1 = vsel %vm399_vm8, %v3472_v48, %v3473_v6  ;;  %v3697_v14 = vpop.permute.xlu2 %3696  ;;  %v4911_v48 = vor.u32 %v5281_v43, %v4908_v12  ;;  %v5164_v6 = vld [vmem:[#allocation7 + $0x238] sm:$0xf0] }
 0x79f   : > { %v3477_v11 = vsel %vm459_vm5, %v3467_v41, %v3476_v1  ;;  %v3703_v28 = vrot.slane %v3697_v14, 4  ;;  %v5303_v38 = vld [vmem:[#allocation7 + $0xd4] sm:$0xf0]  ;;  %v4988_v5 = vld [vmem:[#allocation7 + $0xd8] sm:$0xf0]  ;;  %v5167_v62 = vor.u32 %v5345_v25, %v5164_v6 }
 0x7a0   : > { %3481 = vst [vmem:[#allocation7 + $0x58] sm:$0xff] %v3477_v11  ;;  %v4987_v36 = vor.u32 %v5303_v38, %v4986_v33  ;;  %v4991_v61 = vor.u32 %v5301_v51, %v4988_v5  ;;  %v4890_v1 = vld [vmem:[#allocation7 + $0x8] sm:$0xf]  ;;  %v4892_v33 = vld [vmem:[#allocation7 + $0x18] sm:$0xf0] }
 0x7a1   : > { %v3706_v31 = vsel %vm399_vm8, %v3702_v55, %v3703_v28  ;;  %v7042_v54 = vpop.f32.mrf.mxu3 }
 0x7a2   : > { %v3707_v20 = vsel %vm735_vm13, %v3695_v24, %v3706_v31  ;;  %4243 = vmatpush.bf16.msra.mxu1 %v4987_v36  ;;  %4282 = vmatpush.bf16.msrb.mxu3 %v4991_v61  ;;  %v5277_v61 = vld [vmem:[#allocation7 + $0xc] sm:$0xf] }
 0x7a3   : > { %3712 = vst [vmem:[#allocation7 + $0x108] sm:$0xff] %v3707_v20  ;;  %v2120_v30 = vpop.permute.xlu0 %2119  ;;  %v4895_v34 = vor.u32 %v5277_v61, %v4892_v33  ;;  %v5034_v20 = vld [vmem:[#allocation7 + $0x128] sm:$0xf] }
 0x7a4   : > { %v2127_v57 = vrot.slane %v2120_v30, 4  ;;  %v3701_v50 = vpop.permute.xlu1 %3700 }
 0x7a5   : > { %v3705_v26 = vrot.slane %v3701_v50, 4 }
 0x7a6   : > { %v2131_v60 = vsel %vm399_vm8, %v2127_v57, %v2128_v17  ;;  %4244 = vmatpush.bf16.msra.mxu1 %v4971_v3  ;;  %4283 = vmatpush.bf16.msrb.mxu3 %v4975_v16  ;;  %v5036_v17 = vld [vmem:[#allocation7 + $0x138] sm:$0xf0]  ;;  %v3789_v46 = vpop.permute.xlu2 %3788 }
 0x7a7   : > { %v2132_v59 = vsel %vm401_vm12, %v2120_v30, %v2131_v60  ;;  %v5287_v9 = vld [vmem:[#allocation7 + $0x54] sm:$0xf0]  ;;  %v4924_v23 = vld [vmem:[#allocation7 + $0x58] sm:$0xf0]  ;;  %v5039_v16 = vor.u32 %v5313_v32, %v5036_v17 }
 0x7a8   : > { %2137 = vst [vmem:[#allocation7 + $0x148] sm:$0xff] %v2132_v59  ;;  %v4923_v41 = vor.u32 %v5287_v9, %v4922_v40  ;;  %v4927_v18 = vor.u32 %v5285_v13, %v4924_v23  ;;  %v5315_v30 = vld [vmem:[#allocation7 + $0x134] sm:$0xf0]  ;;  %v5148_v57 = vld [vmem:[#allocation7 + $0x218] sm:$0xf0] }
 0x7a9   : > { %v4201_v38 = vpop.f32.mrf.mxu3  ;;  %v5035_v3 = vor.u32 %v5315_v30, %v5034_v20  ;;  %v5151_v42 = vor.u32 %v5341_v44, %v5148_v57 }
 0x7aa   : > { %4245 = vmatpush.bf16.msra.mxu1 %v4955_v7  ;;  %4284 = vmatpush.bf16.msrb.mxu3 %v4959_v45  ;;  %v5018_v60 = vld [vmem:[#allocation7 + $0x108] sm:$0xf]  ;;  %v5309_v19 = vld [vmem:[#allocation7 + $0x10c] sm:$0xf] }
 0x7ab   : > { %v2126_v22 = vpop.permute.xlu0 %2125 }
 0x7ac   : > { %v2130_v0 = vrot.slane %v2126_v22, 4 }
 0x7ae   : > { %v2133_v4 = vsel %vm399_vm8, %v2129_v27, %v2130_v0  ;;  %4246 = vmatpush.bf16.msra.mxu1 %v4939_v47  ;;  %4285 = vmatpush.bf16.msrb.mxu3 %v4943_v10 }
 0x7af   : > { %v2134_v56 = vsel %vm401_vm12, %v2124_v63, %v2133_v4  ;;  %v5279_v63 = vld [vmem:[#allocation7 + $0x14] sm:$0xf0]  ;;  %v5050_v14 = vld [vmem:[#allocation7 + $0x148] sm:$0xf]  ;;  %v5317_v55 = vld [vmem:[#allocation7 + $0x14c] sm:$0xf] }
 0x7b0   : > { %2138 = vst [vmem:[#allocation7 + $0x158] sm:$0xff] %v2134_v56  ;;  %v4891_v5 = vor.u32 %v5279_v63, %v4890_v1 }
 0x7b2   : > { %4247 = vmatpush.bf16.msra.mxu1 %v4923_v41  ;;  %4286 = vmatpush.bf16.msrb.mxu3 %v4927_v18 }
 0x7b3   : > { %v3699_v58 = vpop.permute.xlu0 %3698 }
 0x7b4   : > { %v3704_v39 = vrot.slane %v3699_v58, 4 }
 0x7b5   : > { %v4186_v15 = vpop.f32.mrf.mxu1 }
 0x7b6   : > { %v3708_v24 = vsel %vm399_vm8, %v3704_v39, %v3705_v26  ;;  %4248 = vmatpush.bf16.msra.mxu1 %v4907_v35  ;;  %4287 = vmatpush.bf16.msrb.mxu3 %v4911_v48 }
 0x7b7   : > { %v3709_v51 = vsel %vm735_vm13, %v3699_v58, %v3708_v24  ;;  %v5319_v11 = vld [vmem:[#allocation7 + $0x154] sm:$0xf0]  ;;  %v5052_v28 = vld [vmem:[#allocation7 + $0x158] sm:$0xf0] }
 0x7b8   : > { %3713 = vst [vmem:[#allocation7 + $0x118] sm:$0xff] %v3709_v51  ;;  %v5051_v36 = vor.u32 %v5319_v11, %v5050_v14  ;;  %v5055_v31 = vor.u32 %v5317_v55, %v5052_v28 }
 0x7ba   : > { %4249 = vmatpush.bf16.msra.mxu1 %v4891_v5  ;;  %4260 = vmatpush.bf16.msra.mxu0 %v5051_v36 }
 0x7bb   : > { %4288 = vmatpush.bf16.msrb.mxu3 %v4895_v34  ;;  %4299 = vmatpush.bf16.msra.mxu2 %v5055_v31  ;;  %v4225_v37 = vpop.f32.mrf.mxu3 }
 0x7bd   : > { %4250 = vmatmul.bf16.vlgmr.msra.gmra.mxu1 %v6986_v8  ;;  %v4188_v27 = vpop.f32.mrf.mxu1 }
 0x7be   : > { %4313 = vmatpush.bf16.msrb.mxu1 %v5167_v62  ;;  %4289 = vmatmul.bf16.vlgmr.msrb.gmra.mxu3 %v6986_v8  ;;  %v4331_v62 = vpop.permute.xlu0 %4330 }
 0x7bf   : > { %4261 = vmatpush.bf16.msra.mxu0 %v5035_v3  ;;  %4300 = vmatpush.bf16.msra.mxu2 %v5039_v16  ;;  %v5311_v59 = vld [vmem:[#allocation7 + $0x114] sm:$0xf0]  ;;  %v5020_v49 = vld [vmem:[#allocation7 + $0x118] sm:$0xf0] }
 0x7c0   : > { %v5019_v7 = vor.u32 %v5311_v59, %v5018_v60  ;;  %v5023_v45 = vor.u32 %v5309_v19, %v5020_v49 }
 0x7c2   : > { %4314 = vmatpush.bf16.msrb.mxu1 %v5151_v42 }
 0x7c3   : > { %4262 = vmatpush.bf16.msra.mxu0 %v5019_v7  ;;  %4301 = vmatpush.bf16.msra.mxu2 %v5023_v45  ;;  %v4227_v8 = vpop.f32.mrf.mxu3 }
 0x7c6   : > { %4263 = vmatmul.bf16.vlgmr.msra.gmra.mxu0 %v6957_v2  ;;  %4302 = vmatmul.bf16.vlgmr.msra.gmra.mxu2 %v6957_v2  ;;  %v335_v2 = vld [vmem:[%s7075_s1 + $0x48] sm:$0x3] }
 0x7cd   : > { %5171 = vmatmul.msk.bf16.vlgmr.msrb.gmra.mxu1 %vm7106_vm6, %v6928_v29 }
 0x7d9   : > { %v4212_v22 = vpop.f32.mrf.mxu0 }
 0x7da   : > { %v4213_v40 = vadd.f32 %v4212_v22, %v3789_v46 }
 0x7dc   : > { %v4226_v29 = vadd.f32 %v4225_v37, %v4213_v40 }
 0x7df   : > { %v4173_v53 = vpop.f32.mrf.mxu2 }
 0x7e0   : > { %v4174_v0 = vadd.f32 %v4173_v53, %v3789_v46 }
 0x7e1   : > { %v4214_v47 = vpop.f32.mrf.mxu0 }
 0x7e2   : > { %v4187_v10 = vadd.f32 %v4186_v15, %v4174_v0 }
 0x7e4   : > { %v4200_v9 = vadd.f32 %v7042_v54, %v4187_v10 }
 0x7e6   : > { %v4320_v23 = vmax.f32 %v4200_v9, 0.0 }
 0x7e7   : > { %v4175_v4 = vpop.f32.mrf.mxu2 }
 0x7e8   : > { %v4324_v56 = vpack.c.bf16 %v4320_v23, %v4320_v23 }
 0x7ea   : > { %v4339_v13 = vsel %vm399_vm8, %v4324_v56, 0 }
 0x7eb   : > { %4357 = vmatpush.bf16.msrb.mxu0 %v4339_v13 }
 0x7ee   : > { %5172 = vmatmul.msk.bf16.vlgmr.msrb.gmra.mxu0 %vm4333_vm9, %v335_v2 }
 0x7ef   : > { %v4238_v41 = vpop.f32.mrf.mxu2 }
 0x7f0   : > { %v4239_v18 = vadd.f32 %v4238_v41, %v4226_v29 }
 0x7f2   : > { %v4321_v50 = vmax.f32 %v4239_v18, 0.0 }
 0x7f4   : > { %v4325_v52 = vpack.c.bf16 %v4321_v50, %v4321_v50 }
 0x7f6   : > { %v4342_v54 = vsel %vm399_vm8, %v4325_v52, 0 }
 0x7f7   : > { %4370 = vmatpush.bf16.msra.mxu1 %v4342_v54  ;;  %v4240_v12 = vpop.f32.mrf.mxu2 }
 0x7fa   : > { %5173 = vmatmul.msk.bf16.vlgmr.msra.gmra.mxu1 %vm4333_vm9, %v335_v2 }
 0x7ff   : > { %v4277_v58 = vpop.f32.mrf.mxu2 }
 0x807   : > { %v4279_v21 = vpop.f32.mrf.mxu2 }
 0x83a   : > { %v4251_v43 = vpop.f32.mrf.mxu1 }
 0x83b   : > { %v4252_v26 = vadd.f32 %v4251_v43, %v3789_v46 }
 0x841   : > { %v4290_v39 = vpop.f32.mrf.mxu3 }
 0x842   : > { %v4253_v35 = vpop.f32.mrf.mxu1  ;;  %v4291_v1 = vadd.f32 %v4290_v39, %v3789_v46 }
 0x843   : > { %v4264_v48 = vpop.f32.mrf.mxu0 }
 0x844   : > { %v4265_v63 = vadd.f32 %v4264_v48, %v4252_v26 }
 0x846   : > { %v4278_v6 = vadd.f32 %v4277_v58, %v4265_v63 }
 0x848   : > { %v4322_v24 = vmax.f32 %v4278_v6, 0.0 }
 0x849   : > { %v4292_v33 = vpop.f32.mrf.mxu3  ;;  %v4303_v51 = vpop.f32.mrf.mxu2 }
 0x84a   : > { %v4326_v14 = vpack.c.bf16 %v4322_v24, %v4322_v24  ;;  %v4304_v11 = vadd.f32 %v4303_v51, %v4291_v1  ;;  %v4316_v28 = vpop.f32.mrf.mxu1 }
 0x84b   : > { %v4266_v55 = vpop.f32.mrf.mxu0 }
 0x84c   : > { %v4345_v38 = vsel %vm399_vm8, %v4326_v14, 0  ;;  %v4317_v5 = vadd.f32 %v4316_v28, %v4304_v11 }
 0x84d   : > { %4383 = vmatpush.bf16.msra.mxu3 %v4345_v38 }
 0x84e   : > { %v4323_v36 = vmax.f32 %v4317_v5, 0.0 }
 0x850   : > { %5174 = vmatmul.msk.bf16.vlgmr.msra.gmra.mxu3 %vm4333_vm9, %v335_v2  ;;  %v4327_v61 = vpack.c.bf16 %v4323_v36, %v4323_v36 }
 0x851   : > { %v4305_v31 = vpop.f32.mrf.mxu2 }
 0x852   : > { %v4318_v34 = vpop.f32.mrf.mxu1  ;;  %v4348_v25 = vsel %vm399_vm8, %v4327_v61, 0 }
 0x853   : > { %4396 = vmatpush.bf16.msra.mxu0 %v4348_v25 }
 0x856   : > { %5175 = vmatmul.msk.bf16.vlgmr.msra.gmra.mxu0 %vm4333_vm9, %v335_v2 }
 0x86b   : > { %v4359_v20 = vpop.f32.mrf.mxu0 }
 0x86c   : > { %v4360_v57 = vadd.f32 %v4359_v20, %v4331_v62 }
 0x873   : > { %v4361_v30 = vpop.f32.mrf.mxu0 }
 0x877   : > { %v4372_v32 = vpop.f32.mrf.mxu1 }
 0x878   : > { %v4373_v17 = vadd.f32 %v4372_v32, %v4331_v62 }
 0x87a   : > { %v4404_v3 = vrot.slane %v4373_v17, 4 }
 0x87c   : > { %v4405_v16 = vsel %vm399_vm8, %v4360_v57, %v4404_v3 }
 0x87d   : > { %4407 = vst [vmem:[%s231_s16] sm:$0x77] %v4405_v16 }
 0x87f   : > { %v4374_v44 = vpop.f32.mrf.mxu1 }
 0x8d3   : > { %v4385_v42 = vpop.f32.mrf.mxu3  ;;  %v4398_v60 = vpop.f32.mrf.mxu0 }
 0x8d4   : > { %v4399_v59 = vadd.f32 %v4398_v60, %v4331_v62  ;;  %v4386_v19 = vadd.f32 %v4385_v42, %v4331_v62 }
 0x8d6   : > { %v4410_v49 = vrot.slane %v4399_v59, 4 }
 0x8d8   : > { %v4411_v7 = vsel %vm399_vm8, %v4386_v19, %v4410_v49 }
 0x8d9   : > { %5176 = vst [vmem:[%s231_s16 + $0x8] sm:$0x77] %v4411_v7 }
 0x8db   : > { %v4387_v45 = vpop.f32.mrf.mxu3  ;;  %v4400_v37 = vpop.f32.mrf.mxu0 }
 0x8dc PF: > { %s15_s18 = sadd.s32 1, %s5471_s18  }
 0x8dd   : > { %p12_p4 = scmp.ge.s32.totalorder %s15_s18, 4  }
 0x8df   :  { %14 = sbr.rel (!%p12_p4) target bundleno = 1 (0x1), region = 72 }

</bundles_post_ra>
